<compile_context>
chip_gen: v5e
topology: v5e:2x2
jax: 0.10.0
libtpu: 0.0.40
codegen_flags: <defaults>
</compile_context>

<pallas_src>
import functools
import math

import jax
import jax.numpy as jnp
from jax.experimental import pallas as pl
from jax.experimental.pallas import tpu as pltpu

BN_EPS = 1e-5


# ----------------------------------------------------------------------------
# Pallas kernel: tiled GEMM + affine (folded BN / conv bias) + activation
# (+ optional residual), K-accumulated in a VMEM f32 scratch.
# ----------------------------------------------------------------------------
def _gemm_affine_act_kernel(a_ref, w_ref, scale_ref, bias_ref, *rest,
                            act, has_res):
    if has_res:
        res_ref, o_ref, acc_ref = rest
    else:
        o_ref, acc_ref = rest

    @pl.when(pl.program_id(2) == 0)
    def _():
        acc_ref[...] = jnp.zeros_like(acc_ref)

    acc_ref[...] += jnp.dot(a_ref[...], w_ref[...],
                            preferred_element_type=jnp.float32)

    @pl.when(pl.program_id(2) == pl.num_programs(2) - 1)
    def _():
        y = acc_ref[...] * scale_ref[...] + bias_ref[...]
        if act == "relu":
            y = jnp.maximum(y, 0.0)
        elif act == "sigmoid":
            # exact division keeps the output strictly inside [0, 1]
            y = 1.0 / (1.0 + jnp.exp(-y))
        if has_res:
            y = y + res_ref[...]          # RSU residual rides the VPU slot
        o_ref[...] = y.astype(o_ref.dtype)


def _round_up(x, m):
    return ((x + m - 1) // m) * m


def _pick_tile(dim, align, cap):
    """Pad `dim` to `align`; pick the largest tile (multiple of align, <= cap)
    that divides the padded dim exactly."""
    padded = _round_up(dim, align)
    tile = align
    t = align
    limit = min(cap, padded)
    while t <= limit:
        if padded % t == 0:
            tile = t
        t += align
    return padded, tile


def _tile_caps():
    # v7x has only 64 MiB VMEM per TensorCore -> keep tiles conservative there;
    # v5e/v6e (128 MiB) can afford a taller M tile.
    try:
        kind = jax.devices()[0].device_kind.lower()
    except Exception:
        kind = ""
    if "v5" in kind or "v6" in kind:
        return 512, 256, 512      # (tm, tn, tk) caps
    return 256, 256, 512          # v7x-safe default


def pallas_gemm_affine_act(a, w, scale, bias, act, residual=None):
    """(M,K) @ (K,N) * scale + bias, activation, optional (+residual).

    A/W are cast to bf16 (MXU fast path); accumulation, affine, activation and
    residual stay in f32.  M/N/K are padded so N and K are lane-dense (128)
    and every output store is unmasked.
    """
    M, K = a.shape
    K2, N = w.shape
    assert K == K2
    tm_cap, tn_cap, tk_cap = _tile_caps()
    Mp, tm = _pick_tile(M, 8, tm_cap)
    Np, tn = _pick_tile(N, 128, tn_cap)
    Kp, tk = _pick_tile(K, 128, tk_cap)

    a_p = jnp.pad(a.astype(jnp.bfloat16), ((0, Mp - M), (0, Kp - K)))
    w_p = jnp.pad(w.astype(jnp.bfloat16), ((0, Kp - K), (0, Np - N)))
    scale_p = jnp.pad(scale.astype(jnp.float32).reshape(1, N),
                      ((0, 0), (0, Np - N)))
    bias_p = jnp.pad(bias.astype(jnp.float32).reshape(1, N),
                     ((0, 0), (0, Np - N)))

    in_specs = [pl.BlockSpec((tm, tk), lambda i, j, k: (i, k)),
                pl.BlockSpec((tk, tn), lambda i, j, k: (k, j)),
                pl.BlockSpec((1, tn), lambda i, j, k: (0, j)),
                pl.BlockSpec((1, tn), lambda i, j, k: (0, j))]
    inputs = [a_p, w_p, scale_p, bias_p]
    has_res = residual is not None
    if has_res:
        res_p = jnp.pad(residual.astype(jnp.float32),
                        ((0, Mp - M), (0, Np - N)))
        in_specs.append(pl.BlockSpec((tm, tn), lambda i, j, k: (i, j)))
        inputs.append(res_p)

    bytes_accessed = (Mp * Kp * 2 + Kp * Np * 2 + Mp * Np * 4
                      + (Mp * Np * 4 if has_res else 0) + 2 * Np * 4)
    kernel = functools.partial(_gemm_affine_act_kernel, act=act,
                               has_res=has_res)
    out = pl.pallas_call(
        kernel,
        out_shape=jax.ShapeDtypeStruct((Mp, Np), jnp.float32),
        grid_spec=pltpu.PrefetchScalarGridSpec(
            num_scalar_prefetch=0,
            grid=(Mp // tm, Np // tn, Kp // tk),   # K (reduction) axis last
            in_specs=in_specs,
            out_specs=pl.BlockSpec((tm, tn), lambda i, j, k: (i, j)),
            scratch_shapes=[pltpu.VMEM((tm, tn), jnp.float32)]),
        compiler_params=pltpu.CompilerParams(
            dimension_semantics=("parallel", "parallel", "arbitrary"),
            vmem_limit_bytes=48 * 1024 * 1024),
        cost_estimate=pl.CostEstimate(
            flops=2 * Mp * Np * Kp,
            transcendentals=Mp * Np if act == "sigmoid" else 0,
            bytes_accessed=bytes_accessed),
    )(*inputs)
    return out[:M, :N]


# ----------------------------------------------------------------------------
# Conv (+BN)(+act)(+residual) = im2col (glue, bf16) + Pallas GEMM kernel
# ----------------------------------------------------------------------------
def conv2d_act(x, p, act, residual=None):
    # x: (N, H, W, Cin);  p["w"]: (kh, kw, Cin, Cout)
    # TODO(synk): fold the kh*kw tap offsets into the BlockSpec index_map
    #             (direct-conv) to avoid materializing the kh*kw-expanded
    #             im2col matrix in HBM.
    n, h, w, cin = x.shape
    kh, kw, _, cout = p["w"].shape
    d, pad = p["dil"], p["pad"]
    xb = x.astype(jnp.bfloat16)                 # halve im2col HBM traffic
    xp = jnp.pad(xb, ((0, 0), (pad, pad), (pad, pad), (0, 0)))
    cols = []
    for i in range(kh):
        for j in range(kw):
            cols.append(xp[:, i * d:i * d + h, j * d:j * d + w, :])
    a = jnp.concatenate(cols, axis=-1).reshape(n * h * w, kh * kw * cin)
    wmat = p["w"].reshape(kh * kw * cin, cout)
    res = None if residual is None else residual.reshape(n * h * w, cout)
    y = pallas_gemm_affine_act(a, wmat, p["scale"], p["bias"], act, res)
    return y.reshape(n, h, w, cout)


# ----------------------------------------------------------------------------
# Glue ops: max_pool2d(kernel=2, stride=2, ceil_mode=True) and bilinear resize
# (align_corners=False), NHWC.
# ----------------------------------------------------------------------------
def maxpool2x2_ceil(x):
    n, h, w, c = x.shape
    ho, wo = -(-h // 2), -(-w // 2)
    x = jnp.pad(x, ((0, 0), (0, 2 * ho - h), (0, 2 * wo - w), (0, 0)),
                constant_values=-jnp.inf)
    return x.reshape(n, ho, 2, wo, 2, c).max(axis=(2, 4))


def _resize_indices(in_size, out_size):
    scale = in_size / out_size
    src = (jnp.arange(out_size, dtype=jnp.float32) + 0.5) * scale - 0.5
    src = jnp.maximum(src, 0.0)
    i0 = jnp.minimum(jnp.floor(src).astype(jnp.int32), in_size - 1)
    i1 = jnp.minimum(i0 + 1, in_size - 1)
    frac = jnp.clip(src - i0.astype(jnp.float32), 0.0, 1.0)
    return i0, i1, frac


def bilinear_resize(x, oh, ow):
    n, h, w, c = x.shape
    if (oh, ow) == (h, w):
        return x
    y0, y1, fy = _resize_indices(h, oh)
    x0, x1, fx = _resize_indices(w, ow)
    top, bot = x[:, y0], x[:, y1]
    rows = top * (1.0 - fy)[None, :, None, None] + bot * fy[None, :, None, None]
    left, right = rows[:, :, x0], rows[:, :, x1]
    return left * (1.0 - fx)[None, None, :, None] + right * fx[None, None, :, None]


# ----------------------------------------------------------------------------
# Parameter init (deterministic, in-script; BN folded to scale/bias)
# ----------------------------------------------------------------------------
def _init_conv_w(key, kh, kw, cin, cout):
    fan_in = kh * kw * cin
    return jax.random.normal(key, (kh, kw, cin, cout), jnp.float32) / math.sqrt(fan_in)


def init_conv_bn(key, cin, cout, k=3, dilation=1):
    kw_, kg, kb, km, kv = jax.random.split(key, 5)
    w = _init_conv_w(kw_, k, k, cin, cout)
    gamma = 1.0 + 0.1 * jax.random.normal(kg, (cout,), jnp.float32)
    beta = 0.1 * jax.random.normal(kb, (cout,), jnp.float32)
    mean = 0.1 * jax.random.normal(km, (cout,), jnp.float32)
    var = 1.0 + 0.1 * jax.random.uniform(kv, (cout,), jnp.float32)
    scale = gamma / jnp.sqrt(var + BN_EPS)
    bias = beta - mean * scale
    pad = k // 2 if dilation == 1 else dilation
    return {"w": w, "scale": scale, "bias": bias, "dil": dilation, "pad": pad}
    # TODO(synk): optional fp8 weight storage (per-channel scales folded into
    #             `scale`) for the v7x MXU fp8 path.


def init_plain_conv(key, cin, cout, k, pad):
    kw_, kb = jax.random.split(key, 2)
    return {"w": _init_conv_w(kw_, k, k, cin, cout),
            "scale": jnp.ones((cout,), jnp.float32),
            "bias": 0.1 * jax.random.normal(kb, (cout,), jnp.float32),
            "dil": 1, "pad": pad}


def init_rsu(key, height, in_ch, mid_ch, out_ch):
    assert height >= 2
    it = iter(jax.random.split(key, 2 * height))
    conv_in = init_conv_bn(next(it), in_ch, out_ch)
    encode = [dict(init_conv_bn(next(it), out_ch, mid_ch), down=False)]
    decode = [dict(init_conv_bn(next(it), mid_ch * 2, mid_ch), up=False)]
    for i in range(height - 2):
        encode.append(dict(init_conv_bn(next(it), mid_ch, mid_ch), down=True))
        decode.append(dict(init_conv_bn(
            next(it), mid_ch * 2, mid_ch if i < height - 3 else out_ch), up=True))
    encode.append(dict(init_conv_bn(next(it), mid_ch, mid_ch, dilation=2), down=False))
    return {"type": "rsu", "conv_in": conv_in, "encode": encode, "decode": decode}


def init_rsu4f(key, in_ch, mid_ch, out_ch):
    k = jax.random.split(key, 8)
    conv_in = init_conv_bn(k[0], in_ch, out_ch)
    encode = [init_conv_bn(k[1], out_ch, mid_ch),
              init_conv_bn(k[2], mid_ch, mid_ch, dilation=2),
              init_conv_bn(k[3], mid_ch, mid_ch, dilation=4),
              init_conv_bn(k[4], mid_ch, mid_ch, dilation=8)]
    decode = [init_conv_bn(k[5], mid_ch * 2, mid_ch, dilation=4),
              init_conv_bn(k[6], mid_ch * 2, mid_ch, dilation=2),
              init_conv_bn(k[7], mid_ch * 2, out_ch)]
    return {"type": "rsu4f", "conv_in": conv_in, "encode": encode, "decode": decode}


def init_u2net(key, cfg, out_ch=1):
    keys = iter(jax.random.split(key, 64))
    encode, side = [], []
    for c in cfg["encode"]:
        assert len(c) == 6
        encode.append(init_rsu(next(keys), *c[:4]) if c[4] is False
                      else init_rsu4f(next(keys), *c[1:4]))
        if c[5] is True:
            side.append(init_plain_conv(next(keys), c[3], out_ch, 3, 1))
    decode = []
    for c in cfg["decode"]:
        assert len(c) == 6
        decode.append(init_rsu(next(keys), *c[:4]) if c[4] is False
                      else init_rsu4f(next(keys), *c[1:4]))
        if c[5] is True:
            side.append(init_plain_conv(next(keys), c[3], out_ch, 3, 1))
    out_conv = init_plain_conv(next(keys), len(cfg["encode"]) * out_ch, out_ch, 1, 0)
    return {"encode": encode, "decode": decode, "side": side, "out_conv": out_conv}


# ----------------------------------------------------------------------------
# Forward passes
# ----------------------------------------------------------------------------
def rsu_forward(p, x):
    x_in = conv2d_act(x, p["conv_in"], "relu")
    x = x_in
    enc = []
    for m in p["encode"]:
        if m["down"]:
            x = maxpool2x2_ceil(x)
        x = conv2d_act(x, m, "relu")
        enc.append(x)
    x = enc.pop()
    n_dec = len(p["decode"])
    for idx, m in enumerate(p["decode"]):
        x2 = enc.pop()
        if m["up"]:
            x = bilinear_resize(x, x2.shape[1], x2.shape[2])
        res = x_in if idx == n_dec - 1 else None   # fuse `x + x_in` into epilogue
        # TODO(synk): split the K range at the concat boundary (two accumulating
        #             K sources) so the channel concat is never materialized.
        x = conv2d_act(jnp.concatenate([x, x2], axis=-1), m, "relu", residual=res)
    return x


def rsu4f_forward(p, x):
    x_in = conv2d_act(x, p["conv_in"], "relu")
    x = x_in
    enc = []
    for m in p["encode"]:
        x = conv2d_act(x, m, "relu")
        enc.append(x)
    x = enc.pop()
    n_dec = len(p["decode"])
    for idx, m in enumerate(p["decode"]):
        x2 = enc.pop()
        res = x_in if idx == n_dec - 1 else None
        x = conv2d_act(jnp.concatenate([x, x2], axis=-1), m, "relu", residual=res)
    return x


def _block_forward(p, x):
    return rsu_forward(p, x) if p["type"] == "rsu" else rsu4f_forward(p, x)


def u2net_forward(params, x):
    # x: NHWC.  Eval-mode forward: returns sigmoid(out_conv(concat(sides))).
    # TODO(synk): training-mode path (list of logits + batch-stat BN) not emitted.
    h, w = x.shape[1], x.shape[2]
    enc_num = len(params["encode"])
    enc_outs = []
    for i, m in enumerate(params["encode"]):
        x = _block_forward(m, x)
        enc_outs.append(x)
        if i != enc_num - 1:
            x = maxpool2x2_ceil(x)
    x = enc_outs.pop()
    dec_outs = [x]
    for m in params["decode"]:
        x2 = enc_outs.pop()
        x = bilinear_resize(x, x2.shape[1], x2.shape[2])
        x = _block_forward(m, jnp.concatenate([x, x2], axis=-1))
        dec_outs.insert(0, x)
    sides = []
    for m in params["side"]:
        xd = dec_outs.pop()
        s = conv2d_act(xd, m, "none")
        s = bilinear_resize(s, h, w)
        sides.insert(0, s)
    return conv2d_act(jnp.concatenate(sides, axis=-1), params["out_conv"], "sigmoid")


# ----------------------------------------------------------------------------
if __name__ == "__main__":
    # small U2Net config: [height, in_ch, mid_ch, out_ch, is_RSU4F, has_side]
    cfg = {
        "encode": [[4, 4, 4, 8, False, False],
                   [3, 8, 4, 8, False, False],
                   [0, 8, 4, 8, True, True]],
        "decode": [[0, 16, 4, 8, True, True],
                   [3, 16, 4, 8, False, True]],
    }
    key = jax.random.PRNGKey(0)
    kp, kx = jax.random.split(key)
    params = init_u2net(kp, cfg, out_ch=1)

    x_nchw = jax.random.normal(kx, (2, 4, 16, 16), jnp.float32)  # PyTorch NCHW input
    x_nhwc = jnp.transpose(x_nchw, (0, 2, 3, 1))

    fwd = jax.jit(lambda inp: u2net_forward(params, inp))
    out_nhwc = jax.block_until_ready(fwd(x_nhwc))
    out_nchw = jnp.transpose(out_nhwc, (0, 3, 1, 2))   # back to PyTorch layout

    assert out_nchw.shape == (2, 1, 16, 16)
    assert bool(jnp.all(jnp.isfinite(out_nchw)))
    assert bool(jnp.all((out_nchw >= 0.0) & (out_nchw <= 1.0)))  # sigmoid output
    print("KERNEL_OK")
</pallas_src>

<mosaic_0001>
module attributes {stable_mosaic.version = 11 : i64} {
  func.func @_gemm_affine_act_kernel(%arg0: i32, %arg1: i32, %arg2: i32, %arg3: memref<256x128xbf16, #tpu.memory_space<vmem>>, %arg4: memref<128x128xbf16, #tpu.memory_space<vmem>>, %arg5: memref<1x128xf32, #tpu.memory_space<vmem>>, %arg6: memref<1x128xf32, #tpu.memory_space<vmem>>, %arg7: memref<256x128xf32, #tpu.memory_space<vmem>>, %arg8: memref<256x128xf32, #tpu.memory_space<vmem>>) attributes {dimension_semantics = [#tpu.dimension_semantics<parallel>, #tpu.dimension_semantics<parallel>, #tpu.dimension_semantics<arbitrary>], iteration_bounds = array<i64: 2, 1, 1>, scalar_prefetch = 0 : i64, scratch_operands = 1 : i64, tpu.core_type = #tpu.core_type<tc>, window_params = [{transform_indices = @transform_0, window_bounds = array<i64: 256, 128>}, {transform_indices = @transform_1, window_bounds = array<i64: 128, 128>}, {transform_indices = @transform_2, window_bounds = array<i64: 1, 128>}, {transform_indices = @transform_3, window_bounds = array<i64: 1, 128>}, {transform_indices = @transform_4, window_bounds = array<i64: 256, 128>}]} {
    %c0_i32 = arith.constant 0 : i32
    %0 = arith.cmpi eq, %arg2, %c0_i32 : i32
    %1 = arith.extui %0 : i1 to i32
    %c0_i32_0 = arith.constant 0 : i32
    %2 = arith.cmpi ne, %1, %c0_i32_0 : i32
    scf.if %2 {
      %cst_10 = arith.constant 0.000000e+00 : f32
      %12 = vector.broadcast %cst_10 : f32 to vector<256x128xf32>
      %c0_11 = arith.constant 0 : index
      %c0_12 = arith.constant 0 : index
      %13 = vector.load %arg8[%c0_11, %c0_12] : memref<256x128xf32, #tpu.memory_space<vmem>>, vector<256x128xf32>
      tpu.vector_store %arg8[%c0_11, %c0_12], %12 {strides = array<i32>} : memref<256x128xf32, #tpu.memory_space<vmem>>, vector<256x128xf32>,
    } else {
    }
    %c0 = arith.constant 0 : index
    %c0_1 = arith.constant 0 : index
    %3 = vector.load %arg8[%c0, %c0_1] : memref<256x128xf32, #tpu.memory_space<vmem>>, vector<256x128xf32>
    %c0_2 = arith.constant 0 : index
    %c0_3 = arith.constant 0 : index
    %4 = vector.load %arg3[%c0_2, %c0_3] : memref<256x128xbf16, #tpu.memory_space<vmem>>, vector<256x128xbf16>
    %c0_4 = arith.constant 0 : index
    %c0_5 = arith.constant 0 : index
    %5 = vector.load %arg4[%c0_4, %c0_5] : memref<128x128xbf16, #tpu.memory_space<vmem>>, vector<128x128xbf16>
    %cst = arith.constant dense<0.000000e+00> : vector<256x128xf32>
    %6 = tpu.matmul %4, %5, %cst {dimension_numbers = #tpu.dot_dimension_numbers<[1], [0], [0], [1], [0, 0, 1, 1], [], []>} : vector<256x128xbf16>, vector<128x128xbf16>, vector<256x128xf32> -> vector<256x128xf32>
    %7 = arith.addf %3, %6 : vector<256x128xf32>
    %c0_6 = arith.constant 0 : index
    %c0_7 = arith.constant 0 : index
    %8 = vector.load %arg8[%c0_6, %c0_7] : memref<256x128xf32, #tpu.memory_space<vmem>>, vector<256x128xf32>
    tpu.vector_store %arg8[%c0_6, %c0_7], %7 {strides = array<i32>} : memref<256x128xf32, #tpu.memory_space<vmem>>, vector<256x128xf32>,
    %c0_i32_8 = arith.constant 0 : i32
    %9 = arith.cmpi eq, %arg2, %c0_i32_8 : i32
    %10 = arith.extui %9 : i1 to i32
    %c0_i32_9 = arith.constant 0 : i32
    %11 = arith.cmpi ne, %10, %c0_i32_9 : i32
    scf.if %11 {
      %c0_10 = arith.constant 0 : index
      %c0_11 = arith.constant 0 : index
      %12 = vector.load %arg8[%c0_10, %c0_11] : memref<256x128xf32, #tpu.memory_space<vmem>>, vector<256x128xf32>
      %c0_12 = arith.constant 0 : index
      %c0_13 = arith.constant 0 : index
      %13 = vector.load %arg5[%c0_12, %c0_13] : memref<1x128xf32, #tpu.memory_space<vmem>>, vector<1x128xf32>
      %14 = vector.broadcast %13 : vector<1x128xf32> to vector<256x128xf32>
      %15 = arith.mulf %12, %14 : vector<256x128xf32>
      %c0_14 = arith.constant 0 : index
      %c0_15 = arith.constant 0 : index
      %16 = vector.load %arg6[%c0_14, %c0_15] : memref<1x128xf32, #tpu.memory_space<vmem>>, vector<1x128xf32>
      %17 = vector.broadcast %16 : vector<1x128xf32> to vector<256x128xf32>
      %18 = arith.addf %15, %17 : vector<256x128xf32>
      %cst_16 = arith.constant 0.000000e+00 : f32
      %19 = vector.broadcast %cst_16 : f32 to vector<256x128xf32>
      %20 = arith.maximumf %18, %19 : vector<256x128xf32>
      %c0_17 = arith.constant 0 : index
      %c0_18 = arith.constant 0 : index
      %21 = vector.load %arg7[%c0_17, %c0_18] : memref<256x128xf32, #tpu.memory_space<vmem>>, vector<256x128xf32>
      tpu.vector_store %arg7[%c0_17, %c0_18], %20 {strides = array<i32>} : memref<256x128xf32, #tpu.memory_space<vmem>>, vector<256x128xf32>,
    } else {
    }
    return
  }
  func.func @transform_0(%arg0: i32, %arg1: i32, %arg2: i32) -> (i32, i32) {
    %c0_i32 = arith.constant 0 : i32
    return %arg0, %arg2 : i32, i32
  }
  func.func @transform_1(%arg0: i32, %arg1: i32, %arg2: i32) -> (i32, i32) {
    %c0_i32 = arith.constant 0 : i32
    return %arg2, %arg1 : i32, i32
  }
  func.func @transform_2(%arg0: i32, %arg1: i32, %arg2: i32) -> (i32, i32) {
    %c0_i32 = arith.constant 0 : i32
    %c0_i32_0 = arith.constant 0 : i32
    return %c0_i32, %arg1 : i32, i32
  }
  func.func @transform_3(%arg0: i32, %arg1: i32, %arg2: i32) -> (i32, i32) {
    %c0_i32 = arith.constant 0 : i32
    %c0_i32_0 = arith.constant 0 : i32
    return %c0_i32, %arg1 : i32, i32
  }
  func.func @transform_4(%arg0: i32, %arg1: i32, %arg2: i32) -> (i32, i32) {
    %c0_i32 = arith.constant 0 : i32
    return %arg0, %arg1 : i32, i32
  }
}

module attributes {stable_mosaic.version = 11 : i64} {
  func.func @_gemm_affine_act_kernel(%arg0: i32, %arg1: i32, %arg2: i32, %arg3: memref<128x128xbf16, #tpu.memory_space<vmem>>, %arg4: memref<128x128xbf16, #tpu.memory_space<vmem>>, %arg5: memref<1x128xf32, #tpu.memory_space<vmem>>, %arg6: memref<1x128xf32, #tpu.memory_space<vmem>>, %arg7: memref<128x128xf32, #tpu.memory_space<vmem>>, %arg8: memref<128x128xf32, #tpu.memory_space<vmem>>) attributes {dimension_semantics = [#tpu.dimension_semantics<parallel>, #tpu.dimension_semantics<parallel>, #tpu.dimension_semantics<arbitrary>], iteration_bounds = array<i64: 1, 1, 1>, scalar_prefetch = 0 : i64, scratch_operands = 1 : i64, tpu.core_type = #tpu.core_type<tc>, window_params = [{transform_indices = @transform_0, window_bounds = array<i64: 128, 128>}, {transform_indices = @transform_1, window_bounds = array<i64: 128, 128>}, {transform_indices = @transform_2, window_bounds = array<i64: 1, 128>}, {transform_indices = @transform_3, window_bounds = array<i64: 1, 128>}, {transform_indices = @transform_4, window_bounds = array<i64: 128, 128>}]} {
    %c0_i32 = arith.constant 0 : i32
    %0 = arith.cmpi eq, %arg2, %c0_i32 : i32
    %1 = arith.extui %0 : i1 to i32
    %c0_i32_0 = arith.constant 0 : i32
    %2 = arith.cmpi ne, %1, %c0_i32_0 : i32
    scf.if %2 {
      %cst_10 = arith.constant 0.000000e+00 : f32
      %12 = vector.broadcast %cst_10 : f32 to vector<128x128xf32>
      %c0_11 = arith.constant 0 : index
      %c0_12 = arith.constant 0 : index
      %13 = vector.load %arg8[%c0_11, %c0_12] : memref<128x128xf32, #tpu.memory_space<vmem>>, vector<128x128xf32>
      tpu.vector_store %arg8[%c0_11, %c0_12], %12 {strides = array<i32>} : memref<128x128xf32, #tpu.memory_space<vmem>>, vector<128x128xf32>,
    } else {
    }
    %c0 = arith.constant 0 : index
    %c0_1 = arith.constant 0 : index
    %3 = vector.load %arg8[%c0, %c0_1] : memref<128x128xf32, #tpu.memory_space<vmem>>, vector<128x128xf32>
    %c0_2 = arith.constant 0 : index
    %c0_3 = arith.constant 0 : index
    %4 = vector.load %arg3[%c0_2, %c0_3] : memref<128x128xbf16, #tpu.memory_space<vmem>>, vector<128x128xbf16>
    %c0_4 = arith.constant 0 : index
    %c0_5 = arith.constant 0 : index
    %5 = vector.load %arg4[%c0_4, %c0_5] : memref<128x128xbf16, #tpu.memory_space<vmem>>, vector<128x128xbf16>
    %cst = arith.constant dense<0.000000e+00> : vector<128x128xf32>
    %6 = tpu.matmul %4, %5, %cst {dimension_numbers = #tpu.dot_dimension_numbers<[1], [0], [0], [1], [0, 0, 1, 1], [], []>} : vector<128x128xbf16>, vector<128x128xbf16>, vector<128x128xf32> -> vector<128x128xf32>
    %7 = arith.addf %3, %6 : vector<128x128xf32>
    %c0_6 = arith.constant 0 : index
    %c0_7 = arith.constant 0 : index
    %8 = vector.load %arg8[%c0_6, %c0_7] : memref<128x128xf32, #tpu.memory_space<vmem>>, vector<128x128xf32>
    tpu.vector_store %arg8[%c0_6, %c0_7], %7 {strides = array<i32>} : memref<128x128xf32, #tpu.memory_space<vmem>>, vector<128x128xf32>,
    %c0_i32_8 = arith.constant 0 : i32
    %9 = arith.cmpi eq, %arg2, %c0_i32_8 : i32
    %10 = arith.extui %9 : i1 to i32
    %c0_i32_9 = arith.constant 0 : i32
    %11 = arith.cmpi ne, %10, %c0_i32_9 : i32
    scf.if %11 {
      %c0_10 = arith.constant 0 : index
      %c0_11 = arith.constant 0 : index
      %12 = vector.load %arg8[%c0_10, %c0_11] : memref<128x128xf32, #tpu.memory_space<vmem>>, vector<128x128xf32>
      %c0_12 = arith.constant 0 : index
      %c0_13 = arith.constant 0 : index
      %13 = vector.load %arg5[%c0_12, %c0_13] : memref<1x128xf32, #tpu.memory_space<vmem>>, vector<1x128xf32>
      %14 = vector.broadcast %13 : vector<1x128xf32> to vector<128x128xf32>
      %15 = arith.mulf %12, %14 : vector<128x128xf32>
      %c0_14 = arith.constant 0 : index
      %c0_15 = arith.constant 0 : index
      %16 = vector.load %arg6[%c0_14, %c0_15] : memref<1x128xf32, #tpu.memory_space<vmem>>, vector<1x128xf32>
      %17 = vector.broadcast %16 : vector<1x128xf32> to vector<128x128xf32>
      %18 = arith.addf %15, %17 : vector<128x128xf32>
      %cst_16 = arith.constant 0.000000e+00 : f32
      %19 = vector.broadcast %cst_16 : f32 to vector<128x128xf32>
      %20 = arith.maximumf %18, %19 : vector<128x128xf32>
      %c0_17 = arith.constant 0 : index
      %c0_18 = arith.constant 0 : index
      %21 = vector.load %arg7[%c0_17, %c0_18] : memref<128x128xf32, #tpu.memory_space<vmem>>, vector<128x128xf32>
      tpu.vector_store %arg7[%c0_17, %c0_18], %20 {strides = array<i32>} : memref<128x128xf32, #tpu.memory_space<vmem>>, vector<128x128xf32>,
    } else {
    }
    return
  }
  func.func @transform_0(%arg0: i32, %arg1: i32, %arg2: i32) -> (i32, i32) {
    %c0_i32 = arith.constant 0 : i32
    return %arg0, %arg2 : i32, i32
  }
  func.func @transform_1(%arg0: i32, %arg1: i32, %arg2: i32) -> (i32, i32) {
    %c0_i32 = arith.constant 0 : i32
    return %arg2, %arg1 : i32, i32
  }
  func.func @transform_2(%arg0: i32, %arg1: i32, %arg2: i32) -> (i32, i32) {
    %c0_i32 = arith.constant 0 : i32
    %c0_i32_0 = arith.constant 0 : i32
    return %c0_i32, %arg1 : i32, i32
  }
  func.func @transform_3(%arg0: i32, %arg1: i32, %arg2: i32) -> (i32, i32) {
    %c0_i32 = arith.constant 0 : i32
    %c0_i32_0 = arith.constant 0 : i32
    return %c0_i32, %arg1 : i32, i32
  }
  func.func @transform_4(%arg0: i32, %arg1: i32, %arg2: i32) -> (i32, i32) {
    %c0_i32 = arith.constant 0 : i32
    return %arg0, %arg1 : i32, i32
  }
}

module attributes {stable_mosaic.version = 11 : i64} {
  func.func @_gemm_affine_act_kernel(%arg0: i32, %arg1: i32, %arg2: i32, %arg3: memref<32x128xbf16, #tpu.memory_space<vmem>>, %arg4: memref<128x128xbf16, #tpu.memory_space<vmem>>, %arg5: memref<1x128xf32, #tpu.memory_space<vmem>>, %arg6: memref<1x128xf32, #tpu.memory_space<vmem>>, %arg7: memref<32x128xf32, #tpu.memory_space<vmem>>, %arg8: memref<32x128xf32, #tpu.memory_space<vmem>>) attributes {dimension_semantics = [#tpu.dimension_semantics<parallel>, #tpu.dimension_semantics<parallel>, #tpu.dimension_semantics<arbitrary>], iteration_bounds = array<i64: 1, 1, 1>, scalar_prefetch = 0 : i64, scratch_operands = 1 : i64, tpu.core_type = #tpu.core_type<tc>, window_params = [{transform_indices = @transform_0, window_bounds = array<i64: 32, 128>}, {transform_indices = @transform_1, window_bounds = array<i64: 128, 128>}, {transform_indices = @transform_2, window_bounds = array<i64: 1, 128>}, {transform_indices = @transform_3, window_bounds = array<i64: 1, 128>}, {transform_indices = @transform_4, window_bounds = array<i64: 32, 128>}]} {
    %c0_i32 = arith.constant 0 : i32
    %0 = arith.cmpi eq, %arg2, %c0_i32 : i32
    %1 = arith.extui %0 : i1 to i32
    %c0_i32_0 = arith.constant 0 : i32
    %2 = arith.cmpi ne, %1, %c0_i32_0 : i32
    scf.if %2 {
      %cst_10 = arith.constant 0.000000e+00 : f32
      %12 = vector.broadcast %cst_10 : f32 to vector<32x128xf32>
      %c0_11 = arith.constant 0 : index
      %c0_12 = arith.constant 0 : index
      %13 = vector.load %arg8[%c0_11, %c0_12] : memref<32x128xf32, #tpu.memory_space<vmem>>, vector<32x128xf32>
      tpu.vector_store %arg8[%c0_11, %c0_12], %12 {strides = array<i32>} : memref<32x128xf32, #tpu.memory_space<vmem>>, vector<32x128xf32>,
    } else {
    }
    %c0 = arith.constant 0 : index
    %c0_1 = arith.constant 0 : index
    %3 = vector.load %arg8[%c0, %c0_1] : memref<32x128xf32, #tpu.memory_space<vmem>>, vector<32x128xf32>
    %c0_2 = arith.constant 0 : index
    %c0_3 = arith.constant 0 : index
    %4 = vector.load %arg3[%c0_2, %c0_3] : memref<32x128xbf16, #tpu.memory_space<vmem>>, vector<32x128xbf16>
    %c0_4 = arith.constant 0 : index
    %c0_5 = arith.constant 0 : index
    %5 = vector.load %arg4[%c0_4, %c0_5] : memref<128x128xbf16, #tpu.memory_space<vmem>>, vector<128x128xbf16>
    %cst = arith.constant dense<0.000000e+00> : vector<32x128xf32>
    %6 = tpu.matmul %4, %5, %cst {dimension_numbers = #tpu.dot_dimension_numbers<[1], [0], [0], [1], [0, 0, 1, 1], [], []>} : vector<32x128xbf16>, vector<128x128xbf16>, vector<32x128xf32> -> vector<32x128xf32>
    %7 = arith.addf %3, %6 : vector<32x128xf32>
    %c0_6 = arith.constant 0 : index
    %c0_7 = arith.constant 0 : index
    %8 = vector.load %arg8[%c0_6, %c0_7] : memref<32x128xf32, #tpu.memory_space<vmem>>, vector<32x128xf32>
    tpu.vector_store %arg8[%c0_6, %c0_7], %7 {strides = array<i32>} : memref<32x128xf32, #tpu.memory_space<vmem>>, vector<32x128xf32>,
    %c0_i32_8 = arith.constant 0 : i32
    %9 = arith.cmpi eq, %arg2, %c0_i32_8 : i32
    %10 = arith.extui %9 : i1 to i32
    %c0_i32_9 = arith.constant 0 : i32
    %11 = arith.cmpi ne, %10, %c0_i32_9 : i32
    scf.if %11 {
      %c0_10 = arith.constant 0 : index
      %c0_11 = arith.constant 0 : index
      %12 = vector.load %arg8[%c0_10, %c0_11] : memref<32x128xf32, #tpu.memory_space<vmem>>, vector<32x128xf32>
      %c0_12 = arith.constant 0 : index
      %c0_13 = arith.constant 0 : index
      %13 = vector.load %arg5[%c0_12, %c0_13] : memref<1x128xf32, #tpu.memory_space<vmem>>, vector<1x128xf32>
      %14 = vector.broadcast %13 : vector<1x128xf32> to vector<32x128xf32>
      %15 = arith.mulf %12, %14 : vector<32x128xf32>
      %c0_14 = arith.constant 0 : index
      %c0_15 = arith.constant 0 : index
      %16 = vector.load %arg6[%c0_14, %c0_15] : memref<1x128xf32, #tpu.memory_space<vmem>>, vector<1x128xf32>
      %17 = vector.broadcast %16 : vector<1x128xf32> to vector<32x128xf32>
      %18 = arith.addf %15, %17 : vector<32x128xf32>
      %cst_16 = arith.constant 0.000000e+00 : f32
      %19 = vector.broadcast %cst_16 : f32 to vector<32x128xf32>
      %20 = arith.maximumf %18, %19 : vector<32x128xf32>
      %c0_17 = arith.constant 0 : index
      %c0_18 = arith.constant 0 : index
      %21 = vector.load %arg7[%c0_17, %c0_18] : memref<32x128xf32, #tpu.memory_space<vmem>>, vector<32x128xf32>
      tpu.vector_store %arg7[%c0_17, %c0_18], %20 {strides = array<i32>} : memref<32x128xf32, #tpu.memory_space<vmem>>, vector<32x128xf32>,
    } else {
    }
    return
  }
  func.func @transform_0(%arg0: i32, %arg1: i32, %arg2: i32) -> (i32, i32) {
    %c0_i32 = arith.constant 0 : i32
    return %arg0, %arg2 : i32, i32
  }
  func.func @transform_1(%arg0: i32, %arg1: i32, %arg2: i32) -> (i32, i32) {
    %c0_i32 = arith.constant 0 : i32
    return %arg2, %arg1 : i32, i32
  }
  func.func @transform_2(%arg0: i32, %arg1: i32, %arg2: i32) -> (i32, i32) {
    %c0_i32 = arith.constant 0 : i32
    %c0_i32_0 = arith.constant 0 : i32
    return %c0_i32, %arg1 : i32, i32
  }
  func.func @transform_3(%arg0: i32, %arg1: i32, %arg2: i32) -> (i32, i32) {
    %c0_i32 = arith.constant 0 : i32
    %c0_i32_0 = arith.constant 0 : i32
    return %c0_i32, %arg1 : i32, i32
  }
  func.func @transform_4(%arg0: i32, %arg1: i32, %arg2: i32) -> (i32, i32) {
    %c0_i32 = arith.constant 0 : i32
    return %arg0, %arg1 : i32, i32
  }
}

module attributes {stable_mosaic.version = 11 : i64} {
  func.func @_gemm_affine_act_kernel(%arg0: i32, %arg1: i32, %arg2: i32, %arg3: memref<256x128xbf16, #tpu.memory_space<vmem>>, %arg4: memref<128x128xbf16, #tpu.memory_space<vmem>>, %arg5: memref<1x128xf32, #tpu.memory_space<vmem>>, %arg6: memref<1x128xf32, #tpu.memory_space<vmem>>, %arg7: memref<256x128xf32, #tpu.memory_space<vmem>>, %arg8: memref<256x128xf32, #tpu.memory_space<vmem>>, %arg9: memref<256x128xf32, #tpu.memory_space<vmem>>) attributes {dimension_semantics = [#tpu.dimension_semantics<parallel>, #tpu.dimension_semantics<parallel>, #tpu.dimension_semantics<arbitrary>], iteration_bounds = array<i64: 2, 1, 1>, scalar_prefetch = 0 : i64, scratch_operands = 1 : i64, tpu.core_type = #tpu.core_type<tc>, window_params = [{transform_indices = @transform_0, window_bounds = array<i64: 256, 128>}, {transform_indices = @transform_1, window_bounds = array<i64: 128, 128>}, {transform_indices = @transform_2, window_bounds = array<i64: 1, 128>}, {transform_indices = @transform_3, window_bounds = array<i64: 1, 128>}, {transform_indices = @transform_4, window_bounds = array<i64: 256, 128>}, {transform_indices = @transform_5, window_bounds = array<i64: 256, 128>}]} {
    %c0_i32 = arith.constant 0 : i32
    %0 = arith.cmpi eq, %arg2, %c0_i32 : i32
    %1 = arith.extui %0 : i1 to i32
    %c0_i32_0 = arith.constant 0 : i32
    %2 = arith.cmpi ne, %1, %c0_i32_0 : i32
    scf.if %2 {
      %cst_10 = arith.constant 0.000000e+00 : f32
      %12 = vector.broadcast %cst_10 : f32 to vector<256x128xf32>
      %c0_11 = arith.constant 0 : index
      %c0_12 = arith.constant 0 : index
      %13 = vector.load %arg9[%c0_11, %c0_12] : memref<256x128xf32, #tpu.memory_space<vmem>>, vector<256x128xf32>
      tpu.vector_store %arg9[%c0_11, %c0_12], %12 {strides = array<i32>} : memref<256x128xf32, #tpu.memory_space<vmem>>, vector<256x128xf32>,
    } else {
    }
    %c0 = arith.constant 0 : index
    %c0_1 = arith.constant 0 : index
    %3 = vector.load %arg9[%c0, %c0_1] : memref<256x128xf32, #tpu.memory_space<vmem>>, vector<256x128xf32>
    %c0_2 = arith.constant 0 : index
    %c0_3 = arith.constant 0 : index
    %4 = vector.load %arg3[%c0_2, %c0_3] : memref<256x128xbf16, #tpu.memory_space<vmem>>, vector<256x128xbf16>
    %c0_4 = arith.constant 0 : index
    %c0_5 = arith.constant 0 : index
    %5 = vector.load %arg4[%c0_4, %c0_5] : memref<128x128xbf16, #tpu.memory_space<vmem>>, vector<128x128xbf16>
    %cst = arith.constant dense<0.000000e+00> : vector<256x128xf32>
    %6 = tpu.matmul %4, %5, %cst {dimension_numbers = #tpu.dot_dimension_numbers<[1], [0], [0], [1], [0, 0, 1, 1], [], []>} : vector<256x128xbf16>, vector<128x128xbf16>, vector<256x128xf32> -> vector<256x128xf32>
    %7 = arith.addf %3, %6 : vector<256x128xf32>
    %c0_6 = arith.constant 0 : index
    %c0_7 = arith.constant 0 : index
    %8 = vector.load %arg9[%c0_6, %c0_7] : memref<256x128xf32, #tpu.memory_space<vmem>>, vector<256x128xf32>
    tpu.vector_store %arg9[%c0_6, %c0_7], %7 {strides = array<i32>} : memref<256x128xf32, #tpu.memory_space<vmem>>, vector<256x128xf32>,
    %c0_i32_8 = arith.constant 0 : i32
    %9 = arith.cmpi eq, %arg2, %c0_i32_8 : i32
    %10 = arith.extui %9 : i1 to i32
    %c0_i32_9 = arith.constant 0 : i32
    %11 = arith.cmpi ne, %10, %c0_i32_9 : i32
    scf.if %11 {
      %c0_10 = arith.constant 0 : index
      %c0_11 = arith.constant 0 : index
      %12 = vector.load %arg9[%c0_10, %c0_11] : memref<256x128xf32, #tpu.memory_space<vmem>>, vector<256x128xf32>
      %c0_12 = arith.constant 0 : index
      %c0_13 = arith.constant 0 : index
      %13 = vector.load %arg5[%c0_12, %c0_13] : memref<1x128xf32, #tpu.memory_space<vmem>>, vector<1x128xf32>
      %14 = vector.broadcast %13 : vector<1x128xf32> to vector<256x128xf32>
      %15 = arith.mulf %12, %14 : vector<256x128xf32>
      %c0_14 = arith.constant 0 : index
      %c0_15 = arith.constant 0 : index
      %16 = vector.load %arg6[%c0_14, %c0_15] : memref<1x128xf32, #tpu.memory_space<vmem>>, vector<1x128xf32>
      %17 = vector.broadcast %16 : vector<1x128xf32> to vector<256x128xf32>
      %18 = arith.addf %15, %17 : vector<256x128xf32>
      %cst_16 = arith.constant 0.000000e+00 : f32
      %19 = vector.broadcast %cst_16 : f32 to vector<256x128xf32>
      %20 = arith.maximumf %18, %19 : vector<256x128xf32>
      %c0_17 = arith.constant 0 : index
      %c0_18 = arith.constant 0 : index
      %21 = vector.load %arg7[%c0_17, %c0_18] : memref<256x128xf32, #tpu.memory_space<vmem>>, vector<256x128xf32>
      %22 = arith.addf %20, %21 : vector<256x128xf32>
      %c0_19 = arith.constant 0 : index
      %c0_20 = arith.constant 0 : index
      %23 = vector.load %arg8[%c0_19, %c0_20] : memref<256x128xf32, #tpu.memory_space<vmem>>, vector<256x128xf32>
      tpu.vector_store %arg8[%c0_19, %c0_20], %22 {strides = array<i32>} : memref<256x128xf32, #tpu.memory_space<vmem>>, vector<256x128xf32>,
    } else {
    }
    return
  }
  func.func @transform_0(%arg0: i32, %arg1: i32, %arg2: i32) -> (i32, i32) {
    %c0_i32 = arith.constant 0 : i32
    return %arg0, %arg2 : i32, i32
  }
  func.func @transform_1(%arg0: i32, %arg1: i32, %arg2: i32) -> (i32, i32) {
    %c0_i32 = arith.constant 0 : i32
    return %arg2, %arg1 : i32, i32
  }
  func.func @transform_2(%arg0: i32, %arg1: i32, %arg2: i32) -> (i32, i32) {
    %c0_i32 = arith.constant 0 : i32
    %c0_i32_0 = arith.constant 0 : i32
    return %c0_i32, %arg1 : i32, i32
  }
  func.func @transform_3(%arg0: i32, %arg1: i32, %arg2: i32) -> (i32, i32) {
    %c0_i32 = arith.constant 0 : i32
    %c0_i32_0 = arith.constant 0 : i32
    return %c0_i32, %arg1 : i32, i32
  }
  func.func @transform_4(%arg0: i32, %arg1: i32, %arg2: i32) -> (i32, i32) {
    %c0_i32 = arith.constant 0 : i32
    return %arg0, %arg1 : i32, i32
  }
  func.func @transform_5(%arg0: i32, %arg1: i32, %arg2: i32) -> (i32, i32) {
    %c0_i32 = arith.constant 0 : i32
    return %arg0, %arg1 : i32, i32
  }
}

module attributes {stable_mosaic.version = 11 : i64} {
  func.func @_gemm_affine_act_kernel(%arg0: i32, %arg1: i32, %arg2: i32, %arg3: memref<128x128xbf16, #tpu.memory_space<vmem>>, %arg4: memref<128x128xbf16, #tpu.memory_space<vmem>>, %arg5: memref<1x128xf32, #tpu.memory_space<vmem>>, %arg6: memref<1x128xf32, #tpu.memory_space<vmem>>, %arg7: memref<128x128xf32, #tpu.memory_space<vmem>>, %arg8: memref<128x128xf32, #tpu.memory_space<vmem>>, %arg9: memref<128x128xf32, #tpu.memory_space<vmem>>) attributes {dimension_semantics = [#tpu.dimension_semantics<parallel>, #tpu.dimension_semantics<parallel>, #tpu.dimension_semantics<arbitrary>], iteration_bounds = array<i64: 1, 1, 1>, scalar_prefetch = 0 : i64, scratch_operands = 1 : i64, tpu.core_type = #tpu.core_type<tc>, window_params = [{transform_indices = @transform_0, window_bounds = array<i64: 128, 128>}, {transform_indices = @transform_1, window_bounds = array<i64: 128, 128>}, {transform_indices = @transform_2, window_bounds = array<i64: 1, 128>}, {transform_indices = @transform_3, window_bounds = array<i64: 1, 128>}, {transform_indices = @transform_4, window_bounds = array<i64: 128, 128>}, {transform_indices = @transform_5, window_bounds = array<i64: 128, 128>}]} {
    %c0_i32 = arith.constant 0 : i32
    %0 = arith.cmpi eq, %arg2, %c0_i32 : i32
    %1 = arith.extui %0 : i1 to i32
    %c0_i32_0 = arith.constant 0 : i32
    %2 = arith.cmpi ne, %1, %c0_i32_0 : i32
    scf.if %2 {
      %cst_10 = arith.constant 0.000000e+00 : f32
      %12 = vector.broadcast %cst_10 : f32 to vector<128x128xf32>
      %c0_11 = arith.constant 0 : index
      %c0_12 = arith.constant 0 : index
      %13 = vector.load %arg9[%c0_11, %c0_12] : memref<128x128xf32, #tpu.memory_space<vmem>>, vector<128x128xf32>
      tpu.vector_store %arg9[%c0_11, %c0_12], %12 {strides = array<i32>} : memref<128x128xf32, #tpu.memory_space<vmem>>, vector<128x128xf32>,
    } else {
    }
    %c0 = arith.constant 0 : index
    %c0_1 = arith.constant 0 : index
    %3 = vector.load %arg9[%c0, %c0_1] : memref<128x128xf32, #tpu.memory_space<vmem>>, vector<128x128xf32>
    %c0_2 = arith.constant 0 : index
    %c0_3 = arith.constant 0 : index
    %4 = vector.load %arg3[%c0_2, %c0_3] : memref<128x128xbf16, #tpu.memory_space<vmem>>, vector<128x128xbf16>
    %c0_4 = arith.constant 0 : index
    %c0_5 = arith.constant 0 : index
    %5 = vector.load %arg4[%c0_4, %c0_5] : memref<128x128xbf16, #tpu.memory_space<vmem>>, vector<128x128xbf16>
    %cst = arith.constant dense<0.000000e+00> : vector<128x128xf32>
    %6 = tpu.matmul %4, %5, %cst {dimension_numbers = #tpu.dot_dimension_numbers<[1], [0], [0], [1], [0, 0, 1, 1], [], []>} : vector<128x128xbf16>, vector<128x128xbf16>, vector<128x128xf32> -> vector<128x128xf32>
    %7 = arith.addf %3, %6 : vector<128x128xf32>
    %c0_6 = arith.constant 0 : index
    %c0_7 = arith.constant 0 : index
    %8 = vector.load %arg9[%c0_6, %c0_7] : memref<128x128xf32, #tpu.memory_space<vmem>>, vector<128x128xf32>
    tpu.vector_store %arg9[%c0_6, %c0_7], %7 {strides = array<i32>} : memref<128x128xf32, #tpu.memory_space<vmem>>, vector<128x128xf32>,
    %c0_i32_8 = arith.constant 0 : i32
    %9 = arith.cmpi eq, %arg2, %c0_i32_8 : i32
    %10 = arith.extui %9 : i1 to i32
    %c0_i32_9 = arith.constant 0 : i32
    %11 = arith.cmpi ne, %10, %c0_i32_9 : i32
    scf.if %11 {
      %c0_10 = arith.constant 0 : index
      %c0_11 = arith.constant 0 : index
      %12 = vector.load %arg9[%c0_10, %c0_11] : memref<128x128xf32, #tpu.memory_space<vmem>>, vector<128x128xf32>
      %c0_12 = arith.constant 0 : index
      %c0_13 = arith.constant 0 : index
      %13 = vector.load %arg5[%c0_12, %c0_13] : memref<1x128xf32, #tpu.memory_space<vmem>>, vector<1x128xf32>
      %14 = vector.broadcast %13 : vector<1x128xf32> to vector<128x128xf32>
      %15 = arith.mulf %12, %14 : vector<128x128xf32>
      %c0_14 = arith.constant 0 : index
      %c0_15 = arith.constant 0 : index
      %16 = vector.load %arg6[%c0_14, %c0_15] : memref<1x128xf32, #tpu.memory_space<vmem>>, vector<1x128xf32>
      %17 = vector.broadcast %16 : vector<1x128xf32> to vector<128x128xf32>
      %18 = arith.addf %15, %17 : vector<128x128xf32>
      %cst_16 = arith.constant 0.000000e+00 : f32
      %19 = vector.broadcast %cst_16 : f32 to vector<128x128xf32>
      %20 = arith.maximumf %18, %19 : vector<128x128xf32>
      %c0_17 = arith.constant 0 : index
      %c0_18 = arith.constant 0 : index
      %21 = vector.load %arg7[%c0_17, %c0_18] : memref<128x128xf32, #tpu.memory_space<vmem>>, vector<128x128xf32>
      %22 = arith.addf %20, %21 : vector<128x128xf32>
      %c0_19 = arith.constant 0 : index
      %c0_20 = arith.constant 0 : index
      %23 = vector.load %arg8[%c0_19, %c0_20] : memref<128x128xf32, #tpu.memory_space<vmem>>, vector<128x128xf32>
      tpu.vector_store %arg8[%c0_19, %c0_20], %22 {strides = array<i32>} : memref<128x128xf32, #tpu.memory_space<vmem>>, vector<128x128xf32>,
    } else {
    }
    return
  }
  func.func @transform_0(%arg0: i32, %arg1: i32, %arg2: i32) -> (i32, i32) {
    %c0_i32 = arith.constant 0 : i32
    return %arg0, %arg2 : i32, i32
  }
  func.func @transform_1(%arg0: i32, %arg1: i32, %arg2: i32) -> (i32, i32) {
    %c0_i32 = arith.constant 0 : i32
    return %arg2, %arg1 : i32, i32
  }
  func.func @transform_2(%arg0: i32, %arg1: i32, %arg2: i32) -> (i32, i32) {
    %c0_i32 = arith.constant 0 : i32
    %c0_i32_0 = arith.constant 0 : i32
    return %c0_i32, %arg1 : i32, i32
  }
  func.func @transform_3(%arg0: i32, %arg1: i32, %arg2: i32) -> (i32, i32) {
    %c0_i32 = arith.constant 0 : i32
    %c0_i32_0 = arith.constant 0 : i32
    return %c0_i32, %arg1 : i32, i32
  }
  func.func @transform_4(%arg0: i32, %arg1: i32, %arg2: i32) -> (i32, i32) {
    %c0_i32 = arith.constant 0 : i32
    return %arg0, %arg1 : i32, i32
  }
  func.func @transform_5(%arg0: i32, %arg1: i32, %arg2: i32) -> (i32, i32) {
    %c0_i32 = arith.constant 0 : i32
    return %arg0, %arg1 : i32, i32
  }
}

module attributes {stable_mosaic.version = 11 : i64} {
  func.func @_gemm_affine_act_kernel(%arg0: i32, %arg1: i32, %arg2: i32, %arg3: memref<32x128xbf16, #tpu.memory_space<vmem>>, %arg4: memref<128x128xbf16, #tpu.memory_space<vmem>>, %arg5: memref<1x128xf32, #tpu.memory_space<vmem>>, %arg6: memref<1x128xf32, #tpu.memory_space<vmem>>, %arg7: memref<32x128xf32, #tpu.memory_space<vmem>>, %arg8: memref<32x128xf32, #tpu.memory_space<vmem>>, %arg9: memref<32x128xf32, #tpu.memory_space<vmem>>) attributes {dimension_semantics = [#tpu.dimension_semantics<parallel>, #tpu.dimension_semantics<parallel>, #tpu.dimension_semantics<arbitrary>], iteration_bounds = array<i64: 1, 1, 1>, scalar_prefetch = 0 : i64, scratch_operands = 1 : i64, tpu.core_type = #tpu.core_type<tc>, window_params = [{transform_indices = @transform_0, window_bounds = array<i64: 32, 128>}, {transform_indices = @transform_1, window_bounds = array<i64: 128, 128>}, {transform_indices = @transform_2, window_bounds = array<i64: 1, 128>}, {transform_indices = @transform_3, window_bounds = array<i64: 1, 128>}, {transform_indices = @transform_4, window_bounds = array<i64: 32, 128>}, {transform_indices = @transform_5, window_bounds = array<i64: 32, 128>}]} {
    %c0_i32 = arith.constant 0 : i32
    %0 = arith.cmpi eq, %arg2, %c0_i32 : i32
    %1 = arith.extui %0 : i1 to i32
    %c0_i32_0 = arith.constant 0 : i32
    %2 = arith.cmpi ne, %1, %c0_i32_0 : i32
    scf.if %2 {
      %cst_10 = arith.constant 0.000000e+00 : f32
      %12 = vector.broadcast %cst_10 : f32 to vector<32x128xf32>
      %c0_11 = arith.constant 0 : index
      %c0_12 = arith.constant 0 : index
      %13 = vector.load %arg9[%c0_11, %c0_12] : memref<32x128xf32, #tpu.memory_space<vmem>>, vector<32x128xf32>
      tpu.vector_store %arg9[%c0_11, %c0_12], %12 {strides = array<i32>} : memref<32x128xf32, #tpu.memory_space<vmem>>, vector<32x128xf32>,
    } else {
    }
    %c0 = arith.constant 0 : index
    %c0_1 = arith.constant 0 : index
    %3 = vector.load %arg9[%c0, %c0_1] : memref<32x128xf32, #tpu.memory_space<vmem>>, vector<32x128xf32>
    %c0_2 = arith.constant 0 : index
    %c0_3 = arith.constant 0 : index
    %4 = vector.load %arg3[%c0_2, %c0_3] : memref<32x128xbf16, #tpu.memory_space<vmem>>, vector<32x128xbf16>
    %c0_4 = arith.constant 0 : index
    %c0_5 = arith.constant 0 : index
    %5 = vector.load %arg4[%c0_4, %c0_5] : memref<128x128xbf16, #tpu.memory_space<vmem>>, vector<128x128xbf16>
    %cst = arith.constant dense<0.000000e+00> : vector<32x128xf32>
    %6 = tpu.matmul %4, %5, %cst {dimension_numbers = #tpu.dot_dimension_numbers<[1], [0], [0], [1], [0, 0, 1, 1], [], []>} : vector<32x128xbf16>, vector<128x128xbf16>, vector<32x128xf32> -> vector<32x128xf32>
    %7 = arith.addf %3, %6 : vector<32x128xf32>
    %c0_6 = arith.constant 0 : index
    %c0_7 = arith.constant 0 : index
    %8 = vector.load %arg9[%c0_6, %c0_7] : memref<32x128xf32, #tpu.memory_space<vmem>>, vector<32x128xf32>
    tpu.vector_store %arg9[%c0_6, %c0_7], %7 {strides = array<i32>} : memref<32x128xf32, #tpu.memory_space<vmem>>, vector<32x128xf32>,
    %c0_i32_8 = arith.constant 0 : i32
    %9 = arith.cmpi eq, %arg2, %c0_i32_8 : i32
    %10 = arith.extui %9 : i1 to i32
    %c0_i32_9 = arith.constant 0 : i32
    %11 = arith.cmpi ne, %10, %c0_i32_9 : i32
    scf.if %11 {
      %c0_10 = arith.constant 0 : index
      %c0_11 = arith.constant 0 : index
      %12 = vector.load %arg9[%c0_10, %c0_11] : memref<32x128xf32, #tpu.memory_space<vmem>>, vector<32x128xf32>
      %c0_12 = arith.constant 0 : index
      %c0_13 = arith.constant 0 : index
      %13 = vector.load %arg5[%c0_12, %c0_13] : memref<1x128xf32, #tpu.memory_space<vmem>>, vector<1x128xf32>
      %14 = vector.broadcast %13 : vector<1x128xf32> to vector<32x128xf32>
      %15 = arith.mulf %12, %14 : vector<32x128xf32>
      %c0_14 = arith.constant 0 : index
      %c0_15 = arith.constant 0 : index
      %16 = vector.load %arg6[%c0_14, %c0_15] : memref<1x128xf32, #tpu.memory_space<vmem>>, vector<1x128xf32>
      %17 = vector.broadcast %16 : vector<1x128xf32> to vector<32x128xf32>
      %18 = arith.addf %15, %17 : vector<32x128xf32>
      %cst_16 = arith.constant 0.000000e+00 : f32
      %19 = vector.broadcast %cst_16 : f32 to vector<32x128xf32>
      %20 = arith.maximumf %18, %19 : vector<32x128xf32>
      %c0_17 = arith.constant 0 : index
      %c0_18 = arith.constant 0 : index
      %21 = vector.load %arg7[%c0_17, %c0_18] : memref<32x128xf32, #tpu.memory_space<vmem>>, vector<32x128xf32>
      %22 = arith.addf %20, %21 : vector<32x128xf32>
      %c0_19 = arith.constant 0 : index
      %c0_20 = arith.constant 0 : index
      %23 = vector.load %arg8[%c0_19, %c0_20] : memref<32x128xf32, #tpu.memory_space<vmem>>, vector<32x128xf32>
      tpu.vector_store %arg8[%c0_19, %c0_20], %22 {strides = array<i32>} : memref<32x128xf32, #tpu.memory_space<vmem>>, vector<32x128xf32>,
    } else {
    }
    return
  }
  func.func @transform_0(%arg0: i32, %arg1: i32, %arg2: i32) -> (i32, i32) {
    %c0_i32 = arith.constant 0 : i32
    return %arg0, %arg2 : i32, i32
  }
  func.func @transform_1(%arg0: i32, %arg1: i32, %arg2: i32) -> (i32, i32) {
    %c0_i32 = arith.constant 0 : i32
    return %arg2, %arg1 : i32, i32
  }
  func.func @transform_2(%arg0: i32, %arg1: i32, %arg2: i32) -> (i32, i32) {
    %c0_i32 = arith.constant 0 : i32
    %c0_i32_0 = arith.constant 0 : i32
    return %c0_i32, %arg1 : i32, i32
  }
  func.func @transform_3(%arg0: i32, %arg1: i32, %arg2: i32) -> (i32, i32) {
    %c0_i32 = arith.constant 0 : i32
    %c0_i32_0 = arith.constant 0 : i32
    return %c0_i32, %arg1 : i32, i32
  }
  func.func @transform_4(%arg0: i32, %arg1: i32, %arg2: i32) -> (i32, i32) {
    %c0_i32 = arith.constant 0 : i32
    return %arg0, %arg1 : i32, i32
  }
  func.func @transform_5(%arg0: i32, %arg1: i32, %arg2: i32) -> (i32, i32) {
    %c0_i32 = arith.constant 0 : i32
    return %arg0, %arg1 : i32, i32
  }
}

module attributes {stable_mosaic.version = 11 : i64} {
  func.func @_gemm_affine_act_kernel(%arg0: i32, %arg1: i32, %arg2: i32, %arg3: memref<128x256xbf16, #tpu.memory_space<vmem>>, %arg4: memref<256x128xbf16, #tpu.memory_space<vmem>>, %arg5: memref<1x128xf32, #tpu.memory_space<vmem>>, %arg6: memref<1x128xf32, #tpu.memory_space<vmem>>, %arg7: memref<128x128xf32, #tpu.memory_space<vmem>>, %arg8: memref<128x128xf32, #tpu.memory_space<vmem>>) attributes {dimension_semantics = [#tpu.dimension_semantics<parallel>, #tpu.dimension_semantics<parallel>, #tpu.dimension_semantics<arbitrary>], iteration_bounds = array<i64: 1, 1, 1>, scalar_prefetch = 0 : i64, scratch_operands = 1 : i64, tpu.core_type = #tpu.core_type<tc>, window_params = [{transform_indices = @transform_0, window_bounds = array<i64: 128, 256>}, {transform_indices = @transform_1, window_bounds = array<i64: 256, 128>}, {transform_indices = @transform_2, window_bounds = array<i64: 1, 128>}, {transform_indices = @transform_3, window_bounds = array<i64: 1, 128>}, {transform_indices = @transform_4, window_bounds = array<i64: 128, 128>}]} {
    %c0_i32 = arith.constant 0 : i32
    %0 = arith.cmpi eq, %arg2, %c0_i32 : i32
    %1 = arith.extui %0 : i1 to i32
    %c0_i32_0 = arith.constant 0 : i32
    %2 = arith.cmpi ne, %1, %c0_i32_0 : i32
    scf.if %2 {
      %cst_10 = arith.constant 0.000000e+00 : f32
      %12 = vector.broadcast %cst_10 : f32 to vector<128x128xf32>
      %c0_11 = arith.constant 0 : index
      %c0_12 = arith.constant 0 : index
      %13 = vector.load %arg8[%c0_11, %c0_12] : memref<128x128xf32, #tpu.memory_space<vmem>>, vector<128x128xf32>
      tpu.vector_store %arg8[%c0_11, %c0_12], %12 {strides = array<i32>} : memref<128x128xf32, #tpu.memory_space<vmem>>, vector<128x128xf32>,
    } else {
    }
    %c0 = arith.constant 0 : index
    %c0_1 = arith.constant 0 : index
    %3 = vector.load %arg8[%c0, %c0_1] : memref<128x128xf32, #tpu.memory_space<vmem>>, vector<128x128xf32>
    %c0_2 = arith.constant 0 : index
    %c0_3 = arith.constant 0 : index
    %4 = vector.load %arg3[%c0_2, %c0_3] : memref<128x256xbf16, #tpu.memory_space<vmem>>, vector<128x256xbf16>
    %c0_4 = arith.constant 0 : index
    %c0_5 = arith.constant 0 : index
    %5 = vector.load %arg4[%c0_4, %c0_5] : memref<256x128xbf16, #tpu.memory_space<vmem>>, vector<256x128xbf16>
    %cst = arith.constant dense<0.000000e+00> : vector<128x128xf32>
    %6 = tpu.matmul %4, %5, %cst {dimension_numbers = #tpu.dot_dimension_numbers<[1], [0], [0], [1], [0, 0, 1, 1], [], []>} : vector<128x256xbf16>, vector<256x128xbf16>, vector<128x128xf32> -> vector<128x128xf32>
    %7 = arith.addf %3, %6 : vector<128x128xf32>
    %c0_6 = arith.constant 0 : index
    %c0_7 = arith.constant 0 : index
    %8 = vector.load %arg8[%c0_6, %c0_7] : memref<128x128xf32, #tpu.memory_space<vmem>>, vector<128x128xf32>
    tpu.vector_store %arg8[%c0_6, %c0_7], %7 {strides = array<i32>} : memref<128x128xf32, #tpu.memory_space<vmem>>, vector<128x128xf32>,
    %c0_i32_8 = arith.constant 0 : i32
    %9 = arith.cmpi eq, %arg2, %c0_i32_8 : i32
    %10 = arith.extui %9 : i1 to i32
    %c0_i32_9 = arith.constant 0 : i32
    %11 = arith.cmpi ne, %10, %c0_i32_9 : i32
    scf.if %11 {
      %c0_10 = arith.constant 0 : index
      %c0_11 = arith.constant 0 : index
      %12 = vector.load %arg8[%c0_10, %c0_11] : memref<128x128xf32, #tpu.memory_space<vmem>>, vector<128x128xf32>
      %c0_12 = arith.constant 0 : index
      %c0_13 = arith.constant 0 : index
      %13 = vector.load %arg5[%c0_12, %c0_13] : memref<1x128xf32, #tpu.memory_space<vmem>>, vector<1x128xf32>
      %14 = vector.broadcast %13 : vector<1x128xf32> to vector<128x128xf32>
      %15 = arith.mulf %12, %14 : vector<128x128xf32>
      %c0_14 = arith.constant 0 : index
      %c0_15 = arith.constant 0 : index
      %16 = vector.load %arg6[%c0_14, %c0_15] : memref<1x128xf32, #tpu.memory_space<vmem>>, vector<1x128xf32>
      %17 = vector.broadcast %16 : vector<1x128xf32> to vector<128x128xf32>
      %18 = arith.addf %15, %17 : vector<128x128xf32>
      %cst_16 = arith.constant 0.000000e+00 : f32
      %19 = vector.broadcast %cst_16 : f32 to vector<128x128xf32>
      %20 = arith.maximumf %18, %19 : vector<128x128xf32>
      %c0_17 = arith.constant 0 : index
      %c0_18 = arith.constant 0 : index
      %21 = vector.load %arg7[%c0_17, %c0_18] : memref<128x128xf32, #tpu.memory_space<vmem>>, vector<128x128xf32>
      tpu.vector_store %arg7[%c0_17, %c0_18], %20 {strides = array<i32>} : memref<128x128xf32, #tpu.memory_space<vmem>>, vector<128x128xf32>,
    } else {
    }
    return
  }
  func.func @transform_0(%arg0: i32, %arg1: i32, %arg2: i32) -> (i32, i32) {
    %c0_i32 = arith.constant 0 : i32
    return %arg0, %arg2 : i32, i32
  }
  func.func @transform_1(%arg0: i32, %arg1: i32, %arg2: i32) -> (i32, i32) {
    %c0_i32 = arith.constant 0 : i32
    return %arg2, %arg1 : i32, i32
  }
  func.func @transform_2(%arg0: i32, %arg1: i32, %arg2: i32) -> (i32, i32) {
    %c0_i32 = arith.constant 0 : i32
    %c0_i32_0 = arith.constant 0 : i32
    return %c0_i32, %arg1 : i32, i32
  }
  func.func @transform_3(%arg0: i32, %arg1: i32, %arg2: i32) -> (i32, i32) {
    %c0_i32 = arith.constant 0 : i32
    %c0_i32_0 = arith.constant 0 : i32
    return %c0_i32, %arg1 : i32, i32
  }
  func.func @transform_4(%arg0: i32, %arg1: i32, %arg2: i32) -> (i32, i32) {
    %c0_i32 = arith.constant 0 : i32
    return %arg0, %arg1 : i32, i32
  }
}

module attributes {stable_mosaic.version = 11 : i64} {
  func.func @_gemm_affine_act_kernel(%arg0: i32, %arg1: i32, %arg2: i32, %arg3: memref<256x256xbf16, #tpu.memory_space<vmem>>, %arg4: memref<256x128xbf16, #tpu.memory_space<vmem>>, %arg5: memref<1x128xf32, #tpu.memory_space<vmem>>, %arg6: memref<1x128xf32, #tpu.memory_space<vmem>>, %arg7: memref<256x128xf32, #tpu.memory_space<vmem>>, %arg8: memref<256x128xf32, #tpu.memory_space<vmem>>) attributes {dimension_semantics = [#tpu.dimension_semantics<parallel>, #tpu.dimension_semantics<parallel>, #tpu.dimension_semantics<arbitrary>], iteration_bounds = array<i64: 2, 1, 1>, scalar_prefetch = 0 : i64, scratch_operands = 1 : i64, tpu.core_type = #tpu.core_type<tc>, window_params = [{transform_indices = @transform_0, window_bounds = array<i64: 256, 256>}, {transform_indices = @transform_1, window_bounds = array<i64: 256, 128>}, {transform_indices = @transform_2, window_bounds = array<i64: 1, 128>}, {transform_indices = @transform_3, window_bounds = array<i64: 1, 128>}, {transform_indices = @transform_4, window_bounds = array<i64: 256, 128>}]} {
    %c0_i32 = arith.constant 0 : i32
    %0 = arith.cmpi eq, %arg2, %c0_i32 : i32
    %1 = arith.extui %0 : i1 to i32
    %c0_i32_0 = arith.constant 0 : i32
    %2 = arith.cmpi ne, %1, %c0_i32_0 : i32
    scf.if %2 {
      %cst_10 = arith.constant 0.000000e+00 : f32
      %12 = vector.broadcast %cst_10 : f32 to vector<256x128xf32>
      %c0_11 = arith.constant 0 : index
      %c0_12 = arith.constant 0 : index
      %13 = vector.load %arg8[%c0_11, %c0_12] : memref<256x128xf32, #tpu.memory_space<vmem>>, vector<256x128xf32>
      tpu.vector_store %arg8[%c0_11, %c0_12], %12 {strides = array<i32>} : memref<256x128xf32, #tpu.memory_space<vmem>>, vector<256x128xf32>,
    } else {
    }
    %c0 = arith.constant 0 : index
    %c0_1 = arith.constant 0 : index
    %3 = vector.load %arg8[%c0, %c0_1] : memref<256x128xf32, #tpu.memory_space<vmem>>, vector<256x128xf32>
    %c0_2 = arith.constant 0 : index
    %c0_3 = arith.constant 0 : index
    %4 = vector.load %arg3[%c0_2, %c0_3] : memref<256x256xbf16, #tpu.memory_space<vmem>>, vector<256x256xbf16>
    %c0_4 = arith.constant 0 : index
    %c0_5 = arith.constant 0 : index
    %5 = vector.load %arg4[%c0_4, %c0_5] : memref<256x128xbf16, #tpu.memory_space<vmem>>, vector<256x128xbf16>
    %cst = arith.constant dense<0.000000e+00> : vector<256x128xf32>
    %6 = tpu.matmul %4, %5, %cst {dimension_numbers = #tpu.dot_dimension_numbers<[1], [0], [0], [1], [0, 0, 1, 1], [], []>} : vector<256x256xbf16>, vector<256x128xbf16>, vector<256x128xf32> -> vector<256x128xf32>
    %7 = arith.addf %3, %6 : vector<256x128xf32>
    %c0_6 = arith.constant 0 : index
    %c0_7 = arith.constant 0 : index
    %8 = vector.load %arg8[%c0_6, %c0_7] : memref<256x128xf32, #tpu.memory_space<vmem>>, vector<256x128xf32>
    tpu.vector_store %arg8[%c0_6, %c0_7], %7 {strides = array<i32>} : memref<256x128xf32, #tpu.memory_space<vmem>>, vector<256x128xf32>,
    %c0_i32_8 = arith.constant 0 : i32
    %9 = arith.cmpi eq, %arg2, %c0_i32_8 : i32
    %10 = arith.extui %9 : i1 to i32
    %c0_i32_9 = arith.constant 0 : i32
    %11 = arith.cmpi ne, %10, %c0_i32_9 : i32
    scf.if %11 {
      %c0_10 = arith.constant 0 : index
      %c0_11 = arith.constant 0 : index
      %12 = vector.load %arg8[%c0_10, %c0_11] : memref<256x128xf32, #tpu.memory_space<vmem>>, vector<256x128xf32>
      %c0_12 = arith.constant 0 : index
      %c0_13 = arith.constant 0 : index
      %13 = vector.load %arg5[%c0_12, %c0_13] : memref<1x128xf32, #tpu.memory_space<vmem>>, vector<1x128xf32>
      %14 = vector.broadcast %13 : vector<1x128xf32> to vector<256x128xf32>
      %15 = arith.mulf %12, %14 : vector<256x128xf32>
      %c0_14 = arith.constant 0 : index
      %c0_15 = arith.constant 0 : index
      %16 = vector.load %arg6[%c0_14, %c0_15] : memref<1x128xf32, #tpu.memory_space<vmem>>, vector<1x128xf32>
      %17 = vector.broadcast %16 : vector<1x128xf32> to vector<256x128xf32>
      %18 = arith.addf %15, %17 : vector<256x128xf32>
      %cst_16 = arith.constant 0.000000e+00 : f32
      %19 = vector.broadcast %cst_16 : f32 to vector<256x128xf32>
      %20 = arith.maximumf %18, %19 : vector<256x128xf32>
      %c0_17 = arith.constant 0 : index
      %c0_18 = arith.constant 0 : index
      %21 = vector.load %arg7[%c0_17, %c0_18] : memref<256x128xf32, #tpu.memory_space<vmem>>, vector<256x128xf32>
      tpu.vector_store %arg7[%c0_17, %c0_18], %20 {strides = array<i32>} : memref<256x128xf32, #tpu.memory_space<vmem>>, vector<256x128xf32>,
    } else {
    }
    return
  }
  func.func @transform_0(%arg0: i32, %arg1: i32, %arg2: i32) -> (i32, i32) {
    %c0_i32 = arith.constant 0 : i32
    return %arg0, %arg2 : i32, i32
  }
  func.func @transform_1(%arg0: i32, %arg1: i32, %arg2: i32) -> (i32, i32) {
    %c0_i32 = arith.constant 0 : i32
    return %arg2, %arg1 : i32, i32
  }
  func.func @transform_2(%arg0: i32, %arg1: i32, %arg2: i32) -> (i32, i32) {
    %c0_i32 = arith.constant 0 : i32
    %c0_i32_0 = arith.constant 0 : i32
    return %c0_i32, %arg1 : i32, i32
  }
  func.func @transform_3(%arg0: i32, %arg1: i32, %arg2: i32) -> (i32, i32) {
    %c0_i32 = arith.constant 0 : i32
    %c0_i32_0 = arith.constant 0 : i32
    return %c0_i32, %arg1 : i32, i32
  }
  func.func @transform_4(%arg0: i32, %arg1: i32, %arg2: i32) -> (i32, i32) {
    %c0_i32 = arith.constant 0 : i32
    return %arg0, %arg1 : i32, i32
  }
}

module attributes {stable_mosaic.version = 11 : i64} {
  func.func @_gemm_affine_act_kernel(%arg0: i32, %arg1: i32, %arg2: i32, %arg3: memref<256x128xbf16, #tpu.memory_space<vmem>>, %arg4: memref<128x128xbf16, #tpu.memory_space<vmem>>, %arg5: memref<1x128xf32, #tpu.memory_space<vmem>>, %arg6: memref<1x128xf32, #tpu.memory_space<vmem>>, %arg7: memref<256x128xf32, #tpu.memory_space<vmem>>, %arg8: memref<256x128xf32, #tpu.memory_space<vmem>>) attributes {dimension_semantics = [#tpu.dimension_semantics<parallel>, #tpu.dimension_semantics<parallel>, #tpu.dimension_semantics<arbitrary>], iteration_bounds = array<i64: 2, 1, 1>, scalar_prefetch = 0 : i64, scratch_operands = 1 : i64, tpu.core_type = #tpu.core_type<tc>, window_params = [{transform_indices = @transform_0, window_bounds = array<i64: 256, 128>}, {transform_indices = @transform_1, window_bounds = array<i64: 128, 128>}, {transform_indices = @transform_2, window_bounds = array<i64: 1, 128>}, {transform_indices = @transform_3, window_bounds = array<i64: 1, 128>}, {transform_indices = @transform_4, window_bounds = array<i64: 256, 128>}]} {
    %c0_i32 = arith.constant 0 : i32
    %0 = arith.cmpi eq, %arg2, %c0_i32 : i32
    %1 = arith.extui %0 : i1 to i32
    %c0_i32_0 = arith.constant 0 : i32
    %2 = arith.cmpi ne, %1, %c0_i32_0 : i32
    scf.if %2 {
      %cst_10 = arith.constant 0.000000e+00 : f32
      %12 = vector.broadcast %cst_10 : f32 to vector<256x128xf32>
      %c0_11 = arith.constant 0 : index
      %c0_12 = arith.constant 0 : index
      %13 = vector.load %arg8[%c0_11, %c0_12] : memref<256x128xf32, #tpu.memory_space<vmem>>, vector<256x128xf32>
      tpu.vector_store %arg8[%c0_11, %c0_12], %12 {strides = array<i32>} : memref<256x128xf32, #tpu.memory_space<vmem>>, vector<256x128xf32>,
    } else {
    }
    %c0 = arith.constant 0 : index
    %c0_1 = arith.constant 0 : index
    %3 = vector.load %arg8[%c0, %c0_1] : memref<256x128xf32, #tpu.memory_space<vmem>>, vector<256x128xf32>
    %c0_2 = arith.constant 0 : index
    %c0_3 = arith.constant 0 : index
    %4 = vector.load %arg3[%c0_2, %c0_3] : memref<256x128xbf16, #tpu.memory_space<vmem>>, vector<256x128xbf16>
    %c0_4 = arith.constant 0 : index
    %c0_5 = arith.constant 0 : index
    %5 = vector.load %arg4[%c0_4, %c0_5] : memref<128x128xbf16, #tpu.memory_space<vmem>>, vector<128x128xbf16>
    %cst = arith.constant dense<0.000000e+00> : vector<256x128xf32>
    %6 = tpu.matmul %4, %5, %cst {dimension_numbers = #tpu.dot_dimension_numbers<[1], [0], [0], [1], [0, 0, 1, 1], [], []>} : vector<256x128xbf16>, vector<128x128xbf16>, vector<256x128xf32> -> vector<256x128xf32>
    %7 = arith.addf %3, %6 : vector<256x128xf32>
    %c0_6 = arith.constant 0 : index
    %c0_7 = arith.constant 0 : index
    %8 = vector.load %arg8[%c0_6, %c0_7] : memref<256x128xf32, #tpu.memory_space<vmem>>, vector<256x128xf32>
    tpu.vector_store %arg8[%c0_6, %c0_7], %7 {strides = array<i32>} : memref<256x128xf32, #tpu.memory_space<vmem>>, vector<256x128xf32>,
    %c0_i32_8 = arith.constant 0 : i32
    %9 = arith.cmpi eq, %arg2, %c0_i32_8 : i32
    %10 = arith.extui %9 : i1 to i32
    %c0_i32_9 = arith.constant 0 : i32
    %11 = arith.cmpi ne, %10, %c0_i32_9 : i32
    scf.if %11 {
      %c0_10 = arith.constant 0 : index
      %c0_11 = arith.constant 0 : index
      %12 = vector.load %arg8[%c0_10, %c0_11] : memref<256x128xf32, #tpu.memory_space<vmem>>, vector<256x128xf32>
      %c0_12 = arith.constant 0 : index
      %c0_13 = arith.constant 0 : index
      %13 = vector.load %arg5[%c0_12, %c0_13] : memref<1x128xf32, #tpu.memory_space<vmem>>, vector<1x128xf32>
      %14 = vector.broadcast %13 : vector<1x128xf32> to vector<256x128xf32>
      %15 = arith.mulf %12, %14 : vector<256x128xf32>
      %c0_14 = arith.constant 0 : index
      %c0_15 = arith.constant 0 : index
      %16 = vector.load %arg6[%c0_14, %c0_15] : memref<1x128xf32, #tpu.memory_space<vmem>>, vector<1x128xf32>
      %17 = vector.broadcast %16 : vector<1x128xf32> to vector<256x128xf32>
      %18 = arith.addf %15, %17 : vector<256x128xf32>
      %c0_16 = arith.constant 0 : index
      %c0_17 = arith.constant 0 : index
      %19 = vector.load %arg7[%c0_16, %c0_17] : memref<256x128xf32, #tpu.memory_space<vmem>>, vector<256x128xf32>
      tpu.vector_store %arg7[%c0_16, %c0_17], %18 {strides = array<i32>} : memref<256x128xf32, #tpu.memory_space<vmem>>, vector<256x128xf32>,
    } else {
    }
    return
  }
  func.func @transform_0(%arg0: i32, %arg1: i32, %arg2: i32) -> (i32, i32) {
    %c0_i32 = arith.constant 0 : i32
    return %arg0, %arg2 : i32, i32
  }
  func.func @transform_1(%arg0: i32, %arg1: i32, %arg2: i32) -> (i32, i32) {
    %c0_i32 = arith.constant 0 : i32
    return %arg2, %arg1 : i32, i32
  }
  func.func @transform_2(%arg0: i32, %arg1: i32, %arg2: i32) -> (i32, i32) {
    %c0_i32 = arith.constant 0 : i32
    %c0_i32_0 = arith.constant 0 : i32
    return %c0_i32, %arg1 : i32, i32
  }
  func.func @transform_3(%arg0: i32, %arg1: i32, %arg2: i32) -> (i32, i32) {
    %c0_i32 = arith.constant 0 : i32
    %c0_i32_0 = arith.constant 0 : i32
    return %c0_i32, %arg1 : i32, i32
  }
  func.func @transform_4(%arg0: i32, %arg1: i32, %arg2: i32) -> (i32, i32) {
    %c0_i32 = arith.constant 0 : i32
    return %arg0, %arg1 : i32, i32
  }
}

module attributes {stable_mosaic.version = 11 : i64} {
  func.func @_gemm_affine_act_kernel(%arg0: i32, %arg1: i32, %arg2: i32, %arg3: memref<128x128xbf16, #tpu.memory_space<vmem>>, %arg4: memref<128x128xbf16, #tpu.memory_space<vmem>>, %arg5: memref<1x128xf32, #tpu.memory_space<vmem>>, %arg6: memref<1x128xf32, #tpu.memory_space<vmem>>, %arg7: memref<128x128xf32, #tpu.memory_space<vmem>>, %arg8: memref<128x128xf32, #tpu.memory_space<vmem>>) attributes {dimension_semantics = [#tpu.dimension_semantics<parallel>, #tpu.dimension_semantics<parallel>, #tpu.dimension_semantics<arbitrary>], iteration_bounds = array<i64: 1, 1, 1>, scalar_prefetch = 0 : i64, scratch_operands = 1 : i64, tpu.core_type = #tpu.core_type<tc>, window_params = [{transform_indices = @transform_0, window_bounds = array<i64: 128, 128>}, {transform_indices = @transform_1, window_bounds = array<i64: 128, 128>}, {transform_indices = @transform_2, window_bounds = array<i64: 1, 128>}, {transform_indices = @transform_3, window_bounds = array<i64: 1, 128>}, {transform_indices = @transform_4, window_bounds = array<i64: 128, 128>}]} {
    %c0_i32 = arith.constant 0 : i32
    %0 = arith.cmpi eq, %arg2, %c0_i32 : i32
    %1 = arith.extui %0 : i1 to i32
    %c0_i32_0 = arith.constant 0 : i32
    %2 = arith.cmpi ne, %1, %c0_i32_0 : i32
    scf.if %2 {
      %cst_10 = arith.constant 0.000000e+00 : f32
      %12 = vector.broadcast %cst_10 : f32 to vector<128x128xf32>
      %c0_11 = arith.constant 0 : index
      %c0_12 = arith.constant 0 : index
      %13 = vector.load %arg8[%c0_11, %c0_12] : memref<128x128xf32, #tpu.memory_space<vmem>>, vector<128x128xf32>
      tpu.vector_store %arg8[%c0_11, %c0_12], %12 {strides = array<i32>} : memref<128x128xf32, #tpu.memory_space<vmem>>, vector<128x128xf32>,
    } else {
    }
    %c0 = arith.constant 0 : index
    %c0_1 = arith.constant 0 : index
    %3 = vector.load %arg8[%c0, %c0_1] : memref<128x128xf32, #tpu.memory_space<vmem>>, vector<128x128xf32>
    %c0_2 = arith.constant 0 : index
    %c0_3 = arith.constant 0 : index
    %4 = vector.load %arg3[%c0_2, %c0_3] : memref<128x128xbf16, #tpu.memory_space<vmem>>, vector<128x128xbf16>
    %c0_4 = arith.constant 0 : index
    %c0_5 = arith.constant 0 : index
    %5 = vector.load %arg4[%c0_4, %c0_5] : memref<128x128xbf16, #tpu.memory_space<vmem>>, vector<128x128xbf16>
    %cst = arith.constant dense<0.000000e+00> : vector<128x128xf32>
    %6 = tpu.matmul %4, %5, %cst {dimension_numbers = #tpu.dot_dimension_numbers<[1], [0], [0], [1], [0, 0, 1, 1], [], []>} : vector<128x128xbf16>, vector<128x128xbf16>, vector<128x128xf32> -> vector<128x128xf32>
    %7 = arith.addf %3, %6 : vector<128x128xf32>
    %c0_6 = arith.constant 0 : index
    %c0_7 = arith.constant 0 : index
    %8 = vector.load %arg8[%c0_6, %c0_7] : memref<128x128xf32, #tpu.memory_space<vmem>>, vector<128x128xf32>
    tpu.vector_store %arg8[%c0_6, %c0_7], %7 {strides = array<i32>} : memref<128x128xf32, #tpu.memory_space<vmem>>, vector<128x128xf32>,
    %c0_i32_8 = arith.constant 0 : i32
    %9 = arith.cmpi eq, %arg2, %c0_i32_8 : i32
    %10 = arith.extui %9 : i1 to i32
    %c0_i32_9 = arith.constant 0 : i32
    %11 = arith.cmpi ne, %10, %c0_i32_9 : i32
    scf.if %11 {
      %c0_10 = arith.constant 0 : index
      %c0_11 = arith.constant 0 : index
      %12 = vector.load %arg8[%c0_10, %c0_11] : memref<128x128xf32, #tpu.memory_space<vmem>>, vector<128x128xf32>
      %c0_12 = arith.constant 0 : index
      %c0_13 = arith.constant 0 : index
      %13 = vector.load %arg5[%c0_12, %c0_13] : memref<1x128xf32, #tpu.memory_space<vmem>>, vector<1x128xf32>
      %14 = vector.broadcast %13 : vector<1x128xf32> to vector<128x128xf32>
      %15 = arith.mulf %12, %14 : vector<128x128xf32>
      %c0_14 = arith.constant 0 : index
      %c0_15 = arith.constant 0 : index
      %16 = vector.load %arg6[%c0_14, %c0_15] : memref<1x128xf32, #tpu.memory_space<vmem>>, vector<1x128xf32>
      %17 = vector.broadcast %16 : vector<1x128xf32> to vector<128x128xf32>
      %18 = arith.addf %15, %17 : vector<128x128xf32>
      %c0_16 = arith.constant 0 : index
      %c0_17 = arith.constant 0 : index
      %19 = vector.load %arg7[%c0_16, %c0_17] : memref<128x128xf32, #tpu.memory_space<vmem>>, vector<128x128xf32>
      tpu.vector_store %arg7[%c0_16, %c0_17], %18 {strides = array<i32>} : memref<128x128xf32, #tpu.memory_space<vmem>>, vector<128x128xf32>,
    } else {
    }
    return
  }
  func.func @transform_0(%arg0: i32, %arg1: i32, %arg2: i32) -> (i32, i32) {
    %c0_i32 = arith.constant 0 : i32
    return %arg0, %arg2 : i32, i32
  }
  func.func @transform_1(%arg0: i32, %arg1: i32, %arg2: i32) -> (i32, i32) {
    %c0_i32 = arith.constant 0 : i32
    return %arg2, %arg1 : i32, i32
  }
  func.func @transform_2(%arg0: i32, %arg1: i32, %arg2: i32) -> (i32, i32) {
    %c0_i32 = arith.constant 0 : i32
    %c0_i32_0 = arith.constant 0 : i32
    return %c0_i32, %arg1 : i32, i32
  }
  func.func @transform_3(%arg0: i32, %arg1: i32, %arg2: i32) -> (i32, i32) {
    %c0_i32 = arith.constant 0 : i32
    %c0_i32_0 = arith.constant 0 : i32
    return %c0_i32, %arg1 : i32, i32
  }
  func.func @transform_4(%arg0: i32, %arg1: i32, %arg2: i32) -> (i32, i32) {
    %c0_i32 = arith.constant 0 : i32
    return %arg0, %arg1 : i32, i32
  }
}

module attributes {stable_mosaic.version = 11 : i64} {
  func.func @_gemm_affine_act_kernel(%arg0: i32, %arg1: i32, %arg2: i32, %arg3: memref<32x128xbf16, #tpu.memory_space<vmem>>, %arg4: memref<128x128xbf16, #tpu.memory_space<vmem>>, %arg5: memref<1x128xf32, #tpu.memory_space<vmem>>, %arg6: memref<1x128xf32, #tpu.memory_space<vmem>>, %arg7: memref<32x128xf32, #tpu.memory_space<vmem>>, %arg8: memref<32x128xf32, #tpu.memory_space<vmem>>) attributes {dimension_semantics = [#tpu.dimension_semantics<parallel>, #tpu.dimension_semantics<parallel>, #tpu.dimension_semantics<arbitrary>], iteration_bounds = array<i64: 1, 1, 1>, scalar_prefetch = 0 : i64, scratch_operands = 1 : i64, tpu.core_type = #tpu.core_type<tc>, window_params = [{transform_indices = @transform_0, window_bounds = array<i64: 32, 128>}, {transform_indices = @transform_1, window_bounds = array<i64: 128, 128>}, {transform_indices = @transform_2, window_bounds = array<i64: 1, 128>}, {transform_indices = @transform_3, window_bounds = array<i64: 1, 128>}, {transform_indices = @transform_4, window_bounds = array<i64: 32, 128>}]} {
    %c0_i32 = arith.constant 0 : i32
    %0 = arith.cmpi eq, %arg2, %c0_i32 : i32
    %1 = arith.extui %0 : i1 to i32
    %c0_i32_0 = arith.constant 0 : i32
    %2 = arith.cmpi ne, %1, %c0_i32_0 : i32
    scf.if %2 {
      %cst_10 = arith.constant 0.000000e+00 : f32
      %12 = vector.broadcast %cst_10 : f32 to vector<32x128xf32>
      %c0_11 = arith.constant 0 : index
      %c0_12 = arith.constant 0 : index
      %13 = vector.load %arg8[%c0_11, %c0_12] : memref<32x128xf32, #tpu.memory_space<vmem>>, vector<32x128xf32>
      tpu.vector_store %arg8[%c0_11, %c0_12], %12 {strides = array<i32>} : memref<32x128xf32, #tpu.memory_space<vmem>>, vector<32x128xf32>,
    } else {
    }
    %c0 = arith.constant 0 : index
    %c0_1 = arith.constant 0 : index
    %3 = vector.load %arg8[%c0, %c0_1] : memref<32x128xf32, #tpu.memory_space<vmem>>, vector<32x128xf32>
    %c0_2 = arith.constant 0 : index
    %c0_3 = arith.constant 0 : index
    %4 = vector.load %arg3[%c0_2, %c0_3] : memref<32x128xbf16, #tpu.memory_space<vmem>>, vector<32x128xbf16>
    %c0_4 = arith.constant 0 : index
    %c0_5 = arith.constant 0 : index
    %5 = vector.load %arg4[%c0_4, %c0_5] : memref<128x128xbf16, #tpu.memory_space<vmem>>, vector<128x128xbf16>
    %cst = arith.constant dense<0.000000e+00> : vector<32x128xf32>
    %6 = tpu.matmul %4, %5, %cst {dimension_numbers = #tpu.dot_dimension_numbers<[1], [0], [0], [1], [0, 0, 1, 1], [], []>} : vector<32x128xbf16>, vector<128x128xbf16>, vector<32x128xf32> -> vector<32x128xf32>
    %7 = arith.addf %3, %6 : vector<32x128xf32>
    %c0_6 = arith.constant 0 : index
    %c0_7 = arith.constant 0 : index
    %8 = vector.load %arg8[%c0_6, %c0_7] : memref<32x128xf32, #tpu.memory_space<vmem>>, vector<32x128xf32>
    tpu.vector_store %arg8[%c0_6, %c0_7], %7 {strides = array<i32>} : memref<32x128xf32, #tpu.memory_space<vmem>>, vector<32x128xf32>,
    %c0_i32_8 = arith.constant 0 : i32
    %9 = arith.cmpi eq, %arg2, %c0_i32_8 : i32
    %10 = arith.extui %9 : i1 to i32
    %c0_i32_9 = arith.constant 0 : i32
    %11 = arith.cmpi ne, %10, %c0_i32_9 : i32
    scf.if %11 {
      %c0_10 = arith.constant 0 : index
      %c0_11 = arith.constant 0 : index
      %12 = vector.load %arg8[%c0_10, %c0_11] : memref<32x128xf32, #tpu.memory_space<vmem>>, vector<32x128xf32>
      %c0_12 = arith.constant 0 : index
      %c0_13 = arith.constant 0 : index
      %13 = vector.load %arg5[%c0_12, %c0_13] : memref<1x128xf32, #tpu.memory_space<vmem>>, vector<1x128xf32>
      %14 = vector.broadcast %13 : vector<1x128xf32> to vector<32x128xf32>
      %15 = arith.mulf %12, %14 : vector<32x128xf32>
      %c0_14 = arith.constant 0 : index
      %c0_15 = arith.constant 0 : index
      %16 = vector.load %arg6[%c0_14, %c0_15] : memref<1x128xf32, #tpu.memory_space<vmem>>, vector<1x128xf32>
      %17 = vector.broadcast %16 : vector<1x128xf32> to vector<32x128xf32>
      %18 = arith.addf %15, %17 : vector<32x128xf32>
      %c0_16 = arith.constant 0 : index
      %c0_17 = arith.constant 0 : index
      %19 = vector.load %arg7[%c0_16, %c0_17] : memref<32x128xf32, #tpu.memory_space<vmem>>, vector<32x128xf32>
      tpu.vector_store %arg7[%c0_16, %c0_17], %18 {strides = array<i32>} : memref<32x128xf32, #tpu.memory_space<vmem>>, vector<32x128xf32>,
    } else {
    }
    return
  }
  func.func @transform_0(%arg0: i32, %arg1: i32, %arg2: i32) -> (i32, i32) {
    %c0_i32 = arith.constant 0 : i32
    return %arg0, %arg2 : i32, i32
  }
  func.func @transform_1(%arg0: i32, %arg1: i32, %arg2: i32) -> (i32, i32) {
    %c0_i32 = arith.constant 0 : i32
    return %arg2, %arg1 : i32, i32
  }
  func.func @transform_2(%arg0: i32, %arg1: i32, %arg2: i32) -> (i32, i32) {
    %c0_i32 = arith.constant 0 : i32
    %c0_i32_0 = arith.constant 0 : i32
    return %c0_i32, %arg1 : i32, i32
  }
  func.func @transform_3(%arg0: i32, %arg1: i32, %arg2: i32) -> (i32, i32) {
    %c0_i32 = arith.constant 0 : i32
    %c0_i32_0 = arith.constant 0 : i32
    return %c0_i32, %arg1 : i32, i32
  }
  func.func @transform_4(%arg0: i32, %arg1: i32, %arg2: i32) -> (i32, i32) {
    %c0_i32 = arith.constant 0 : i32
    return %arg0, %arg1 : i32, i32
  }
}

module attributes {stable_mosaic.version = 11 : i64} {
  func.func @_gemm_affine_act_kernel(%arg0: i32, %arg1: i32, %arg2: i32, %arg3: memref<256x128xbf16, #tpu.memory_space<vmem>>, %arg4: memref<128x128xbf16, #tpu.memory_space<vmem>>, %arg5: memref<1x128xf32, #tpu.memory_space<vmem>>, %arg6: memref<1x128xf32, #tpu.memory_space<vmem>>, %arg7: memref<256x128xf32, #tpu.memory_space<vmem>>, %arg8: memref<256x128xf32, #tpu.memory_space<vmem>>) attributes {dimension_semantics = [#tpu.dimension_semantics<parallel>, #tpu.dimension_semantics<parallel>, #tpu.dimension_semantics<arbitrary>], iteration_bounds = array<i64: 2, 1, 1>, scalar_prefetch = 0 : i64, scratch_operands = 1 : i64, tpu.core_type = #tpu.core_type<tc>, window_params = [{transform_indices = @transform_0, window_bounds = array<i64: 256, 128>}, {transform_indices = @transform_1, window_bounds = array<i64: 128, 128>}, {transform_indices = @transform_2, window_bounds = array<i64: 1, 128>}, {transform_indices = @transform_3, window_bounds = array<i64: 1, 128>}, {transform_indices = @transform_4, window_bounds = array<i64: 256, 128>}]} {
    %c0_i32 = arith.constant 0 : i32
    %0 = arith.cmpi eq, %arg2, %c0_i32 : i32
    %1 = arith.extui %0 : i1 to i32
    %c0_i32_0 = arith.constant 0 : i32
    %2 = arith.cmpi ne, %1, %c0_i32_0 : i32
    scf.if %2 {
      %cst_10 = arith.constant 0.000000e+00 : f32
      %12 = vector.broadcast %cst_10 : f32 to vector<256x128xf32>
      %c0_11 = arith.constant 0 : index
      %c0_12 = arith.constant 0 : index
      %13 = vector.load %arg8[%c0_11, %c0_12] : memref<256x128xf32, #tpu.memory_space<vmem>>, vector<256x128xf32>
      tpu.vector_store %arg8[%c0_11, %c0_12], %12 {strides = array<i32>} : memref<256x128xf32, #tpu.memory_space<vmem>>, vector<256x128xf32>,
    } else {
    }
    %c0 = arith.constant 0 : index
    %c0_1 = arith.constant 0 : index
    %3 = vector.load %arg8[%c0, %c0_1] : memref<256x128xf32, #tpu.memory_space<vmem>>, vector<256x128xf32>
    %c0_2 = arith.constant 0 : index
    %c0_3 = arith.constant 0 : index
    %4 = vector.load %arg3[%c0_2, %c0_3] : memref<256x128xbf16, #tpu.memory_space<vmem>>, vector<256x128xbf16>
    %c0_4 = arith.constant 0 : index
    %c0_5 = arith.constant 0 : index
    %5 = vector.load %arg4[%c0_4, %c0_5] : memref<128x128xbf16, #tpu.memory_space<vmem>>, vector<128x128xbf16>
    %cst = arith.constant dense<0.000000e+00> : vector<256x128xf32>
    %6 = tpu.matmul %4, %5, %cst {dimension_numbers = #tpu.dot_dimension_numbers<[1], [0], [0], [1], [0, 0, 1, 1], [], []>} : vector<256x128xbf16>, vector<128x128xbf16>, vector<256x128xf32> -> vector<256x128xf32>
    %7 = arith.addf %3, %6 : vector<256x128xf32>
    %c0_6 = arith.constant 0 : index
    %c0_7 = arith.constant 0 : index
    %8 = vector.load %arg8[%c0_6, %c0_7] : memref<256x128xf32, #tpu.memory_space<vmem>>, vector<256x128xf32>
    tpu.vector_store %arg8[%c0_6, %c0_7], %7 {strides = array<i32>} : memref<256x128xf32, #tpu.memory_space<vmem>>, vector<256x128xf32>,
    %c0_i32_8 = arith.constant 0 : i32
    %9 = arith.cmpi eq, %arg2, %c0_i32_8 : i32
    %10 = arith.extui %9 : i1 to i32
    %c0_i32_9 = arith.constant 0 : i32
    %11 = arith.cmpi ne, %10, %c0_i32_9 : i32
    scf.if %11 {
      %c0_10 = arith.constant 0 : index
      %c0_11 = arith.constant 0 : index
      %12 = vector.load %arg8[%c0_10, %c0_11] : memref<256x128xf32, #tpu.memory_space<vmem>>, vector<256x128xf32>
      %c0_12 = arith.constant 0 : index
      %c0_13 = arith.constant 0 : index
      %13 = vector.load %arg5[%c0_12, %c0_13] : memref<1x128xf32, #tpu.memory_space<vmem>>, vector<1x128xf32>
      %14 = vector.broadcast %13 : vector<1x128xf32> to vector<256x128xf32>
      %15 = arith.mulf %12, %14 : vector<256x128xf32>
      %c0_14 = arith.constant 0 : index
      %c0_15 = arith.constant 0 : index
      %16 = vector.load %arg6[%c0_14, %c0_15] : memref<1x128xf32, #tpu.memory_space<vmem>>, vector<1x128xf32>
      %17 = vector.broadcast %16 : vector<1x128xf32> to vector<256x128xf32>
      %18 = arith.addf %15, %17 : vector<256x128xf32>
      %cst_16 = arith.constant 0.000000e+00 : f32
      %19 = vector.broadcast %cst_16 : f32 to vector<256x128xf32>
      %20 = arith.subf %19, %18 : vector<256x128xf32>
      %21 = math.exp %20 : vector<256x128xf32>
      %cst_17 = arith.constant 1.000000e+00 : f32
      %22 = vector.broadcast %cst_17 : f32 to vector<256x128xf32>
      %23 = arith.addf %22, %21 : vector<256x128xf32>
      %cst_18 = arith.constant 1.000000e+00 : f32
      %24 = vector.broadcast %cst_18 : f32 to vector<256x128xf32>
      %25 = arith.divf %24, %23 : vector<256x128xf32>
      %c0_19 = arith.constant 0 : index
      %c0_20 = arith.constant 0 : index
      %26 = vector.load %arg7[%c0_19, %c0_20] : memref<256x128xf32, #tpu.memory_space<vmem>>, vector<256x128xf32>
      tpu.vector_store %arg7[%c0_19, %c0_20], %25 {strides = array<i32>} : memref<256x128xf32, #tpu.memory_space<vmem>>, vector<256x128xf32>,
    } else {
    }
    return
  }
  func.func @transform_0(%arg0: i32, %arg1: i32, %arg2: i32) -> (i32, i32) {
    %c0_i32 = arith.constant 0 : i32
    return %arg0, %arg2 : i32, i32
  }
  func.func @transform_1(%arg0: i32, %arg1: i32, %arg2: i32) -> (i32, i32) {
    %c0_i32 = arith.constant 0 : i32
    return %arg2, %arg1 : i32, i32
  }
  func.func @transform_2(%arg0: i32, %arg1: i32, %arg2: i32) -> (i32, i32) {
    %c0_i32 = arith.constant 0 : i32
    %c0_i32_0 = arith.constant 0 : i32
    return %c0_i32, %arg1 : i32, i32
  }
  func.func @transform_3(%arg0: i32, %arg1: i32, %arg2: i32) -> (i32, i32) {
    %c0_i32 = arith.constant 0 : i32
    %c0_i32_0 = arith.constant 0 : i32
    return %c0_i32, %arg1 : i32, i32
  }
  func.func @transform_4(%arg0: i32, %arg1: i32, %arg2: i32) -> (i32, i32) {
    %c0_i32 = arith.constant 0 : i32
    return %arg0, %arg1 : i32, i32
  }
}

</mosaic_0001>

<bundles_post_ra>
// kernel: _lambda_.40
= control target key start
LH: loop header
LB: loop body
LE: loop exit
PB: predicated region body
PF: predicated region fallthrough
CT: control target
= control target key end

     0   :  { %s1240_s15 = smov 0   ;;  %s1242_s16 = smov 0   ;;  %s1430_s0 = inlined_call_operand.vmem [shape: bf16[512,128], index: 0, kind: input, shape index: {}]   ;;  %s1431_s1 = inlined_call_operand.vmem [shape: bf16[128,128], index: 1, kind: input, shape index: {}]   ;;  %s1432_s2 = inlined_call_operand.vmem [shape: f32[1,128], index: 2, kind: input, shape index: {}]   ;;  %s1433_s3 = inlined_call_operand.vmem [shape: f32[1,128], index: 3, kind: input, shape index: {}]   ;;  %s1434_s4 = inlined_call_operand.vmem [shape: f32[512,128], index: 4, kind: output, shape index: {}]  }
   0x1   :  { %s1244_s17 = smov 0  }
   0x2 LB: > { %s33_s18 = sadd.s32 1, %s1209_s16  ;;  %p1014_p0 = scmp.ge.s32.totalorder %s1213_s17, 1  ;;  %s1213_s17 = sphi %s1244_s17, %s14_s17   ;;  %s1209_s16 = sphi %s1242_s16, %s1436_s16   ;;  %s1205_s15 = sphi %s1240_s15, %s1435_s15  }
   0x3   : > { %p35_p1 = scmp.ge.s32.totalorder %s33_s18, 2  ;;  %p221_p2 = scmp.lt.s32.totalorder %s1213_s17, 3 }
   0x5   : > { %s1438_s18 = smov (%p35_p1, %s33_s18), 0  ;;  %p222_p3 = pnand %p1014_p0, %p221_p2 }
   0x6   : > { %s1015_s27 = sshll.u32 (!%p222_p3), %s1205_s15, 5 }
   0x7   : > { %225 = sbr.rel (%p222_p3) target bundleno = 241 (0xf1), region = 36  ;;  %p268_p4 = scmp.lt.s32.totalorder (!%p222_p3), %s1015_s27, 63 }
   0xc   : > { %v1140_v0 = vld [vmem:[%s1431_s1 + $0x38] sm:$0xff]  ;;  %v1139_v1 = vld [vmem:[%s1431_s1 + $0x30] sm:$0xff]  ;;  %v1138_v2 = vld [vmem:[%s1431_s1 + $0x28] sm:$0xff]  ;;  %s1440_s27 = smov (!%p268_p4, %s1015_s27), 63 }
   0xd   : > { %560 = vmatpush.bf16.msra.mxu0 %v1140_v0  ;;  %1141 = vmatpush.bf16.msra.mxu1 %v1140_v0  ;;  %v1137_v3 = vld [vmem:[%s1431_s1 + $0x20] sm:$0xff]  ;;  %v1136_v4 = vld [vmem:[%s1431_s1 + $0x18] sm:$0xff]  ;;  %v1135_v5 = vld [vmem:[%s1431_s1 + $0x10] sm:$0xff]  ;;  %s1016_s8 = sshll.u32 %s1440_s27, 2  ;;  %s1018_s21 = sshll.u32 %s1440_s27, 3 }
   0xe   : > { %1142 = vmatpush.bf16.msra.mxu2 %v1140_v0  ;;  %1143 = vmatpush.bf16.msra.mxu3 %v1140_v0  ;;  %v1134_v6 = vld [vmem:[%s1431_s1 + $0x8] sm:$0xff]  ;;  %v1133_v7 = vld [vmem:[%s1431_s1] sm:$0xff]  ;;  %s1291_s13 = scalar_lea.vmem %s1430_s0, %s1016_s8  ;;  %s1327_s24 = scalar_lea.vmem %s1434_s4, %s1018_s21 }
   0xf   : > { %v1117_v8 = vld [vmem:[%s1291_s13] sm:$0xff]  ;;  %v1118_v12 = vld [vmem:[%s1291_s13 + $0x8] sm:$0xff]  ;;  %v1119_v16 = vld [vmem:[%s1291_s13 + $0x10] sm:$0xff] }
  0x10   : > { %v1121_v9 = vld [vmem:[%s1291_s13 + $0x20] sm:$0xff]  ;;  %v1122_v13 = vld [vmem:[%s1291_s13 + $0x28] sm:$0xff]  ;;  %v1123_v17 = vld [vmem:[%s1291_s13 + $0x30] sm:$0xff] }
  0x11   : > { %561 = vmatpush.bf16.msra.mxu0 %v1139_v1  ;;  %1144 = vmatpush.bf16.msra.mxu1 %v1139_v1  ;;  %v1125_v10 = vld [vmem:[%s1291_s13 + $0x40] sm:$0xff]  ;;  %v1126_v14 = vld [vmem:[%s1291_s13 + $0x48] sm:$0xff]  ;;  %v1127_v18 = vld [vmem:[%s1291_s13 + $0x50] sm:$0xff] }
  0x12   : > { %1145 = vmatpush.bf16.msra.mxu2 %v1139_v1  ;;  %1146 = vmatpush.bf16.msra.mxu3 %v1139_v1  ;;  %v1129_v11 = vld [vmem:[%s1291_s13 + $0x60] sm:$0xff]  ;;  %v1130_v15 = vld [vmem:[%s1291_s13 + $0x68] sm:$0xff]  ;;  %v1131_v19 = vld [vmem:[%s1291_s13 + $0x70] sm:$0xff] }
  0x13   : > { %v1120_v20 = vld [vmem:[%s1291_s13 + $0x18] sm:$0xff]  ;;  %v1312_v24 = vld [vmem:[%s1432_s2] ss:$0 sm:$0xff] }
  0x14   : > { %v1124_v21 = vld [vmem:[%s1291_s13 + $0x38] sm:$0xff]  ;;  %v1317_v25 = vld [vmem:[%s1433_s3] ss:$0 sm:$0xff] }
  0x15   : > { %562 = vmatpush.bf16.msra.mxu0 %v1138_v2  ;;  %1147 = vmatpush.bf16.msra.mxu1 %v1138_v2  ;;  %v1128_v22 = vld [vmem:[%s1291_s13 + $0x58] sm:$0xff] }
  0x16   : > { %1148 = vmatpush.bf16.msra.mxu2 %v1138_v2  ;;  %1149 = vmatpush.bf16.msra.mxu3 %v1138_v2  ;;  %v1132_v23 = vld [vmem:[%s1291_s13 + $0x78] sm:$0xff] }
  0x19   : > { %563 = vmatpush.bf16.msra.mxu0 %v1137_v3  ;;  %1150 = vmatpush.bf16.msra.mxu1 %v1137_v3 }
  0x1a   : > { %1151 = vmatpush.bf16.msra.mxu2 %v1137_v3  ;;  %1152 = vmatpush.bf16.msra.mxu3 %v1137_v3 }
  0x1d   : > { %564 = vmatpush.bf16.msra.mxu0 %v1136_v4  ;;  %1153 = vmatpush.bf16.msra.mxu1 %v1136_v4 }
  0x1e   : > { %1154 = vmatpush.bf16.msra.mxu2 %v1136_v4  ;;  %1155 = vmatpush.bf16.msra.mxu3 %v1136_v4 }
  0x21   : > { %565 = vmatpush.bf16.msra.mxu0 %v1135_v5  ;;  %1156 = vmatpush.bf16.msra.mxu1 %v1135_v5 }
  0x22   : > { %1157 = vmatpush.bf16.msra.mxu2 %v1135_v5  ;;  %1158 = vmatpush.bf16.msra.mxu3 %v1135_v5 }
  0x25   : > { %566 = vmatpush.bf16.msra.mxu0 %v1134_v6  ;;  %1159 = vmatpush.bf16.msra.mxu1 %v1134_v6 }
  0x26   : > { %1160 = vmatpush.bf16.msra.mxu2 %v1134_v6  ;;  %1161 = vmatpush.bf16.msra.mxu3 %v1134_v6 }
  0x29   : > { %567 = vmatpush.bf16.msra.mxu0 %v1133_v7  ;;  %1162 = vmatpush.bf16.msra.mxu1 %v1133_v7 }
  0x2a   : > { %1163 = vmatpush.bf16.msra.mxu2 %v1133_v7  ;;  %1164 = vmatpush.bf16.msra.mxu3 %v1133_v7 }
  0x2c   : > { %568 = vmatmul.bf16.vlgmr.msra.gmra.mxu0 %v1117_v8  ;;  %588 = vmatmul.bf16.vlgmr.msra.gmra.mxu1 %v1121_v9 }
  0x2d   : > { %608 = vmatmul.bf16.vlgmr.msra.gmra.mxu2 %v1125_v10  ;;  %628 = vmatmul.bf16.vlgmr.msra.gmra.mxu3 %v1129_v11 }
  0x3c   : > { %573 = vmatmul.bf16.gmra.mxu0 %v1118_v12  ;;  %593 = vmatmul.bf16.gmra.mxu1 %v1122_v13 }
  0x3d   : > { %613 = vmatmul.bf16.gmra.mxu2 %v1126_v14  ;;  %633 = vmatmul.bf16.gmra.mxu3 %v1130_v15 }
  0x4c   : > { %578 = vmatmul.bf16.gmra.mxu0 %v1119_v16  ;;  %598 = vmatmul.bf16.gmra.mxu1 %v1123_v17 }
  0x4d   : > { %618 = vmatmul.bf16.gmra.mxu2 %v1127_v18  ;;  %638 = vmatmul.bf16.gmra.mxu3 %v1131_v19 }
  0x5c   : > { %583 = vmatmul.bf16.gmra.mxu0 %v1120_v20  ;;  %603 = vmatmul.bf16.gmra.mxu1 %v1124_v21 }
  0x5d   : > { %623 = vmatmul.bf16.gmra.mxu2 %v1128_v22  ;;  %643 = vmatmul.bf16.gmra.mxu3 %v1132_v23 }
  0xa9   : > { %v569_v26 = vpop.f32.mrf.mxu0  ;;  %v589_v27 = vpop.f32.mrf.mxu1 }
  0xaa   : > { %v752_v28 = vmul.f32 %v1312_v24, %v569_v26  ;;  %v760_v29 = vmul.f32 %v1312_v24, %v589_v27 }
  0xac   : > { %v788_v30 = vadd.f32 %v1317_v25, %v752_v28  ;;  %v796_v31 = vadd.f32 %v1317_v25, %v760_v29 }
  0xae   : > { %v820_v32 = vmax.f32 %v788_v30, 0.0  ;;  %v828_v33 = vmax.f32 %v796_v31, 0.0 }
  0xb0   : > { %852 = vst [vmem:[%s1327_s24] sm:$0xff] %v820_v32  ;;  %v609_v34 = vpop.f32.mrf.mxu2  ;;  %v629_v35 = vpop.f32.mrf.mxu3 }
  0xb1   : > { %860 = vst [vmem:[%s1327_s24 + $0x40] sm:$0xff] %v828_v33  ;;  %v768_v36 = vmul.f32 %v1312_v24, %v609_v34  ;;  %v776_v37 = vmul.f32 %v1312_v24, %v629_v35  ;;  %v571_v38 = vpop.f32.mrf.mxu0  ;;  %v591_v39 = vpop.f32.mrf.mxu1 }
  0xb2   : > { %v753_v40 = vmul.f32 %v1312_v24, %v571_v38  ;;  %v761_v41 = vmul.f32 %v1312_v24, %v591_v39 }
  0xb3   : > { %v804_v42 = vadd.f32 %v1317_v25, %v768_v36  ;;  %v812_v43 = vadd.f32 %v1317_v25, %v776_v37 }
  0xb4   : > { %v789_v44 = vadd.f32 %v1317_v25, %v753_v40  ;;  %v797_v45 = vadd.f32 %v1317_v25, %v761_v41 }
  0xb5   : > { %v836_v46 = vmax.f32 %v804_v42, 0.0  ;;  %v844_v47 = vmax.f32 %v812_v43, 0.0 }
  0xb6   : > { %v821_v48 = vmax.f32 %v789_v44, 0.0  ;;  %v829_v49 = vmax.f32 %v797_v45, 0.0 }
  0xb7   : > { %868 = vst [vmem:[%s1327_s24 + $0x80] sm:$0xff] %v836_v46 }
  0xb8   : > { %876 = vst [vmem:[%s1327_s24 + $0xc0] sm:$0xff] %v844_v47  ;;  %v611_v50 = vpop.f32.mrf.mxu2  ;;  %v631_v51 = vpop.f32.mrf.mxu3 }
  0xb9   : > { %853 = vst [vmem:[%s1327_s24 + $0x8] sm:$0xff] %v821_v48  ;;  %v769_v52 = vmul.f32 %v1312_v24, %v611_v50  ;;  %v777_v53 = vmul.f32 %v1312_v24, %v631_v51  ;;  %v574_v54 = vpop.f32.mrf.mxu0  ;;  %v594_v55 = vpop.f32.mrf.mxu1 }
  0xba   : > { %861 = vst [vmem:[%s1327_s24 + $0x48] sm:$0xff] %v829_v49  ;;  %v754_v56 = vmul.f32 %v1312_v24, %v574_v54  ;;  %v762_v57 = vmul.f32 %v1312_v24, %v594_v55 }
  0xbb   : > { %v805_v58 = vadd.f32 %v1317_v25, %v769_v52  ;;  %v813_v59 = vadd.f32 %v1317_v25, %v777_v53 }
  0xbc   : > { %v790_v60 = vadd.f32 %v1317_v25, %v754_v56  ;;  %v798_v61 = vadd.f32 %v1317_v25, %v762_v57 }
  0xbd   : > { %v837_v62 = vmax.f32 %v805_v58, 0.0  ;;  %v845_v63 = vmax.f32 %v813_v59, 0.0 }
  0xbe   : > { %v822_v0 = vmax.f32 %v790_v60, 0.0  ;;  %v830_v1 = vmax.f32 %v798_v61, 0.0 }
  0xbf   : > { %869 = vst [vmem:[%s1327_s24 + $0x88] sm:$0xff] %v837_v62 }
  0xc0   : > { %877 = vst [vmem:[%s1327_s24 + $0xc8] sm:$0xff] %v845_v63  ;;  %v614_v2 = vpop.f32.mrf.mxu2  ;;  %v634_v3 = vpop.f32.mrf.mxu3 }
  0xc1   : > { %854 = vst [vmem:[%s1327_s24 + $0x10] sm:$0xff] %v822_v0  ;;  %v770_v4 = vmul.f32 %v1312_v24, %v614_v2  ;;  %v778_v5 = vmul.f32 %v1312_v24, %v634_v3  ;;  %v576_v6 = vpop.f32.mrf.mxu0  ;;  %v596_v7 = vpop.f32.mrf.mxu1 }
  0xc2   : > { %862 = vst [vmem:[%s1327_s24 + $0x50] sm:$0xff] %v830_v1  ;;  %v755_v8 = vmul.f32 %v1312_v24, %v576_v6  ;;  %v763_v9 = vmul.f32 %v1312_v24, %v596_v7 }
  0xc3   : > { %v806_v10 = vadd.f32 %v1317_v25, %v770_v4  ;;  %v814_v11 = vadd.f32 %v1317_v25, %v778_v5 }
  0xc4   : > { %v791_v12 = vadd.f32 %v1317_v25, %v755_v8  ;;  %v799_v13 = vadd.f32 %v1317_v25, %v763_v9 }
  0xc5   : > { %v838_v14 = vmax.f32 %v806_v10, 0.0  ;;  %v846_v15 = vmax.f32 %v814_v11, 0.0 }
  0xc6   : > { %v823_v16 = vmax.f32 %v791_v12, 0.0  ;;  %v831_v17 = vmax.f32 %v799_v13, 0.0 }
  0xc7   : > { %870 = vst [vmem:[%s1327_s24 + $0x90] sm:$0xff] %v838_v14 }
  0xc8   : > { %878 = vst [vmem:[%s1327_s24 + $0xd0] sm:$0xff] %v846_v15  ;;  %v616_v18 = vpop.f32.mrf.mxu2  ;;  %v636_v19 = vpop.f32.mrf.mxu3 }
  0xc9   : > { %855 = vst [vmem:[%s1327_s24 + $0x18] sm:$0xff] %v823_v16  ;;  %v771_v20 = vmul.f32 %v1312_v24, %v616_v18  ;;  %v779_v21 = vmul.f32 %v1312_v24, %v636_v19  ;;  %v579_v22 = vpop.f32.mrf.mxu0  ;;  %v599_v23 = vpop.f32.mrf.mxu1 }
  0xca   : > { %863 = vst [vmem:[%s1327_s24 + $0x58] sm:$0xff] %v831_v17  ;;  %v756_v26 = vmul.f32 %v1312_v24, %v579_v22  ;;  %v764_v27 = vmul.f32 %v1312_v24, %v599_v23 }
  0xcb   : > { %v807_v28 = vadd.f32 %v1317_v25, %v771_v20  ;;  %v815_v29 = vadd.f32 %v1317_v25, %v779_v21 }
  0xcc   : > { %v792_v30 = vadd.f32 %v1317_v25, %v756_v26  ;;  %v800_v31 = vadd.f32 %v1317_v25, %v764_v27 }
  0xcd   : > { %v839_v32 = vmax.f32 %v807_v28, 0.0  ;;  %v847_v33 = vmax.f32 %v815_v29, 0.0 }
  0xce   : > { %v824_v34 = vmax.f32 %v792_v30, 0.0  ;;  %v832_v35 = vmax.f32 %v800_v31, 0.0 }
  0xcf   : > { %871 = vst [vmem:[%s1327_s24 + $0x98] sm:$0xff] %v839_v32 }
  0xd0   : > { %879 = vst [vmem:[%s1327_s24 + $0xd8] sm:$0xff] %v847_v33  ;;  %v619_v36 = vpop.f32.mrf.mxu2  ;;  %v639_v37 = vpop.f32.mrf.mxu3 }
  0xd1   : > { %856 = vst [vmem:[%s1327_s24 + $0x20] sm:$0xff] %v824_v34  ;;  %v772_v38 = vmul.f32 %v1312_v24, %v619_v36  ;;  %v780_v39 = vmul.f32 %v1312_v24, %v639_v37  ;;  %v581_v40 = vpop.f32.mrf.mxu0  ;;  %v601_v41 = vpop.f32.mrf.mxu1 }
  0xd2   : > { %864 = vst [vmem:[%s1327_s24 + $0x60] sm:$0xff] %v832_v35  ;;  %v757_v42 = vmul.f32 %v1312_v24, %v581_v40  ;;  %v765_v43 = vmul.f32 %v1312_v24, %v601_v41 }
  0xd3   : > { %v808_v44 = vadd.f32 %v1317_v25, %v772_v38  ;;  %v816_v45 = vadd.f32 %v1317_v25, %v780_v39 }
  0xd4   : > { %v793_v46 = vadd.f32 %v1317_v25, %v757_v42  ;;  %v801_v47 = vadd.f32 %v1317_v25, %v765_v43 }
  0xd5   : > { %v840_v48 = vmax.f32 %v808_v44, 0.0  ;;  %v848_v49 = vmax.f32 %v816_v45, 0.0 }
  0xd6   : > { %v825_v50 = vmax.f32 %v793_v46, 0.0  ;;  %v833_v51 = vmax.f32 %v801_v47, 0.0 }
  0xd7   : > { %872 = vst [vmem:[%s1327_s24 + $0xa0] sm:$0xff] %v840_v48 }
  0xd8   : > { %880 = vst [vmem:[%s1327_s24 + $0xe0] sm:$0xff] %v848_v49  ;;  %v621_v52 = vpop.f32.mrf.mxu2  ;;  %v641_v53 = vpop.f32.mrf.mxu3 }
  0xd9   : > { %857 = vst [vmem:[%s1327_s24 + $0x28] sm:$0xff] %v825_v50  ;;  %v773_v54 = vmul.f32 %v1312_v24, %v621_v52  ;;  %v781_v55 = vmul.f32 %v1312_v24, %v641_v53  ;;  %v584_v56 = vpop.f32.mrf.mxu0  ;;  %v604_v57 = vpop.f32.mrf.mxu1 }
  0xda   : > { %865 = vst [vmem:[%s1327_s24 + $0x68] sm:$0xff] %v833_v51  ;;  %v758_v58 = vmul.f32 %v1312_v24, %v584_v56  ;;  %v766_v59 = vmul.f32 %v1312_v24, %v604_v57 }
  0xdb   : > { %v809_v60 = vadd.f32 %v1317_v25, %v773_v54  ;;  %v817_v61 = vadd.f32 %v1317_v25, %v781_v55 }
  0xdc   : > { %v794_v62 = vadd.f32 %v1317_v25, %v758_v58  ;;  %v802_v63 = vadd.f32 %v1317_v25, %v766_v59 }
  0xdd   : > { %v841_v0 = vmax.f32 %v809_v60, 0.0  ;;  %v849_v1 = vmax.f32 %v817_v61, 0.0 }
  0xde   : > { %v826_v2 = vmax.f32 %v794_v62, 0.0  ;;  %v834_v3 = vmax.f32 %v802_v63, 0.0 }
  0xdf   : > { %873 = vst [vmem:[%s1327_s24 + $0xa8] sm:$0xff] %v841_v0 }
  0xe0   : > { %881 = vst [vmem:[%s1327_s24 + $0xe8] sm:$0xff] %v849_v1  ;;  %v624_v4 = vpop.f32.mrf.mxu2  ;;  %v644_v5 = vpop.f32.mrf.mxu3 }
  0xe1   : > { %858 = vst [vmem:[%s1327_s24 + $0x30] sm:$0xff] %v826_v2  ;;  %v774_v6 = vmul.f32 %v1312_v24, %v624_v4  ;;  %v782_v7 = vmul.f32 %v1312_v24, %v644_v5  ;;  %v586_v8 = vpop.f32.mrf.mxu0  ;;  %v606_v9 = vpop.f32.mrf.mxu1 }
  0xe2   : > { %866 = vst [vmem:[%s1327_s24 + $0x70] sm:$0xff] %v834_v3  ;;  %v759_v10 = vmul.f32 %v1312_v24, %v586_v8  ;;  %v767_v11 = vmul.f32 %v1312_v24, %v606_v9 }
  0xe3   : > { %v810_v12 = vadd.f32 %v1317_v25, %v774_v6  ;;  %v818_v13 = vadd.f32 %v1317_v25, %v782_v7 }
  0xe4   : > { %v795_v14 = vadd.f32 %v1317_v25, %v759_v10  ;;  %v803_v15 = vadd.f32 %v1317_v25, %v767_v11 }
  0xe5   : > { %v842_v16 = vmax.f32 %v810_v12, 0.0  ;;  %v850_v17 = vmax.f32 %v818_v13, 0.0 }
  0xe6   : > { %v827_v18 = vmax.f32 %v795_v14, 0.0  ;;  %v835_v19 = vmax.f32 %v803_v15, 0.0 }
  0xe7   : > { %874 = vst [vmem:[%s1327_s24 + $0xb0] sm:$0xff] %v842_v16 }
  0xe8   : > { %882 = vst [vmem:[%s1327_s24 + $0xf0] sm:$0xff] %v850_v17  ;;  %v626_v20 = vpop.f32.mrf.mxu2  ;;  %v646_v21 = vpop.f32.mrf.mxu3 }
  0xe9   : > { %859 = vst [vmem:[%s1327_s24 + $0x38] sm:$0xff] %v827_v18  ;;  %v775_v22 = vmul.f32 %v1312_v24, %v626_v20  ;;  %v783_v23 = vmul.f32 %v1312_v24, %v646_v21 }
  0xea   : > { %867 = vst [vmem:[%s1327_s24 + $0x78] sm:$0xff] %v835_v19 }
  0xeb   : > { %v811_v26 = vadd.f32 %v1317_v25, %v775_v22  ;;  %v819_v27 = vadd.f32 %v1317_v25, %v783_v23 }
  0xed   : > { %v843_v28 = vmax.f32 %v811_v26, 0.0  ;;  %v851_v29 = vmax.f32 %v819_v27, 0.0 }
  0xef   : > { %875 = vst [vmem:[%s1327_s24 + $0xb8] sm:$0xff] %v843_v28 }
  0xf0   : > { %883 = vst [vmem:[%s1327_s24 + $0xf8] sm:$0xff] %v851_v29 }
  0xf1 PF: > { %s14_s17 = sadd.s32 1, %s1213_s17   ;;  %s1435_s15 = smov %s1209_s16 }
  0xf2   : > { %p11_p5 = scmp.ge.s32.totalorder %s14_s17, 4   ;;  %s1436_s16 = smov %s1438_s18 }
  0xf4   :  { %13 = sbr.rel (!%p11_p5) target bundleno = 2 (0x2), region = 83 }

// kernel: _lambda_.42
= control target key start
LH: loop header
LB: loop body
LE: loop exit
PB: predicated region body
PF: predicated region fallthrough
CT: control target
= control target key end

     0   :  { %s626_s1 = inlined_call_operand.vmem [shape: bf16[128,128], index: 1, kind: input, shape index: {}]   ;;  %s627_s2 = inlined_call_operand.vmem [shape: f32[1,128], index: 2, kind: input, shape index: {}]   ;;  %s628_s3 = inlined_call_operand.vmem [shape: f32[1,128], index: 3, kind: input, shape index: {}]   ;;  %s629_s0 = inlined_call_operand.vmem [shape: bf16[128,128], index: 0, kind: input, shape index: {}]   ;;  %s630_s4 = inlined_call_operand.vmem [shape: f32[128,128], index: 4, kind: output, shape index: {}]  }
   0x1   :  { %v436_v0 = vld [vmem:[%s626_s1 + $0x38] sm:$0xff]  ;;  %v435_v1 = vld [vmem:[%s626_s1 + $0x30] sm:$0xff]  ;;  %v434_v2 = vld [vmem:[%s626_s1 + $0x28] sm:$0xff] }
   0x2   :  { %181 = vmatpush.bf16.msra.mxu0 %v436_v0  ;;  %437 = vmatpush.bf16.msra.mxu1 %v436_v0  ;;  %v433_v3 = vld [vmem:[%s626_s1 + $0x20] sm:$0xff]  ;;  %v432_v4 = vld [vmem:[%s626_s1 + $0x18] sm:$0xff]  ;;  %v431_v5 = vld [vmem:[%s626_s1 + $0x10] sm:$0xff] }
   0x3   :  { %438 = vmatpush.bf16.msra.mxu2 %v436_v0  ;;  %439 = vmatpush.bf16.msra.mxu3 %v436_v0  ;;  %v430_v6 = vld [vmem:[%s626_s1 + $0x8] sm:$0xff]  ;;  %v429_v7 = vld [vmem:[%s626_s1] sm:$0xff]  ;;  %v423_v9 = vld [vmem:[%s629_s0 + $0x10] sm:$0xff] }
   0x4   :  { %v421_v8 = vld [vmem:[%s629_s0] sm:$0xff]  ;;  %v427_v11 = vld [vmem:[%s629_s0 + $0x30] sm:$0xff]  ;;  %v422_v12 = vld [vmem:[%s629_s0 + $0x8] sm:$0xff] }
   0x5   :  { %v425_v10 = vld [vmem:[%s629_s0 + $0x20] sm:$0xff]  ;;  %v424_v13 = vld [vmem:[%s629_s0 + $0x18] sm:$0xff]  ;;  %v426_v14 = vld [vmem:[%s629_s0 + $0x28] sm:$0xff] }
   0x6   :  { %182 = vmatpush.bf16.msra.mxu0 %v435_v1  ;;  %440 = vmatpush.bf16.msra.mxu1 %v435_v1  ;;  %v428_v15 = vld [vmem:[%s629_s0 + $0x38] sm:$0xff]  ;;  %v539_v16 = vld [vmem:[%s627_s2] ss:$0 sm:$0xff] }
   0x7   :  { %441 = vmatpush.bf16.msra.mxu2 %v435_v1  ;;  %442 = vmatpush.bf16.msra.mxu3 %v435_v1  ;;  %v544_v17 = vld [vmem:[%s628_s3] ss:$0 sm:$0xff] }
   0xa   :  { %183 = vmatpush.bf16.msra.mxu0 %v434_v2  ;;  %443 = vmatpush.bf16.msra.mxu1 %v434_v2 }
   0xb   :  { %444 = vmatpush.bf16.msra.mxu2 %v434_v2  ;;  %445 = vmatpush.bf16.msra.mxu3 %v434_v2 }
   0xe   :  { %184 = vmatpush.bf16.msra.mxu0 %v433_v3  ;;  %446 = vmatpush.bf16.msra.mxu1 %v433_v3 }
   0xf   :  { %447 = vmatpush.bf16.msra.mxu2 %v433_v3  ;;  %448 = vmatpush.bf16.msra.mxu3 %v433_v3 }
  0x12   :  { %185 = vmatpush.bf16.msra.mxu0 %v432_v4  ;;  %449 = vmatpush.bf16.msra.mxu1 %v432_v4 }
  0x13   :  { %450 = vmatpush.bf16.msra.mxu2 %v432_v4  ;;  %451 = vmatpush.bf16.msra.mxu3 %v432_v4 }
  0x16   :  { %186 = vmatpush.bf16.msra.mxu0 %v431_v5  ;;  %452 = vmatpush.bf16.msra.mxu1 %v431_v5 }
  0x17   :  { %453 = vmatpush.bf16.msra.mxu2 %v431_v5  ;;  %454 = vmatpush.bf16.msra.mxu3 %v431_v5 }
  0x1a   :  { %187 = vmatpush.bf16.msra.mxu0 %v430_v6  ;;  %455 = vmatpush.bf16.msra.mxu1 %v430_v6 }
  0x1b   :  { %456 = vmatpush.bf16.msra.mxu2 %v430_v6  ;;  %457 = vmatpush.bf16.msra.mxu3 %v430_v6 }
  0x1e   :  { %188 = vmatpush.bf16.msra.mxu0 %v429_v7  ;;  %458 = vmatpush.bf16.msra.mxu1 %v429_v7 }
  0x1f   :  { %459 = vmatpush.bf16.msra.mxu2 %v429_v7  ;;  %460 = vmatpush.bf16.msra.mxu3 %v429_v7 }
  0x21   :  { %189 = vmatmul.bf16.vlgmr.msra.gmra.mxu0 %v421_v8  ;;  %199 = vmatmul.bf16.vlgmr.msra.gmra.mxu1 %v423_v9 }
  0x22   :  { %209 = vmatmul.bf16.vlgmr.msra.gmra.mxu2 %v425_v10  ;;  %219 = vmatmul.bf16.vlgmr.msra.gmra.mxu3 %v427_v11 }
  0x31   :  { %194 = vmatmul.bf16.gmra.mxu0 %v422_v12  ;;  %204 = vmatmul.bf16.gmra.mxu1 %v424_v13 }
  0x32   :  { %214 = vmatmul.bf16.gmra.mxu2 %v426_v14  ;;  %224 = vmatmul.bf16.gmra.mxu3 %v428_v15 }
  0x9e   :  { %v190_v18 = vpop.f32.mrf.mxu0  ;;  %v200_v19 = vpop.f32.mrf.mxu1 }
  0x9f   :  { %v285_v20 = vmul.f32 %v539_v16, %v190_v18  ;;  %v289_v21 = vmul.f32 %v539_v16, %v200_v19 }
  0xa1   :  { %v305_v22 = vadd.f32 %v544_v17, %v285_v20  ;;  %v309_v23 = vadd.f32 %v544_v17, %v289_v21 }
  0xa3   :  { %v321_v24 = vmax.f32 %v305_v22, 0.0  ;;  %v325_v25 = vmax.f32 %v309_v23, 0.0 }
  0xa5   :  { %337 = vst [vmem:[%s630_s4] sm:$0xff] %v321_v24  ;;  %v210_v26 = vpop.f32.mrf.mxu2  ;;  %v220_v27 = vpop.f32.mrf.mxu3 }
  0xa6   :  { %341 = vst [vmem:[%s630_s4 + $0x20] sm:$0xff] %v325_v25  ;;  %v293_v28 = vmul.f32 %v539_v16, %v210_v26  ;;  %v297_v29 = vmul.f32 %v539_v16, %v220_v27  ;;  %v192_v30 = vpop.f32.mrf.mxu0  ;;  %v202_v31 = vpop.f32.mrf.mxu1 }
  0xa7   :  { %v286_v32 = vmul.f32 %v539_v16, %v192_v30  ;;  %v290_v33 = vmul.f32 %v539_v16, %v202_v31 }
  0xa8   :  { %v313_v34 = vadd.f32 %v544_v17, %v293_v28  ;;  %v317_v35 = vadd.f32 %v544_v17, %v297_v29 }
  0xa9   :  { %v306_v36 = vadd.f32 %v544_v17, %v286_v32  ;;  %v310_v37 = vadd.f32 %v544_v17, %v290_v33 }
  0xaa   :  { %v329_v38 = vmax.f32 %v313_v34, 0.0  ;;  %v333_v39 = vmax.f32 %v317_v35, 0.0 }
  0xab   :  { %v322_v40 = vmax.f32 %v306_v36, 0.0  ;;  %v326_v41 = vmax.f32 %v310_v37, 0.0 }
  0xac   :  { %345 = vst [vmem:[%s630_s4 + $0x40] sm:$0xff] %v329_v38 }
  0xad   :  { %349 = vst [vmem:[%s630_s4 + $0x60] sm:$0xff] %v333_v39  ;;  %v212_v42 = vpop.f32.mrf.mxu2  ;;  %v222_v43 = vpop.f32.mrf.mxu3 }
  0xae   :  { %338 = vst [vmem:[%s630_s4 + $0x8] sm:$0xff] %v322_v40  ;;  %v294_v44 = vmul.f32 %v539_v16, %v212_v42  ;;  %v298_v45 = vmul.f32 %v539_v16, %v222_v43  ;;  %v195_v46 = vpop.f32.mrf.mxu0  ;;  %v205_v47 = vpop.f32.mrf.mxu1 }
  0xaf   :  { %342 = vst [vmem:[%s630_s4 + $0x28] sm:$0xff] %v326_v41  ;;  %v287_v48 = vmul.f32 %v539_v16, %v195_v46  ;;  %v291_v49 = vmul.f32 %v539_v16, %v205_v47 }
  0xb0   :  { %v314_v50 = vadd.f32 %v544_v17, %v294_v44  ;;  %v318_v51 = vadd.f32 %v544_v17, %v298_v45 }
  0xb1   :  { %v307_v52 = vadd.f32 %v544_v17, %v287_v48  ;;  %v311_v53 = vadd.f32 %v544_v17, %v291_v49 }
  0xb2   :  { %v330_v54 = vmax.f32 %v314_v50, 0.0  ;;  %v334_v55 = vmax.f32 %v318_v51, 0.0 }
  0xb3   :  { %v323_v56 = vmax.f32 %v307_v52, 0.0  ;;  %v327_v57 = vmax.f32 %v311_v53, 0.0 }
  0xb4   :  { %346 = vst [vmem:[%s630_s4 + $0x48] sm:$0xff] %v330_v54 }
  0xb5   :  { %350 = vst [vmem:[%s630_s4 + $0x68] sm:$0xff] %v334_v55  ;;  %v215_v58 = vpop.f32.mrf.mxu2  ;;  %v225_v59 = vpop.f32.mrf.mxu3 }
  0xb6   :  { %339 = vst [vmem:[%s630_s4 + $0x10] sm:$0xff] %v323_v56  ;;  %v295_v60 = vmul.f32 %v539_v16, %v215_v58  ;;  %v299_v61 = vmul.f32 %v539_v16, %v225_v59  ;;  %v197_v62 = vpop.f32.mrf.mxu0  ;;  %v207_v63 = vpop.f32.mrf.mxu1 }
  0xb7   :  { %343 = vst [vmem:[%s630_s4 + $0x30] sm:$0xff] %v327_v57  ;;  %v288_v0 = vmul.f32 %v539_v16, %v197_v62  ;;  %v292_v1 = vmul.f32 %v539_v16, %v207_v63 }
  0xb8   :  { %v315_v2 = vadd.f32 %v544_v17, %v295_v60  ;;  %v319_v3 = vadd.f32 %v544_v17, %v299_v61 }
  0xb9   :  { %v308_v4 = vadd.f32 %v544_v17, %v288_v0  ;;  %v312_v5 = vadd.f32 %v544_v17, %v292_v1 }
  0xba   :  { %v331_v6 = vmax.f32 %v315_v2, 0.0  ;;  %v335_v7 = vmax.f32 %v319_v3, 0.0 }
  0xbb   :  { %v324_v8 = vmax.f32 %v308_v4, 0.0  ;;  %v328_v9 = vmax.f32 %v312_v5, 0.0 }
  0xbc   :  { %347 = vst [vmem:[%s630_s4 + $0x50] sm:$0xff] %v331_v6 }
  0xbd   :  { %351 = vst [vmem:[%s630_s4 + $0x70] sm:$0xff] %v335_v7  ;;  %v217_v10 = vpop.f32.mrf.mxu2  ;;  %v227_v11 = vpop.f32.mrf.mxu3 }
  0xbe   :  { %340 = vst [vmem:[%s630_s4 + $0x18] sm:$0xff] %v324_v8  ;;  %v296_v12 = vmul.f32 %v539_v16, %v217_v10  ;;  %v300_v13 = vmul.f32 %v539_v16, %v227_v11 }
  0xbf   :  { %344 = vst [vmem:[%s630_s4 + $0x38] sm:$0xff] %v328_v9 }
  0xc0   :  { %v316_v14 = vadd.f32 %v544_v17, %v296_v12  ;;  %v320_v15 = vadd.f32 %v544_v17, %v300_v13 }
  0xc2   :  { %v332_v18 = vmax.f32 %v316_v14, 0.0  ;;  %v336_v19 = vmax.f32 %v320_v15, 0.0 }
  0xc4   :  { %348 = vst [vmem:[%s630_s4 + $0x58] sm:$0xff] %v332_v18 }
  0xc5   :  { %352 = vst [vmem:[%s630_s4 + $0x78] sm:$0xff] %v336_v19 }

// kernel: _lambda_.43
= control target key start
LH: loop header
LB: loop body
LE: loop exit
PB: predicated region body
PF: predicated region fallthrough
CT: control target
= control target key end

     0   :  { %s304_s1 = inlined_call_operand.vmem [shape: bf16[128,128], index: 1, kind: input, shape index: {}]   ;;  %s305_s2 = inlined_call_operand.vmem [shape: f32[1,128], index: 2, kind: input, shape index: {}]   ;;  %s306_s3 = inlined_call_operand.vmem [shape: f32[1,128], index: 3, kind: input, shape index: {}]   ;;  %s307_s0 = inlined_call_operand.vmem [shape: bf16[32,128], index: 0, kind: input, shape index: {}]   ;;  %s308_s4 = inlined_call_operand.vmem [shape: f32[32,128], index: 4, kind: output, shape index: {}]  }
   0x1   :  { %v220_v0 = vld [vmem:[%s304_s1 + $0x38] sm:$0xff]  ;;  %v219_v1 = vld [vmem:[%s304_s1 + $0x30] sm:$0xff]  ;;  %v218_v2 = vld [vmem:[%s304_s1 + $0x28] sm:$0xff] }
   0x2   :  { %109 = vmatpush.bf16.msra.mxu0 %v220_v0  ;;  %221 = vmatpush.bf16.msra.mxu1 %v220_v0  ;;  %v217_v3 = vld [vmem:[%s304_s1 + $0x20] sm:$0xff]  ;;  %v216_v4 = vld [vmem:[%s304_s1 + $0x18] sm:$0xff]  ;;  %v215_v5 = vld [vmem:[%s304_s1 + $0x10] sm:$0xff] }
   0x3   :  { %v214_v6 = vld [vmem:[%s304_s1 + $0x8] sm:$0xff]  ;;  %v213_v7 = vld [vmem:[%s304_s1] sm:$0xff] }
   0x4   :  { %v211_v8 = vld [vmem:[%s307_s0] sm:$0xff]  ;;  %v212_v9 = vld [vmem:[%s307_s0 + $0x8] sm:$0xff] }
   0x5   :  { %v229_v10 = vld [vmem:[%s305_s2] ss:$0 sm:$0xff] }
   0x6   :  { %110 = vmatpush.bf16.msra.mxu0 %v219_v1  ;;  %222 = vmatpush.bf16.msra.mxu1 %v219_v1  ;;  %v230_v11 = vld [vmem:[%s306_s3] ss:$0 sm:$0xff] }
   0xa   :  { %111 = vmatpush.bf16.msra.mxu0 %v218_v2  ;;  %223 = vmatpush.bf16.msra.mxu1 %v218_v2 }
   0xe   :  { %112 = vmatpush.bf16.msra.mxu0 %v217_v3  ;;  %224 = vmatpush.bf16.msra.mxu1 %v217_v3 }
  0x12   :  { %113 = vmatpush.bf16.msra.mxu0 %v216_v4  ;;  %225 = vmatpush.bf16.msra.mxu1 %v216_v4 }
  0x16   :  { %114 = vmatpush.bf16.msra.mxu0 %v215_v5  ;;  %226 = vmatpush.bf16.msra.mxu1 %v215_v5 }
  0x1a   :  { %115 = vmatpush.bf16.msra.mxu0 %v214_v6  ;;  %227 = vmatpush.bf16.msra.mxu1 %v214_v6 }
  0x1e   :  { %116 = vmatpush.bf16.msra.mxu0 %v213_v7  ;;  %228 = vmatpush.bf16.msra.mxu1 %v213_v7 }
  0x21   :  { %117 = vmatmul.bf16.vlgmr.msra.gmra.mxu0 %v211_v8  ;;  %122 = vmatmul.bf16.vlgmr.msra.gmra.mxu1 %v212_v9 }
  0x9e   :  { %v118_v12 = vpop.f32.mrf.mxu0  ;;  %v123_v13 = vpop.f32.mrf.mxu1 }
  0x9f   :  { %v147_v14 = vmul.f32 %v229_v10, %v118_v12  ;;  %v149_v15 = vmul.f32 %v229_v10, %v123_v13 }
  0xa1   :  { %v155_v16 = vadd.f32 %v230_v11, %v147_v14  ;;  %v157_v17 = vadd.f32 %v230_v11, %v149_v15 }
  0xa3   :  { %v159_v18 = vmax.f32 %v155_v16, 0.0  ;;  %v161_v19 = vmax.f32 %v157_v17, 0.0 }
  0xa5   :  { %163 = vst [vmem:[%s308_s4] sm:$0xff] %v159_v18 }
  0xa6   :  { %165 = vst [vmem:[%s308_s4 + $0x10] sm:$0xff] %v161_v19  ;;  %v120_v20 = vpop.f32.mrf.mxu0  ;;  %v125_v21 = vpop.f32.mrf.mxu1 }
  0xa7   :  { %v148_v22 = vmul.f32 %v229_v10, %v120_v20  ;;  %v150_v23 = vmul.f32 %v229_v10, %v125_v21 }
  0xa9   :  { %v156_v24 = vadd.f32 %v230_v11, %v148_v22  ;;  %v158_v25 = vadd.f32 %v230_v11, %v150_v23 }
  0xab   :  { %v160_v26 = vmax.f32 %v156_v24, 0.0  ;;  %v162_v27 = vmax.f32 %v158_v25, 0.0 }
  0xad   :  { %164 = vst [vmem:[%s308_s4 + $0x8] sm:$0xff] %v160_v26 }
  0xae   :  { %166 = vst [vmem:[%s308_s4 + $0x18] sm:$0xff] %v162_v27 }

// kernel: _lambda_.47
= control target key start
LH: loop header
LB: loop body
LE: loop exit
PB: predicated region body
PF: predicated region fallthrough
CT: control target
= control target key end

     0   :  { %s1386_s18 = smov 0   ;;  %s1388_s19 = smov 0   ;;  %s1613_s0 = inlined_call_operand.vmem [shape: bf16[512,128], index: 0, kind: input, shape index: {}]   ;;  %s1614_s1 = inlined_call_operand.vmem [shape: bf16[128,128], index: 1, kind: input, shape index: {}]   ;;  %s1615_s2 = inlined_call_operand.vmem [shape: f32[1,128], index: 2, kind: input, shape index: {}]   ;;  %s1616_s3 = inlined_call_operand.vmem [shape: f32[1,128], index: 3, kind: input, shape index: {}]   ;;  %s1617_s4 = inlined_call_operand.vmem [shape: f32[512,128], index: 4, kind: input, shape index: {}]   ;;  %s1618_s5 = inlined_call_operand.vmem [shape: f32[512,128], index: 5, kind: output, shape index: {}]  }
   0x1   :  { %s1390_s20 = smov 0  }
   0x2 LB: > { %s34_s21 = sadd.s32 1, %s1350_s19  ;;  %p1153_p0 = scmp.ge.s32.totalorder %s1354_s20, 1  ;;  %s1354_s20 = sphi %s1390_s20, %s15_s20   ;;  %s1350_s19 = sphi %s1388_s19, %s1620_s19   ;;  %s1346_s18 = sphi %s1386_s18, %s1619_s18  }
   0x3   : > { %p36_p1 = scmp.ge.s32.totalorder %s34_s21, 2  ;;  %p262_p2 = scmp.lt.s32.totalorder %s1354_s20, 3 }
   0x5   : > { %s1622_s21 = smov (%p36_p1, %s34_s21), 0  ;;  %p263_p3 = pnand %p1153_p0, %p262_p2 }
   0x6   : > { %s1154_s30 = sshll.u32 (!%p263_p3), %s1346_s18, 5 }
   0x7   : > { %266 = sbr.rel (%p263_p3) target bundleno = 243 (0xf3), region = 40  ;;  %p319_p4 = scmp.lt.s32.totalorder (!%p263_p3), %s1154_s30, 63 }
   0xc   : > { %v1281_v0 = vld [vmem:[%s1614_s1 + $0x38] sm:$0xff]  ;;  %v1280_v1 = vld [vmem:[%s1614_s1 + $0x30] sm:$0xff]  ;;  %v1279_v2 = vld [vmem:[%s1614_s1 + $0x28] sm:$0xff]  ;;  %s1624_s30 = smov (!%p319_p4, %s1154_s30), 63 }
   0xd   : > { %620 = vmatpush.bf16.msra.mxu0 %v1281_v0  ;;  %1282 = vmatpush.bf16.msra.mxu1 %v1281_v0  ;;  %v1278_v3 = vld [vmem:[%s1614_s1 + $0x20] sm:$0xff]  ;;  %v1277_v4 = vld [vmem:[%s1614_s1 + $0x18] sm:$0xff]  ;;  %v1276_v5 = vld [vmem:[%s1614_s1 + $0x10] sm:$0xff]  ;;  %s1155_s12 = sshll.u32 %s1624_s30, 2  ;;  %s1157_s23 = sshll.u32 %s1624_s30, 3 }
   0xe   : > { %1283 = vmatpush.bf16.msra.mxu2 %v1281_v0  ;;  %1284 = vmatpush.bf16.msra.mxu3 %v1281_v0  ;;  %v1275_v6 = vld [vmem:[%s1614_s1 + $0x8] sm:$0xff]  ;;  %v1274_v7 = vld [vmem:[%s1614_s1] sm:$0xff]  ;;  %s1437_s17 = scalar_lea.vmem %s1613_s0, %s1155_s12  ;;  %s1469_s28 = scalar_lea.vmem %s1617_s4, %s1157_s23 }
   0xf   : > { %v1258_v8 = vld [vmem:[%s1437_s17] sm:$0xff]  ;;  %v1259_v12 = vld [vmem:[%s1437_s17 + $0x8] sm:$0xff]  ;;  %v1260_v16 = vld [vmem:[%s1437_s17 + $0x10] sm:$0xff]  ;;  %s1480_s6 = scalar_lea.vmem %s1618_s5, %s1157_s23 }
  0x10   : > { %v1262_v9 = vld [vmem:[%s1437_s17 + $0x20] sm:$0xff]  ;;  %v1263_v13 = vld [vmem:[%s1437_s17 + $0x28] sm:$0xff]  ;;  %v1264_v17 = vld [vmem:[%s1437_s17 + $0x30] sm:$0xff] }
  0x11   : > { %621 = vmatpush.bf16.msra.mxu0 %v1280_v1  ;;  %1285 = vmatpush.bf16.msra.mxu1 %v1280_v1  ;;  %v1266_v10 = vld [vmem:[%s1437_s17 + $0x40] sm:$0xff]  ;;  %v1267_v14 = vld [vmem:[%s1437_s17 + $0x48] sm:$0xff]  ;;  %v1268_v18 = vld [vmem:[%s1437_s17 + $0x50] sm:$0xff] }
  0x12   : > { %1286 = vmatpush.bf16.msra.mxu2 %v1280_v1  ;;  %1287 = vmatpush.bf16.msra.mxu3 %v1280_v1  ;;  %v1270_v11 = vld [vmem:[%s1437_s17 + $0x60] sm:$0xff]  ;;  %v1271_v15 = vld [vmem:[%s1437_s17 + $0x68] sm:$0xff]  ;;  %v1272_v19 = vld [vmem:[%s1437_s17 + $0x70] sm:$0xff] }
  0x13   : > { %v1261_v20 = vld [vmem:[%s1437_s17 + $0x18] sm:$0xff]  ;;  %v1458_v24 = vld [vmem:[%s1615_s2] ss:$0 sm:$0xff]  ;;  %v913_v54 = vld [vmem:[%s1469_s28 + $0x8] sm:$0xff] }
  0x14   : > { %v1265_v21 = vld [vmem:[%s1437_s17 + $0x38] sm:$0xff]  ;;  %v1464_v25 = vld [vmem:[%s1616_s3] ss:$0 sm:$0xff]  ;;  %v921_v55 = vld [vmem:[%s1469_s28 + $0x48] sm:$0xff] }
  0x15   : > { %622 = vmatpush.bf16.msra.mxu0 %v1279_v2  ;;  %1288 = vmatpush.bf16.msra.mxu1 %v1279_v2  ;;  %v1269_v22 = vld [vmem:[%s1437_s17 + $0x58] sm:$0xff]  ;;  %v912_v32 = vld [vmem:[%s1469_s28] sm:$0xff] }
  0x16   : > { %1289 = vmatpush.bf16.msra.mxu2 %v1279_v2  ;;  %1290 = vmatpush.bf16.msra.mxu3 %v1279_v2  ;;  %v1273_v23 = vld [vmem:[%s1437_s17 + $0x78] sm:$0xff]  ;;  %v920_v33 = vld [vmem:[%s1469_s28 + $0x40] sm:$0xff] }
  0x17   : > { %v928_v48 = vld [vmem:[%s1469_s28 + $0x80] sm:$0xff] }
  0x18   : > { %v936_v49 = vld [vmem:[%s1469_s28 + $0xc0] sm:$0xff] }
  0x19   : > { %623 = vmatpush.bf16.msra.mxu0 %v1278_v3  ;;  %1291 = vmatpush.bf16.msra.mxu1 %v1278_v3 }
  0x1a   : > { %1292 = vmatpush.bf16.msra.mxu2 %v1278_v3  ;;  %1293 = vmatpush.bf16.msra.mxu3 %v1278_v3 }
  0x1d   : > { %624 = vmatpush.bf16.msra.mxu0 %v1277_v4  ;;  %1294 = vmatpush.bf16.msra.mxu1 %v1277_v4 }
  0x1e   : > { %1295 = vmatpush.bf16.msra.mxu2 %v1277_v4  ;;  %1296 = vmatpush.bf16.msra.mxu3 %v1277_v4 }
  0x21   : > { %625 = vmatpush.bf16.msra.mxu0 %v1276_v5  ;;  %1297 = vmatpush.bf16.msra.mxu1 %v1276_v5 }
  0x22   : > { %1298 = vmatpush.bf16.msra.mxu2 %v1276_v5  ;;  %1299 = vmatpush.bf16.msra.mxu3 %v1276_v5 }
  0x25   : > { %626 = vmatpush.bf16.msra.mxu0 %v1275_v6  ;;  %1300 = vmatpush.bf16.msra.mxu1 %v1275_v6 }
  0x26   : > { %1301 = vmatpush.bf16.msra.mxu2 %v1275_v6  ;;  %1302 = vmatpush.bf16.msra.mxu3 %v1275_v6 }
  0x29   : > { %627 = vmatpush.bf16.msra.mxu0 %v1274_v7  ;;  %1303 = vmatpush.bf16.msra.mxu1 %v1274_v7 }
  0x2a   : > { %1304 = vmatpush.bf16.msra.mxu2 %v1274_v7  ;;  %1305 = vmatpush.bf16.msra.mxu3 %v1274_v7 }
  0x2c   : > { %628 = vmatmul.bf16.vlgmr.msra.gmra.mxu0 %v1258_v8  ;;  %648 = vmatmul.bf16.vlgmr.msra.gmra.mxu1 %v1262_v9  ;;  %v929_v8 = vld [vmem:[%s1469_s28 + $0x88] sm:$0xff] }
  0x2d   : > { %668 = vmatmul.bf16.vlgmr.msra.gmra.mxu2 %v1266_v10  ;;  %688 = vmatmul.bf16.vlgmr.msra.gmra.mxu3 %v1270_v11  ;;  %v937_v9 = vld [vmem:[%s1469_s28 + $0xc8] sm:$0xff] }
  0x3c   : > { %633 = vmatmul.bf16.gmra.mxu0 %v1259_v12  ;;  %653 = vmatmul.bf16.gmra.mxu1 %v1263_v13 }
  0x3d   : > { %673 = vmatmul.bf16.gmra.mxu2 %v1267_v14  ;;  %693 = vmatmul.bf16.gmra.mxu3 %v1271_v15  ;;  %v914_v14 = vld [vmem:[%s1469_s28 + $0x10] sm:$0xff] }
  0x3e   : > { %v922_v15 = vld [vmem:[%s1469_s28 + $0x50] sm:$0xff] }
  0x4c   : > { %638 = vmatmul.bf16.gmra.mxu0 %v1260_v16  ;;  %658 = vmatmul.bf16.gmra.mxu1 %v1264_v17 }
  0x4d   : > { %678 = vmatmul.bf16.gmra.mxu2 %v1268_v18  ;;  %698 = vmatmul.bf16.gmra.mxu3 %v1272_v19 }
  0x5c   : > { %643 = vmatmul.bf16.gmra.mxu0 %v1261_v20  ;;  %663 = vmatmul.bf16.gmra.mxu1 %v1265_v21 }
  0x5d   : > { %683 = vmatmul.bf16.gmra.mxu2 %v1269_v22  ;;  %703 = vmatmul.bf16.gmra.mxu3 %v1273_v23 }
  0xa9   : > { %v629_v26 = vpop.f32.mrf.mxu0  ;;  %v649_v27 = vpop.f32.mrf.mxu1 }
  0xaa   : > { %v812_v28 = vmul.f32 %v1458_v24, %v629_v26  ;;  %v820_v29 = vmul.f32 %v1458_v24, %v649_v27 }
  0xac   : > { %v848_v30 = vadd.f32 %v1464_v25, %v812_v28  ;;  %v856_v31 = vadd.f32 %v1464_v25, %v820_v29 }
  0xae   : > { %v880_v34 = vmax.f32 %v848_v30, 0.0  ;;  %v888_v35 = vmax.f32 %v856_v31, 0.0 }
  0xb0   : > { %v944_v36 = vadd.f32 %v912_v32, %v880_v34  ;;  %v952_v37 = vadd.f32 %v920_v33, %v888_v35  ;;  %v669_v38 = vpop.f32.mrf.mxu2  ;;  %v689_v39 = vpop.f32.mrf.mxu3  ;;  %v930_v34 = vld [vmem:[%s1469_s28 + $0x90] sm:$0xff] }
  0xb1   : > { %v828_v40 = vmul.f32 %v1458_v24, %v669_v38  ;;  %v836_v41 = vmul.f32 %v1458_v24, %v689_v39  ;;  %v631_v42 = vpop.f32.mrf.mxu0  ;;  %v651_v43 = vpop.f32.mrf.mxu1  ;;  %v938_v35 = vld [vmem:[%s1469_s28 + $0xd0] sm:$0xff] }
  0xb2   : > { %976 = vst [vmem:[%s1480_s6] sm:$0xff] %v944_v36  ;;  %v813_v44 = vmul.f32 %v1458_v24, %v631_v42  ;;  %v821_v45 = vmul.f32 %v1458_v24, %v651_v43 }
  0xb3   : > { %984 = vst [vmem:[%s1480_s6 + $0x40] sm:$0xff] %v952_v37  ;;  %v864_v46 = vadd.f32 %v1464_v25, %v828_v40  ;;  %v872_v47 = vadd.f32 %v1464_v25, %v836_v41  ;;  %v915_v40 = vld [vmem:[%s1469_s28 + $0x18] sm:$0xff] }
  0xb4   : > { %v849_v50 = vadd.f32 %v1464_v25, %v813_v44  ;;  %v857_v51 = vadd.f32 %v1464_v25, %v821_v45  ;;  %v923_v41 = vld [vmem:[%s1469_s28 + $0x58] sm:$0xff] }
  0xb5   : > { %v896_v52 = vmax.f32 %v864_v46, 0.0  ;;  %v904_v53 = vmax.f32 %v872_v47, 0.0 }
  0xb6   : > { %v881_v56 = vmax.f32 %v849_v50, 0.0  ;;  %v889_v57 = vmax.f32 %v857_v51, 0.0 }
  0xb7   : > { %v960_v58 = vadd.f32 %v928_v48, %v896_v52  ;;  %v968_v59 = vadd.f32 %v936_v49, %v904_v53 }
  0xb8   : > { %v945_v60 = vadd.f32 %v913_v54, %v881_v56  ;;  %v953_v61 = vadd.f32 %v921_v55, %v889_v57  ;;  %v671_v62 = vpop.f32.mrf.mxu2  ;;  %v691_v63 = vpop.f32.mrf.mxu3 }
  0xb9   : > { %992 = vst [vmem:[%s1480_s6 + $0x80] sm:$0xff] %v960_v58  ;;  %v829_v0 = vmul.f32 %v1458_v24, %v671_v62  ;;  %v837_v1 = vmul.f32 %v1458_v24, %v691_v63  ;;  %v634_v2 = vpop.f32.mrf.mxu0  ;;  %v654_v3 = vpop.f32.mrf.mxu1  ;;  %v931_v58 = vld [vmem:[%s1469_s28 + $0x98] sm:$0xff] }
  0xba   : > { %1000 = vst [vmem:[%s1480_s6 + $0xc0] sm:$0xff] %v968_v59  ;;  %v814_v4 = vmul.f32 %v1458_v24, %v634_v2  ;;  %v822_v5 = vmul.f32 %v1458_v24, %v654_v3  ;;  %v939_v59 = vld [vmem:[%s1469_s28 + $0xd8] sm:$0xff] }
  0xbb   : > { %977 = vst [vmem:[%s1480_s6 + $0x8] sm:$0xff] %v945_v60  ;;  %v865_v6 = vadd.f32 %v1464_v25, %v829_v0  ;;  %v873_v7 = vadd.f32 %v1464_v25, %v837_v1  ;;  %v916_v0 = vld [vmem:[%s1469_s28 + $0x20] sm:$0xff] }
  0xbc   : > { %985 = vst [vmem:[%s1480_s6 + $0x48] sm:$0xff] %v953_v61  ;;  %v850_v10 = vadd.f32 %v1464_v25, %v814_v4  ;;  %v858_v11 = vadd.f32 %v1464_v25, %v822_v5  ;;  %v924_v1 = vld [vmem:[%s1469_s28 + $0x60] sm:$0xff] }
  0xbd   : > { %v897_v12 = vmax.f32 %v865_v6, 0.0  ;;  %v905_v13 = vmax.f32 %v873_v7, 0.0 }
  0xbe   : > { %v882_v16 = vmax.f32 %v850_v10, 0.0  ;;  %v890_v17 = vmax.f32 %v858_v11, 0.0 }
  0xbf   : > { %v961_v18 = vadd.f32 %v929_v8, %v897_v12  ;;  %v969_v19 = vadd.f32 %v937_v9, %v905_v13 }
  0xc0   : > { %v946_v20 = vadd.f32 %v914_v14, %v882_v16  ;;  %v954_v21 = vadd.f32 %v922_v15, %v890_v17  ;;  %v674_v22 = vpop.f32.mrf.mxu2  ;;  %v694_v23 = vpop.f32.mrf.mxu3 }
  0xc1   : > { %993 = vst [vmem:[%s1480_s6 + $0x88] sm:$0xff] %v961_v18  ;;  %v830_v26 = vmul.f32 %v1458_v24, %v674_v22  ;;  %v838_v27 = vmul.f32 %v1458_v24, %v694_v23  ;;  %v636_v28 = vpop.f32.mrf.mxu0  ;;  %v656_v29 = vpop.f32.mrf.mxu1  ;;  %v932_v18 = vld [vmem:[%s1469_s28 + $0xa0] sm:$0xff] }
  0xc2   : > { %1001 = vst [vmem:[%s1480_s6 + $0xc8] sm:$0xff] %v969_v19  ;;  %v815_v30 = vmul.f32 %v1458_v24, %v636_v28  ;;  %v823_v31 = vmul.f32 %v1458_v24, %v656_v29  ;;  %v940_v19 = vld [vmem:[%s1469_s28 + $0xe0] sm:$0xff] }
  0xc3   : > { %978 = vst [vmem:[%s1480_s6 + $0x10] sm:$0xff] %v946_v20  ;;  %v866_v32 = vadd.f32 %v1464_v25, %v830_v26  ;;  %v874_v33 = vadd.f32 %v1464_v25, %v838_v27  ;;  %v917_v26 = vld [vmem:[%s1469_s28 + $0x28] sm:$0xff] }
  0xc4   : > { %986 = vst [vmem:[%s1480_s6 + $0x50] sm:$0xff] %v954_v21  ;;  %v851_v36 = vadd.f32 %v1464_v25, %v815_v30  ;;  %v859_v37 = vadd.f32 %v1464_v25, %v823_v31  ;;  %v925_v27 = vld [vmem:[%s1469_s28 + $0x68] sm:$0xff] }
  0xc5   : > { %v898_v38 = vmax.f32 %v866_v32, 0.0  ;;  %v906_v39 = vmax.f32 %v874_v33, 0.0 }
  0xc6   : > { %v883_v42 = vmax.f32 %v851_v36, 0.0  ;;  %v891_v43 = vmax.f32 %v859_v37, 0.0 }
  0xc7   : > { %v962_v44 = vadd.f32 %v930_v34, %v898_v38  ;;  %v970_v45 = vadd.f32 %v938_v35, %v906_v39 }
  0xc8   : > { %v947_v46 = vadd.f32 %v915_v40, %v883_v42  ;;  %v955_v47 = vadd.f32 %v923_v41, %v891_v43  ;;  %v676_v48 = vpop.f32.mrf.mxu2  ;;  %v696_v49 = vpop.f32.mrf.mxu3 }
  0xc9   : > { %994 = vst [vmem:[%s1480_s6 + $0x90] sm:$0xff] %v962_v44  ;;  %v831_v50 = vmul.f32 %v1458_v24, %v676_v48  ;;  %v839_v51 = vmul.f32 %v1458_v24, %v696_v49  ;;  %v639_v52 = vpop.f32.mrf.mxu0  ;;  %v659_v53 = vpop.f32.mrf.mxu1  ;;  %v933_v44 = vld [vmem:[%s1469_s28 + $0xa8] sm:$0xff] }
  0xca   : > { %1002 = vst [vmem:[%s1480_s6 + $0xd0] sm:$0xff] %v970_v45  ;;  %v816_v54 = vmul.f32 %v1458_v24, %v639_v52  ;;  %v824_v55 = vmul.f32 %v1458_v24, %v659_v53  ;;  %v941_v45 = vld [vmem:[%s1469_s28 + $0xe8] sm:$0xff] }
  0xcb   : > { %979 = vst [vmem:[%s1480_s6 + $0x18] sm:$0xff] %v947_v46  ;;  %v867_v56 = vadd.f32 %v1464_v25, %v831_v50  ;;  %v875_v57 = vadd.f32 %v1464_v25, %v839_v51  ;;  %v918_v50 = vld [vmem:[%s1469_s28 + $0x30] sm:$0xff] }
  0xcc   : > { %987 = vst [vmem:[%s1480_s6 + $0x58] sm:$0xff] %v955_v47  ;;  %v852_v60 = vadd.f32 %v1464_v25, %v816_v54  ;;  %v860_v61 = vadd.f32 %v1464_v25, %v824_v55  ;;  %v926_v51 = vld [vmem:[%s1469_s28 + $0x70] sm:$0xff] }
  0xcd   : > { %v899_v62 = vmax.f32 %v867_v56, 0.0  ;;  %v907_v63 = vmax.f32 %v875_v57, 0.0 }
  0xce   : > { %v884_v2 = vmax.f32 %v852_v60, 0.0  ;;  %v892_v3 = vmax.f32 %v860_v61, 0.0 }
  0xcf   : > { %v963_v4 = vadd.f32 %v931_v58, %v899_v62  ;;  %v971_v5 = vadd.f32 %v939_v59, %v907_v63 }
  0xd0   : > { %v948_v6 = vadd.f32 %v916_v0, %v884_v2  ;;  %v956_v7 = vadd.f32 %v924_v1, %v892_v3  ;;  %v679_v8 = vpop.f32.mrf.mxu2  ;;  %v699_v9 = vpop.f32.mrf.mxu3 }
  0xd1   : > { %995 = vst [vmem:[%s1480_s6 + $0x98] sm:$0xff] %v963_v4  ;;  %v832_v10 = vmul.f32 %v1458_v24, %v679_v8  ;;  %v840_v11 = vmul.f32 %v1458_v24, %v699_v9  ;;  %v641_v12 = vpop.f32.mrf.mxu0  ;;  %v661_v13 = vpop.f32.mrf.mxu1  ;;  %v934_v4 = vld [vmem:[%s1469_s28 + $0xb0] sm:$0xff] }
  0xd2   : > { %1003 = vst [vmem:[%s1480_s6 + $0xd8] sm:$0xff] %v971_v5  ;;  %v817_v14 = vmul.f32 %v1458_v24, %v641_v12  ;;  %v825_v15 = vmul.f32 %v1458_v24, %v661_v13  ;;  %v942_v5 = vld [vmem:[%s1469_s28 + $0xf0] sm:$0xff] }
  0xd3   : > { %980 = vst [vmem:[%s1480_s6 + $0x20] sm:$0xff] %v948_v6  ;;  %v868_v16 = vadd.f32 %v1464_v25, %v832_v10  ;;  %v876_v17 = vadd.f32 %v1464_v25, %v840_v11  ;;  %v919_v10 = vld [vmem:[%s1469_s28 + $0x38] sm:$0xff] }
  0xd4   : > { %988 = vst [vmem:[%s1480_s6 + $0x60] sm:$0xff] %v956_v7  ;;  %v853_v20 = vadd.f32 %v1464_v25, %v817_v14  ;;  %v861_v21 = vadd.f32 %v1464_v25, %v825_v15  ;;  %v927_v11 = vld [vmem:[%s1469_s28 + $0x78] sm:$0xff] }
  0xd5   : > { %v900_v22 = vmax.f32 %v868_v16, 0.0  ;;  %v908_v23 = vmax.f32 %v876_v17, 0.0 }
  0xd6   : > { %v885_v28 = vmax.f32 %v853_v20, 0.0  ;;  %v893_v29 = vmax.f32 %v861_v21, 0.0 }
  0xd7   : > { %v964_v30 = vadd.f32 %v932_v18, %v900_v22  ;;  %v972_v31 = vadd.f32 %v940_v19, %v908_v23 }
  0xd8   : > { %v949_v32 = vadd.f32 %v917_v26, %v885_v28  ;;  %v957_v33 = vadd.f32 %v925_v27, %v893_v29  ;;  %v681_v34 = vpop.f32.mrf.mxu2  ;;  %v701_v35 = vpop.f32.mrf.mxu3  ;;  %v935_v26 = vld [vmem:[%s1469_s28 + $0xb8] sm:$0xff] }
  0xd9   : > { %996 = vst [vmem:[%s1480_s6 + $0xa0] sm:$0xff] %v964_v30  ;;  %v833_v36 = vmul.f32 %v1458_v24, %v681_v34  ;;  %v841_v37 = vmul.f32 %v1458_v24, %v701_v35  ;;  %v644_v38 = vpop.f32.mrf.mxu0  ;;  %v664_v39 = vpop.f32.mrf.mxu1  ;;  %v943_v27 = vld [vmem:[%s1469_s28 + $0xf8] sm:$0xff] }
  0xda   : > { %1004 = vst [vmem:[%s1480_s6 + $0xe0] sm:$0xff] %v972_v31  ;;  %v818_v40 = vmul.f32 %v1458_v24, %v644_v38  ;;  %v826_v41 = vmul.f32 %v1458_v24, %v664_v39 }
  0xdb   : > { %981 = vst [vmem:[%s1480_s6 + $0x28] sm:$0xff] %v949_v32  ;;  %v869_v42 = vadd.f32 %v1464_v25, %v833_v36  ;;  %v877_v43 = vadd.f32 %v1464_v25, %v841_v37 }
  0xdc   : > { %989 = vst [vmem:[%s1480_s6 + $0x68] sm:$0xff] %v957_v33  ;;  %v854_v46 = vadd.f32 %v1464_v25, %v818_v40  ;;  %v862_v47 = vadd.f32 %v1464_v25, %v826_v41 }
  0xdd   : > { %v901_v48 = vmax.f32 %v869_v42, 0.0  ;;  %v909_v49 = vmax.f32 %v877_v43, 0.0 }
  0xde   : > { %v886_v52 = vmax.f32 %v854_v46, 0.0  ;;  %v894_v53 = vmax.f32 %v862_v47, 0.0 }
  0xdf   : > { %v965_v54 = vadd.f32 %v933_v44, %v901_v48  ;;  %v973_v55 = vadd.f32 %v941_v45, %v909_v49 }
  0xe0   : > { %v950_v56 = vadd.f32 %v918_v50, %v886_v52  ;;  %v958_v57 = vadd.f32 %v926_v51, %v894_v53  ;;  %v684_v58 = vpop.f32.mrf.mxu2  ;;  %v704_v59 = vpop.f32.mrf.mxu3 }
  0xe1   : > { %997 = vst [vmem:[%s1480_s6 + $0xa8] sm:$0xff] %v965_v54  ;;  %v834_v60 = vmul.f32 %v1458_v24, %v684_v58  ;;  %v842_v61 = vmul.f32 %v1458_v24, %v704_v59  ;;  %v646_v62 = vpop.f32.mrf.mxu0  ;;  %v666_v63 = vpop.f32.mrf.mxu1 }
  0xe2   : > { %1005 = vst [vmem:[%s1480_s6 + $0xe8] sm:$0xff] %v973_v55  ;;  %v819_v0 = vmul.f32 %v1458_v24, %v646_v62  ;;  %v827_v1 = vmul.f32 %v1458_v24, %v666_v63 }
  0xe3   : > { %982 = vst [vmem:[%s1480_s6 + $0x30] sm:$0xff] %v950_v56  ;;  %v870_v2 = vadd.f32 %v1464_v25, %v834_v60  ;;  %v878_v3 = vadd.f32 %v1464_v25, %v842_v61 }
  0xe4   : > { %990 = vst [vmem:[%s1480_s6 + $0x70] sm:$0xff] %v958_v57  ;;  %v855_v6 = vadd.f32 %v1464_v25, %v819_v0  ;;  %v863_v7 = vadd.f32 %v1464_v25, %v827_v1 }
  0xe5   : > { %v902_v8 = vmax.f32 %v870_v2, 0.0  ;;  %v910_v9 = vmax.f32 %v878_v3, 0.0 }
  0xe6   : > { %v887_v12 = vmax.f32 %v855_v6, 0.0  ;;  %v895_v13 = vmax.f32 %v863_v7, 0.0 }
  0xe7   : > { %v966_v14 = vadd.f32 %v934_v4, %v902_v8  ;;  %v974_v15 = vadd.f32 %v942_v5, %v910_v9 }
  0xe8   : > { %v951_v16 = vadd.f32 %v919_v10, %v887_v12  ;;  %v959_v17 = vadd.f32 %v927_v11, %v895_v13  ;;  %v686_v18 = vpop.f32.mrf.mxu2  ;;  %v706_v19 = vpop.f32.mrf.mxu3 }
  0xe9   : > { %998 = vst [vmem:[%s1480_s6 + $0xb0] sm:$0xff] %v966_v14  ;;  %v835_v20 = vmul.f32 %v1458_v24, %v686_v18  ;;  %v843_v21 = vmul.f32 %v1458_v24, %v706_v19 }
  0xea   : > { %1006 = vst [vmem:[%s1480_s6 + $0xf0] sm:$0xff] %v974_v15 }
  0xeb   : > { %983 = vst [vmem:[%s1480_s6 + $0x38] sm:$0xff] %v951_v16  ;;  %v871_v22 = vadd.f32 %v1464_v25, %v835_v20  ;;  %v879_v23 = vadd.f32 %v1464_v25, %v843_v21 }
  0xec   : > { %991 = vst [vmem:[%s1480_s6 + $0x78] sm:$0xff] %v959_v17 }
  0xed   : > { %v903_v28 = vmax.f32 %v871_v22, 0.0  ;;  %v911_v29 = vmax.f32 %v879_v23, 0.0 }
  0xef   : > { %v967_v30 = vadd.f32 %v935_v26, %v903_v28  ;;  %v975_v31 = vadd.f32 %v943_v27, %v911_v29 }
  0xf1   : > { %999 = vst [vmem:[%s1480_s6 + $0xb8] sm:$0xff] %v967_v30 }
  0xf2   : > { %1007 = vst [vmem:[%s1480_s6 + $0xf8] sm:$0xff] %v975_v31 }
  0xf3 PF: > { %s15_s20 = sadd.s32 1, %s1354_s20   ;;  %s1619_s18 = smov %s1350_s19 }
  0xf4   : > { %p12_p5 = scmp.ge.s32.totalorder %s15_s20, 4   ;;  %s1620_s19 = smov %s1622_s21 }
  0xf6   :  { %14 = sbr.rel (!%p12_p5) target bundleno = 2 (0x2), region = 90 }

// kernel: _lambda_.53
= control target key start
LH: loop header
LB: loop body
LE: loop exit
PB: predicated region body
PF: predicated region fallthrough
CT: control target
= control target key end

     0   :  { %s714_s1 = inlined_call_operand.vmem [shape: bf16[128,128], index: 1, kind: input, shape index: {}]   ;;  %s715_s2 = inlined_call_operand.vmem [shape: f32[1,128], index: 2, kind: input, shape index: {}]   ;;  %s716_s3 = inlined_call_operand.vmem [shape: f32[1,128], index: 3, kind: input, shape index: {}]   ;;  %s717_s0 = inlined_call_operand.vmem [shape: bf16[128,128], index: 0, kind: input, shape index: {}]   ;;  %s718_s4 = inlined_call_operand.vmem [shape: f32[128,128], index: 4, kind: input, shape index: {}]   ;;  %s719_s5 = inlined_call_operand.vmem [shape: f32[128,128], index: 5, kind: output, shape index: {}]  }
   0x1   :  { %v471_v0 = vld [vmem:[%s714_s1 + $0x38] sm:$0xff]  ;;  %v470_v1 = vld [vmem:[%s714_s1 + $0x30] sm:$0xff]  ;;  %v469_v2 = vld [vmem:[%s714_s1 + $0x28] sm:$0xff] }
   0x2   :  { %184 = vmatpush.bf16.msra.mxu0 %v471_v0  ;;  %472 = vmatpush.bf16.msra.mxu1 %v471_v0  ;;  %v468_v3 = vld [vmem:[%s714_s1 + $0x20] sm:$0xff]  ;;  %v467_v4 = vld [vmem:[%s714_s1 + $0x18] sm:$0xff]  ;;  %v466_v5 = vld [vmem:[%s714_s1 + $0x10] sm:$0xff] }
   0x3   :  { %473 = vmatpush.bf16.msra.mxu2 %v471_v0  ;;  %474 = vmatpush.bf16.msra.mxu3 %v471_v0  ;;  %v465_v6 = vld [vmem:[%s714_s1 + $0x8] sm:$0xff]  ;;  %v464_v7 = vld [vmem:[%s714_s1] sm:$0xff]  ;;  %v458_v9 = vld [vmem:[%s717_s0 + $0x10] sm:$0xff] }
   0x4   :  { %v456_v8 = vld [vmem:[%s717_s0] sm:$0xff]  ;;  %v462_v11 = vld [vmem:[%s717_s0 + $0x30] sm:$0xff]  ;;  %v457_v12 = vld [vmem:[%s717_s0 + $0x8] sm:$0xff] }
   0x5   :  { %v460_v10 = vld [vmem:[%s717_s0 + $0x20] sm:$0xff]  ;;  %v459_v13 = vld [vmem:[%s717_s0 + $0x18] sm:$0xff]  ;;  %v461_v14 = vld [vmem:[%s717_s0 + $0x28] sm:$0xff] }
   0x6   :  { %185 = vmatpush.bf16.msra.mxu0 %v470_v1  ;;  %475 = vmatpush.bf16.msra.mxu1 %v470_v1  ;;  %v463_v15 = vld [vmem:[%s717_s0 + $0x38] sm:$0xff]  ;;  %v579_v16 = vld [vmem:[%s715_s2] ss:$0 sm:$0xff]  ;;  %v341_v46 = vld [vmem:[%s718_s4 + $0x8] sm:$0xff] }
   0x7   :  { %476 = vmatpush.bf16.msra.mxu2 %v470_v1  ;;  %477 = vmatpush.bf16.msra.mxu3 %v470_v1  ;;  %v584_v17 = vld [vmem:[%s716_s3] ss:$0 sm:$0xff]  ;;  %v345_v47 = vld [vmem:[%s718_s4 + $0x28] sm:$0xff] }
   0x8   :  { %v340_v24 = vld [vmem:[%s718_s4] sm:$0xff]  ;;  %v349_v0 = vld [vmem:[%s718_s4 + $0x48] sm:$0xff] }
   0x9   :  { %v344_v25 = vld [vmem:[%s718_s4 + $0x20] sm:$0xff]  ;;  %v353_v1 = vld [vmem:[%s718_s4 + $0x68] sm:$0xff] }
   0xa   :  { %186 = vmatpush.bf16.msra.mxu0 %v469_v2  ;;  %478 = vmatpush.bf16.msra.mxu1 %v469_v2  ;;  %v348_v40 = vld [vmem:[%s718_s4 + $0x40] sm:$0xff] }
   0xb   :  { %479 = vmatpush.bf16.msra.mxu2 %v469_v2  ;;  %480 = vmatpush.bf16.msra.mxu3 %v469_v2  ;;  %v352_v41 = vld [vmem:[%s718_s4 + $0x60] sm:$0xff] }
   0xe   :  { %187 = vmatpush.bf16.msra.mxu0 %v468_v3  ;;  %481 = vmatpush.bf16.msra.mxu1 %v468_v3 }
   0xf   :  { %482 = vmatpush.bf16.msra.mxu2 %v468_v3  ;;  %483 = vmatpush.bf16.msra.mxu3 %v468_v3 }
  0x12   :  { %188 = vmatpush.bf16.msra.mxu0 %v467_v4  ;;  %484 = vmatpush.bf16.msra.mxu1 %v467_v4 }
  0x13   :  { %485 = vmatpush.bf16.msra.mxu2 %v467_v4  ;;  %486 = vmatpush.bf16.msra.mxu3 %v467_v4 }
  0x16   :  { %189 = vmatpush.bf16.msra.mxu0 %v466_v5  ;;  %487 = vmatpush.bf16.msra.mxu1 %v466_v5 }
  0x17   :  { %488 = vmatpush.bf16.msra.mxu2 %v466_v5  ;;  %489 = vmatpush.bf16.msra.mxu3 %v466_v5 }
  0x1a   :  { %190 = vmatpush.bf16.msra.mxu0 %v465_v6  ;;  %490 = vmatpush.bf16.msra.mxu1 %v465_v6 }
  0x1b   :  { %491 = vmatpush.bf16.msra.mxu2 %v465_v6  ;;  %492 = vmatpush.bf16.msra.mxu3 %v465_v6  ;;  %v342_v6 = vld [vmem:[%s718_s4 + $0x10] sm:$0xff] }
  0x1e   :  { %191 = vmatpush.bf16.msra.mxu0 %v464_v7  ;;  %493 = vmatpush.bf16.msra.mxu1 %v464_v7 }
  0x1f   :  { %494 = vmatpush.bf16.msra.mxu2 %v464_v7  ;;  %495 = vmatpush.bf16.msra.mxu3 %v464_v7  ;;  %v346_v7 = vld [vmem:[%s718_s4 + $0x30] sm:$0xff] }
  0x21   :  { %192 = vmatmul.bf16.vlgmr.msra.gmra.mxu0 %v456_v8  ;;  %202 = vmatmul.bf16.vlgmr.msra.gmra.mxu1 %v458_v9 }
  0x22   :  { %212 = vmatmul.bf16.vlgmr.msra.gmra.mxu2 %v460_v10  ;;  %222 = vmatmul.bf16.vlgmr.msra.gmra.mxu3 %v462_v11 }
  0x31   :  { %197 = vmatmul.bf16.gmra.mxu0 %v457_v12  ;;  %207 = vmatmul.bf16.gmra.mxu1 %v459_v13 }
  0x32   :  { %217 = vmatmul.bf16.gmra.mxu2 %v461_v14  ;;  %227 = vmatmul.bf16.gmra.mxu3 %v463_v15 }
  0x9e   :  { %v193_v18 = vpop.f32.mrf.mxu0  ;;  %v203_v19 = vpop.f32.mrf.mxu1 }
  0x9f   :  { %v288_v20 = vmul.f32 %v579_v16, %v193_v18  ;;  %v292_v21 = vmul.f32 %v579_v16, %v203_v19 }
  0xa1   :  { %v308_v22 = vadd.f32 %v584_v17, %v288_v20  ;;  %v312_v23 = vadd.f32 %v584_v17, %v292_v21 }
  0xa3   :  { %v324_v26 = vmax.f32 %v308_v22, 0.0  ;;  %v328_v27 = vmax.f32 %v312_v23, 0.0 }
  0xa5   :  { %v356_v28 = vadd.f32 %v340_v24, %v324_v26  ;;  %v360_v29 = vadd.f32 %v344_v25, %v328_v27  ;;  %v213_v30 = vpop.f32.mrf.mxu2  ;;  %v223_v31 = vpop.f32.mrf.mxu3  ;;  %v350_v26 = vld [vmem:[%s718_s4 + $0x50] sm:$0xff] }
  0xa6   :  { %v296_v32 = vmul.f32 %v579_v16, %v213_v30  ;;  %v300_v33 = vmul.f32 %v579_v16, %v223_v31  ;;  %v195_v34 = vpop.f32.mrf.mxu0  ;;  %v205_v35 = vpop.f32.mrf.mxu1  ;;  %v354_v27 = vld [vmem:[%s718_s4 + $0x70] sm:$0xff] }
  0xa7   :  { %372 = vst [vmem:[%s719_s5] sm:$0xff] %v356_v28  ;;  %v289_v36 = vmul.f32 %v579_v16, %v195_v34  ;;  %v293_v37 = vmul.f32 %v579_v16, %v205_v35 }
  0xa8   :  { %376 = vst [vmem:[%s719_s5 + $0x20] sm:$0xff] %v360_v29  ;;  %v316_v38 = vadd.f32 %v584_v17, %v296_v32  ;;  %v320_v39 = vadd.f32 %v584_v17, %v300_v33  ;;  %v343_v32 = vld [vmem:[%s718_s4 + $0x18] sm:$0xff] }
  0xa9   :  { %v309_v42 = vadd.f32 %v584_v17, %v289_v36  ;;  %v313_v43 = vadd.f32 %v584_v17, %v293_v37  ;;  %v347_v33 = vld [vmem:[%s718_s4 + $0x38] sm:$0xff] }
  0xaa   :  { %v332_v44 = vmax.f32 %v316_v38, 0.0  ;;  %v336_v45 = vmax.f32 %v320_v39, 0.0 }
  0xab   :  { %v325_v48 = vmax.f32 %v309_v42, 0.0  ;;  %v329_v49 = vmax.f32 %v313_v43, 0.0 }
  0xac   :  { %v364_v50 = vadd.f32 %v348_v40, %v332_v44  ;;  %v368_v51 = vadd.f32 %v352_v41, %v336_v45 }
  0xad   :  { %v357_v52 = vadd.f32 %v341_v46, %v325_v48  ;;  %v361_v53 = vadd.f32 %v345_v47, %v329_v49  ;;  %v215_v54 = vpop.f32.mrf.mxu2  ;;  %v225_v55 = vpop.f32.mrf.mxu3  ;;  %v355_v46 = vld [vmem:[%s718_s4 + $0x78] sm:$0xff] }
  0xae   :  { %380 = vst [vmem:[%s719_s5 + $0x40] sm:$0xff] %v364_v50  ;;  %v297_v56 = vmul.f32 %v579_v16, %v215_v54  ;;  %v301_v57 = vmul.f32 %v579_v16, %v225_v55  ;;  %v198_v58 = vpop.f32.mrf.mxu0  ;;  %v208_v59 = vpop.f32.mrf.mxu1 }
  0xaf   :  { %384 = vst [vmem:[%s719_s5 + $0x60] sm:$0xff] %v368_v51  ;;  %v290_v60 = vmul.f32 %v579_v16, %v198_v58  ;;  %v294_v61 = vmul.f32 %v579_v16, %v208_v59 }
  0xb0   :  { %373 = vst [vmem:[%s719_s5 + $0x8] sm:$0xff] %v357_v52  ;;  %v317_v62 = vadd.f32 %v584_v17, %v297_v56  ;;  %v321_v63 = vadd.f32 %v584_v17, %v301_v57 }
  0xb1   :  { %377 = vst [vmem:[%s719_s5 + $0x28] sm:$0xff] %v361_v53  ;;  %v310_v2 = vadd.f32 %v584_v17, %v290_v60  ;;  %v314_v3 = vadd.f32 %v584_v17, %v294_v61 }
  0xb2   :  { %v333_v4 = vmax.f32 %v317_v62, 0.0  ;;  %v337_v5 = vmax.f32 %v321_v63, 0.0 }
  0xb3   :  { %v326_v8 = vmax.f32 %v310_v2, 0.0  ;;  %v330_v9 = vmax.f32 %v314_v3, 0.0 }
  0xb4   :  { %v365_v10 = vadd.f32 %v349_v0, %v333_v4  ;;  %v369_v11 = vadd.f32 %v353_v1, %v337_v5 }
  0xb5   :  { %v358_v12 = vadd.f32 %v342_v6, %v326_v8  ;;  %v362_v13 = vadd.f32 %v346_v7, %v330_v9  ;;  %v218_v14 = vpop.f32.mrf.mxu2  ;;  %v228_v15 = vpop.f32.mrf.mxu3 }
  0xb6   :  { %381 = vst [vmem:[%s719_s5 + $0x48] sm:$0xff] %v365_v10  ;;  %v298_v18 = vmul.f32 %v579_v16, %v218_v14  ;;  %v302_v19 = vmul.f32 %v579_v16, %v228_v15  ;;  %v200_v20 = vpop.f32.mrf.mxu0  ;;  %v210_v21 = vpop.f32.mrf.mxu1 }
  0xb7   :  { %385 = vst [vmem:[%s719_s5 + $0x68] sm:$0xff] %v369_v11  ;;  %v291_v22 = vmul.f32 %v579_v16, %v200_v20  ;;  %v295_v23 = vmul.f32 %v579_v16, %v210_v21 }
  0xb8   :  { %374 = vst [vmem:[%s719_s5 + $0x10] sm:$0xff] %v358_v12  ;;  %v318_v24 = vadd.f32 %v584_v17, %v298_v18  ;;  %v322_v25 = vadd.f32 %v584_v17, %v302_v19 }
  0xb9   :  { %378 = vst [vmem:[%s719_s5 + $0x30] sm:$0xff] %v362_v13  ;;  %v311_v28 = vadd.f32 %v584_v17, %v291_v22  ;;  %v315_v29 = vadd.f32 %v584_v17, %v295_v23 }
  0xba   :  { %v334_v30 = vmax.f32 %v318_v24, 0.0  ;;  %v338_v31 = vmax.f32 %v322_v25, 0.0 }
  0xbb   :  { %v327_v34 = vmax.f32 %v311_v28, 0.0  ;;  %v331_v35 = vmax.f32 %v315_v29, 0.0 }
  0xbc   :  { %v366_v36 = vadd.f32 %v350_v26, %v334_v30  ;;  %v370_v37 = vadd.f32 %v354_v27, %v338_v31 }
  0xbd   :  { %v359_v38 = vadd.f32 %v343_v32, %v327_v34  ;;  %v363_v39 = vadd.f32 %v347_v33, %v331_v35  ;;  %v220_v40 = vpop.f32.mrf.mxu2  ;;  %v230_v41 = vpop.f32.mrf.mxu3 }
  0xbe   :  { %382 = vst [vmem:[%s719_s5 + $0x50] sm:$0xff] %v366_v36  ;;  %v299_v42 = vmul.f32 %v579_v16, %v220_v40  ;;  %v303_v43 = vmul.f32 %v579_v16, %v230_v41  ;;  %v351_v16 = vld [vmem:[%s718_s4 + $0x58] sm:$0xff] }
  0xbf   :  { %386 = vst [vmem:[%s719_s5 + $0x70] sm:$0xff] %v370_v37 }
  0xc0   :  { %375 = vst [vmem:[%s719_s5 + $0x18] sm:$0xff] %v359_v38  ;;  %v319_v44 = vadd.f32 %v584_v17, %v299_v42  ;;  %v323_v45 = vadd.f32 %v584_v17, %v303_v43 }
  0xc1   :  { %379 = vst [vmem:[%s719_s5 + $0x38] sm:$0xff] %v363_v39 }
  0xc2   :  { %v335_v47 = vmax.f32 %v319_v44, 0.0  ;;  %v339_v48 = vmax.f32 %v323_v45, 0.0 }
  0xc4   :  { %v367_v49 = vadd.f32 %v351_v16, %v335_v47  ;;  %v371_v50 = vadd.f32 %v355_v46, %v339_v48 }
  0xc6   :  { %383 = vst [vmem:[%s719_s5 + $0x58] sm:$0xff] %v367_v49 }
  0xc7   :  { %387 = vst [vmem:[%s719_s5 + $0x78] sm:$0xff] %v371_v50 }

// kernel: _lambda_.61
= control target key start
LH: loop header
LB: loop body
LE: loop exit
PB: predicated region body
PF: predicated region fallthrough
CT: control target
= control target key end

     0   :  { %s332_s1 = inlined_call_operand.vmem [shape: bf16[128,128], index: 1, kind: input, shape index: {}]   ;;  %s333_s2 = inlined_call_operand.vmem [shape: f32[1,128], index: 2, kind: input, shape index: {}]   ;;  %s334_s3 = inlined_call_operand.vmem [shape: f32[1,128], index: 3, kind: input, shape index: {}]   ;;  %s335_s0 = inlined_call_operand.vmem [shape: bf16[32,128], index: 0, kind: input, shape index: {}]   ;;  %s336_s4 = inlined_call_operand.vmem [shape: f32[32,128], index: 4, kind: input, shape index: {}]   ;;  %s337_s5 = inlined_call_operand.vmem [shape: f32[32,128], index: 5, kind: output, shape index: {}]  }
   0x1   :  { %v231_v0 = vld [vmem:[%s332_s1 + $0x38] sm:$0xff]  ;;  %v230_v1 = vld [vmem:[%s332_s1 + $0x30] sm:$0xff]  ;;  %v229_v2 = vld [vmem:[%s332_s1 + $0x28] sm:$0xff] }
   0x2   :  { %112 = vmatpush.bf16.msra.mxu0 %v231_v0  ;;  %232 = vmatpush.bf16.msra.mxu1 %v231_v0  ;;  %v228_v3 = vld [vmem:[%s332_s1 + $0x20] sm:$0xff]  ;;  %v227_v4 = vld [vmem:[%s332_s1 + $0x18] sm:$0xff]  ;;  %v226_v5 = vld [vmem:[%s332_s1 + $0x10] sm:$0xff] }
   0x3   :  { %v225_v6 = vld [vmem:[%s332_s1 + $0x8] sm:$0xff]  ;;  %v224_v7 = vld [vmem:[%s332_s1] sm:$0xff]  ;;  %v168_v19 = vld [vmem:[%s336_s4 + $0x10] sm:$0xff] }
   0x4   :  { %v222_v8 = vld [vmem:[%s335_s0] sm:$0xff]  ;;  %v223_v9 = vld [vmem:[%s335_s0 + $0x8] sm:$0xff]  ;;  %v169_v31 = vld [vmem:[%s336_s4 + $0x18] sm:$0xff] }
   0x5   :  { %v240_v10 = vld [vmem:[%s333_s2] ss:$0 sm:$0xff]  ;;  %v167_v30 = vld [vmem:[%s336_s4 + $0x8] sm:$0xff] }
   0x6   :  { %113 = vmatpush.bf16.msra.mxu0 %v230_v1  ;;  %233 = vmatpush.bf16.msra.mxu1 %v230_v1  ;;  %v241_v11 = vld [vmem:[%s334_s3] ss:$0 sm:$0xff] }
   0x7   :  { %v166_v18 = vld [vmem:[%s336_s4] sm:$0xff] }
   0xa   :  { %114 = vmatpush.bf16.msra.mxu0 %v229_v2  ;;  %234 = vmatpush.bf16.msra.mxu1 %v229_v2 }
   0xe   :  { %115 = vmatpush.bf16.msra.mxu0 %v228_v3  ;;  %235 = vmatpush.bf16.msra.mxu1 %v228_v3 }
  0x12   :  { %116 = vmatpush.bf16.msra.mxu0 %v227_v4  ;;  %236 = vmatpush.bf16.msra.mxu1 %v227_v4 }
  0x16   :  { %117 = vmatpush.bf16.msra.mxu0 %v226_v5  ;;  %237 = vmatpush.bf16.msra.mxu1 %v226_v5 }
  0x1a   :  { %118 = vmatpush.bf16.msra.mxu0 %v225_v6  ;;  %238 = vmatpush.bf16.msra.mxu1 %v225_v6 }
  0x1e   :  { %119 = vmatpush.bf16.msra.mxu0 %v224_v7  ;;  %239 = vmatpush.bf16.msra.mxu1 %v224_v7 }
  0x21   :  { %120 = vmatmul.bf16.vlgmr.msra.gmra.mxu0 %v222_v8  ;;  %125 = vmatmul.bf16.vlgmr.msra.gmra.mxu1 %v223_v9 }
  0x9e   :  { %v121_v12 = vpop.f32.mrf.mxu0  ;;  %v126_v13 = vpop.f32.mrf.mxu1 }
  0x9f   :  { %v150_v14 = vmul.f32 %v240_v10, %v121_v12  ;;  %v152_v15 = vmul.f32 %v240_v10, %v126_v13 }
  0xa1   :  { %v158_v16 = vadd.f32 %v241_v11, %v150_v14  ;;  %v160_v17 = vadd.f32 %v241_v11, %v152_v15 }
  0xa3   :  { %v162_v20 = vmax.f32 %v158_v16, 0.0  ;;  %v164_v21 = vmax.f32 %v160_v17, 0.0 }
  0xa5   :  { %v170_v22 = vadd.f32 %v166_v18, %v162_v20  ;;  %v172_v23 = vadd.f32 %v168_v19, %v164_v21 }
  0xa6   :  { %v123_v24 = vpop.f32.mrf.mxu0  ;;  %v128_v25 = vpop.f32.mrf.mxu1 }
  0xa7   :  { %174 = vst [vmem:[%s337_s5] sm:$0xff] %v170_v22  ;;  %v151_v26 = vmul.f32 %v240_v10, %v123_v24  ;;  %v153_v27 = vmul.f32 %v240_v10, %v128_v25 }
  0xa8   :  { %176 = vst [vmem:[%s337_s5 + $0x10] sm:$0xff] %v172_v23 }
  0xa9   :  { %v159_v28 = vadd.f32 %v241_v11, %v151_v26  ;;  %v161_v29 = vadd.f32 %v241_v11, %v153_v27 }
  0xab   :  { %v163_v32 = vmax.f32 %v159_v28, 0.0  ;;  %v165_v33 = vmax.f32 %v161_v29, 0.0 }
  0xad   :  { %v171_v34 = vadd.f32 %v167_v30, %v163_v32  ;;  %v173_v35 = vadd.f32 %v169_v31, %v165_v33 }
  0xaf   :  { %175 = vst [vmem:[%s337_s5 + $0x8] sm:$0xff] %v171_v34 }
  0xb0   :  { %177 = vst [vmem:[%s337_s5 + $0x18] sm:$0xff] %v173_v35 }

// kernel: _lambda_.62
= control target key start
LH: loop header
LB: loop body
LE: loop exit
PB: predicated region body
PF: predicated region fallthrough
CT: control target
= control target key end

     0   :  { %s939_s1 = inlined_call_operand.vmem [shape: bf16[256,128], index: 1, kind: input, shape index: {}]   ;;  %s940_s0 = inlined_call_operand.vmem [shape: bf16[128,256], index: 0, kind: input, shape index: {}]   ;;  %s941_s2 = inlined_call_operand.vmem [shape: f32[1,128], index: 2, kind: input, shape index: {}]   ;;  %s942_s3 = inlined_call_operand.vmem [shape: f32[1,128], index: 3, kind: input, shape index: {}]   ;;  %s943_s4 = inlined_call_operand.vmem [shape: f32[128,128], index: 4, kind: output, shape index: {}]  }
   0x1   :  { %v653_v0 = vld [vmem:[%s939_s1 + $0x38] sm:$0xff]  ;;  %v652_v2 = vld [vmem:[%s939_s1 + $0x30] sm:$0xff]  ;;  %v651_v4 = vld [vmem:[%s939_s1 + $0x28] sm:$0xff] }
   0x2   :  { %v661_v1 = vld [vmem:[%s939_s1 + $0x78] sm:$0xff]  ;;  %277 = vmatpush.bf16.msra.mxu0 %v653_v0  ;;  %662 = vmatpush.bf16.msra.mxu2 %v653_v0  ;;  %v660_v3 = vld [vmem:[%s939_s1 + $0x70] sm:$0xff]  ;;  %v659_v5 = vld [vmem:[%s939_s1 + $0x68] sm:$0xff] }
   0x3   :  { %326 = vmatpush.bf16.msra.mxu1 %v661_v1  ;;  %670 = vmatpush.bf16.msra.mxu3 %v661_v1  ;;  %v650_v6 = vld [vmem:[%s939_s1 + $0x20] sm:$0xff]  ;;  %v649_v8 = vld [vmem:[%s939_s1 + $0x18] sm:$0xff]  ;;  %v648_v10 = vld [vmem:[%s939_s1 + $0x10] sm:$0xff] }
   0x4   :  { %v658_v7 = vld [vmem:[%s939_s1 + $0x60] sm:$0xff]  ;;  %v657_v9 = vld [vmem:[%s939_s1 + $0x58] sm:$0xff]  ;;  %v656_v11 = vld [vmem:[%s939_s1 + $0x50] sm:$0xff] }
   0x5   :  { %v647_v12 = vld [vmem:[%s939_s1 + $0x8] sm:$0xff]  ;;  %v646_v14 = vld [vmem:[%s939_s1] sm:$0xff]  ;;  %v512_v28 = vld [vmem:[%s940_s0 + $0x10] sm:$0xf] }
   0x6   :  { %278 = vmatpush.bf16.msra.mxu0 %v652_v2  ;;  %663 = vmatpush.bf16.msra.mxu2 %v652_v2  ;;  %v655_v13 = vld [vmem:[%s939_s1 + $0x48] sm:$0xff]  ;;  %v654_v15 = vld [vmem:[%s939_s1 + $0x40] sm:$0xff]  ;;  %v633_v29 = vld [vmem:[%s940_s0 + $0x14] sm:$0xf0] }
   0x7   :  { %327 = vmatpush.bf16.msra.mxu1 %v660_v3  ;;  %671 = vmatpush.bf16.msra.mxu3 %v660_v3  ;;  %v504_v16 = vld [vmem:[%s940_s0] sm:$0xf]  ;;  %v631_v17 = vld [vmem:[%s940_s0 + $0x4] sm:$0xf0]  ;;  %v630_v20 = vld [vmem:[%s940_s0 + $0x4] sm:$0xf]  ;;  %v513_v36 = vor.u32 %v633_v29, %v512_v28 }
   0x8   :  { %v536_v18 = vld [vmem:[%s940_s0 + $0x40] sm:$0xf]  ;;  %v639_v19 = vld [vmem:[%s940_s0 + $0x44] sm:$0xf0]  ;;  %v506_v21 = vld [vmem:[%s940_s0 + $0x8] sm:$0xf0]  ;;  %v505_v24 = vor.u32 %v631_v17, %v504_v16 }
   0x9   :  { %v638_v22 = vld [vmem:[%s940_s0 + $0x44] sm:$0xf]  ;;  %v538_v23 = vld [vmem:[%s940_s0 + $0x48] sm:$0xf0]  ;;  %v537_v25 = vor.u32 %v639_v19, %v536_v18  ;;  %v509_v26 = vor.u32 %v630_v20, %v506_v21  ;;  %v544_v30 = vld [vmem:[%s940_s0 + $0x50] sm:$0xf] }
   0xa   :  { %279 = vmatpush.bf16.msra.mxu0 %v651_v4  ;;  %664 = vmatpush.bf16.msra.mxu2 %v651_v4  ;;  %v541_v27 = vor.u32 %v638_v22, %v538_v23  ;;  %v641_v31 = vld [vmem:[%s940_s0 + $0x54] sm:$0xf0]  ;;  %v632_v32 = vld [vmem:[%s940_s0 + $0x14] sm:$0xf]  ;;  %v514_v33 = vld [vmem:[%s940_s0 + $0x18] sm:$0xf0] }
   0xb   :  { %328 = vmatpush.bf16.msra.mxu1 %v659_v5  ;;  %672 = vmatpush.bf16.msra.mxu3 %v659_v5  ;;  %v640_v34 = vld [vmem:[%s940_s0 + $0x54] sm:$0xf]  ;;  %v546_v35 = vld [vmem:[%s940_s0 + $0x58] sm:$0xf0]  ;;  %v545_v37 = vor.u32 %v641_v31, %v544_v30  ;;  %v517_v38 = vor.u32 %v632_v32, %v514_v33  ;;  %v520_v40 = vld [vmem:[%s940_s0 + $0x20] sm:$0xf] }
   0xc   :  { %v549_v39 = vor.u32 %v640_v34, %v546_v35  ;;  %v635_v41 = vld [vmem:[%s940_s0 + $0x24] sm:$0xf0]  ;;  %v552_v42 = vld [vmem:[%s940_s0 + $0x60] sm:$0xf]  ;;  %v634_v44 = vld [vmem:[%s940_s0 + $0x24] sm:$0xf] }
   0xd   :  { %v643_v43 = vld [vmem:[%s940_s0 + $0x64] sm:$0xf0]  ;;  %v522_v45 = vld [vmem:[%s940_s0 + $0x28] sm:$0xf0]  ;;  %v642_v46 = vld [vmem:[%s940_s0 + $0x64] sm:$0xf]  ;;  %v521_v48 = vor.u32 %v635_v41, %v520_v40 }
   0xe   :  { %280 = vmatpush.bf16.msra.mxu0 %v650_v6  ;;  %665 = vmatpush.bf16.msra.mxu2 %v650_v6  ;;  %v554_v47 = vld [vmem:[%s940_s0 + $0x68] sm:$0xf0]  ;;  %v553_v49 = vor.u32 %v643_v43, %v552_v42  ;;  %v525_v50 = vor.u32 %v634_v44, %v522_v45  ;;  %v528_v52 = vld [vmem:[%s940_s0 + $0x30] sm:$0xf]  ;;  %v637_v53 = vld [vmem:[%s940_s0 + $0x34] sm:$0xf0] }
   0xf   :  { %329 = vmatpush.bf16.msra.mxu1 %v658_v7  ;;  %673 = vmatpush.bf16.msra.mxu3 %v658_v7  ;;  %v557_v51 = vor.u32 %v642_v46, %v554_v47  ;;  %v560_v54 = vld [vmem:[%s940_s0 + $0x70] sm:$0xf]  ;;  %v645_v55 = vld [vmem:[%s940_s0 + $0x74] sm:$0xf0]  ;;  %v636_v56 = vld [vmem:[%s940_s0 + $0x34] sm:$0xf]  ;;  %v529_v60 = vor.u32 %v637_v53, %v528_v52 }
  0x10   :  { %v530_v57 = vld [vmem:[%s940_s0 + $0x38] sm:$0xf0]  ;;  %v644_v58 = vld [vmem:[%s940_s0 + $0x74] sm:$0xf]  ;;  %v561_v61 = vor.u32 %v645_v55, %v560_v54  ;;  %v852_v1 = vld [vmem:[%s941_s2] ss:$0 sm:$0xff] }
  0x11   :  { %v562_v59 = vld [vmem:[%s940_s0 + $0x78] sm:$0xf0]  ;;  %v533_v62 = vor.u32 %v636_v56, %v530_v57  ;;  %v857_v4 = vld [vmem:[%s942_s3] ss:$0 sm:$0xff] }
  0x12   :  { %281 = vmatpush.bf16.msra.mxu0 %v649_v8  ;;  %666 = vmatpush.bf16.msra.mxu2 %v649_v8  ;;  %v565_v63 = vor.u32 %v644_v58, %v562_v59 }
  0x13   :  { %330 = vmatpush.bf16.msra.mxu1 %v657_v9  ;;  %674 = vmatpush.bf16.msra.mxu3 %v657_v9 }
  0x16   :  { %282 = vmatpush.bf16.msra.mxu0 %v648_v10  ;;  %667 = vmatpush.bf16.msra.mxu2 %v648_v10 }
  0x17   :  { %331 = vmatpush.bf16.msra.mxu1 %v656_v11  ;;  %675 = vmatpush.bf16.msra.mxu3 %v656_v11 }
  0x1a   :  { %283 = vmatpush.bf16.msra.mxu0 %v647_v12  ;;  %668 = vmatpush.bf16.msra.mxu2 %v647_v12 }
  0x1b   :  { %332 = vmatpush.bf16.msra.mxu1 %v655_v13  ;;  %676 = vmatpush.bf16.msra.mxu3 %v655_v13 }
  0x1e   :  { %284 = vmatpush.bf16.msra.mxu0 %v646_v14  ;;  %669 = vmatpush.bf16.msra.mxu2 %v646_v14 }
  0x1f   :  { %333 = vmatpush.bf16.msra.mxu1 %v654_v15  ;;  %677 = vmatpush.bf16.msra.mxu3 %v654_v15 }
  0x21   :  { %285 = vmatmul.bf16.vlgmr.msra.gmra.mxu0 %v505_v24  ;;  %305 = vmatmul.bf16.vlgmr.msra.gmra.mxu2 %v537_v25 }
  0x22   :  { %334 = vmatmul.bf16.vlgmr.msra.gmra.mxu1 %v509_v26  ;;  %354 = vmatmul.bf16.vlgmr.msra.gmra.mxu3 %v541_v27 }
  0x31   :  { %290 = vmatmul.bf16.gmra.mxu0 %v513_v36  ;;  %310 = vmatmul.bf16.gmra.mxu2 %v545_v37 }
  0x32   :  { %339 = vmatmul.bf16.gmra.mxu1 %v517_v38  ;;  %359 = vmatmul.bf16.gmra.mxu3 %v549_v39 }
  0x41   :  { %295 = vmatmul.bf16.gmra.mxu0 %v521_v48  ;;  %315 = vmatmul.bf16.gmra.mxu2 %v553_v49 }
  0x42   :  { %344 = vmatmul.bf16.gmra.mxu1 %v525_v50  ;;  %364 = vmatmul.bf16.gmra.mxu3 %v557_v51 }
  0x51   :  { %300 = vmatmul.bf16.gmra.mxu0 %v529_v60  ;;  %320 = vmatmul.bf16.gmra.mxu2 %v561_v61 }
  0x52   :  { %349 = vmatmul.bf16.gmra.mxu1 %v533_v62  ;;  %369 = vmatmul.bf16.gmra.mxu3 %v565_v63 }
  0x9e   :  { %v286_v0 = vpop.f32.mrf.mxu0 }
  0x9f   :  { %v335_v2 = vpop.f32.mrf.mxu1 }
  0xa0   :  { %v336_v3 = vadd.f32 %v335_v2, %v286_v0 }
  0xa2   :  { %v430_v5 = vmul.f32 %v852_v1, %v336_v3 }
  0xa4   :  { %v450_v6 = vadd.f32 %v857_v4, %v430_v5  ;;  %v306_v7 = vpop.f32.mrf.mxu2 }
  0xa5   :  { %v355_v8 = vpop.f32.mrf.mxu3 }
  0xa6   :  { %v466_v9 = vmax.f32 %v450_v6, 0.0  ;;  %v356_v10 = vadd.f32 %v355_v8, %v306_v7  ;;  %v288_v11 = vpop.f32.mrf.mxu0 }
  0xa7   :  { %v337_v12 = vpop.f32.mrf.mxu1 }
  0xa8   :  { %482 = vst [vmem:[%s943_s4] sm:$0xff] %v466_v9  ;;  %v438_v13 = vmul.f32 %v852_v1, %v356_v10  ;;  %v338_v14 = vadd.f32 %v337_v12, %v288_v11 }
  0xaa   :  { %v458_v15 = vadd.f32 %v857_v4, %v438_v13  ;;  %v431_v16 = vmul.f32 %v852_v1, %v338_v14 }
  0xac   :  { %v474_v17 = vmax.f32 %v458_v15, 0.0  ;;  %v451_v18 = vadd.f32 %v857_v4, %v431_v16  ;;  %v308_v19 = vpop.f32.mrf.mxu2 }
  0xad   :  { %v357_v20 = vpop.f32.mrf.mxu3 }
  0xae   :  { %490 = vst [vmem:[%s943_s4 + $0x40] sm:$0xff] %v474_v17  ;;  %v467_v21 = vmax.f32 %v451_v18, 0.0  ;;  %v358_v22 = vadd.f32 %v357_v20, %v308_v19  ;;  %v291_v23 = vpop.f32.mrf.mxu0 }
  0xaf   :  { %v340_v24 = vpop.f32.mrf.mxu1 }
  0xb0   :  { %483 = vst [vmem:[%s943_s4 + $0x8] sm:$0xff] %v467_v21  ;;  %v439_v25 = vmul.f32 %v852_v1, %v358_v22  ;;  %v341_v26 = vadd.f32 %v340_v24, %v291_v23 }
  0xb2   :  { %v459_v27 = vadd.f32 %v857_v4, %v439_v25  ;;  %v432_v28 = vmul.f32 %v852_v1, %v341_v26 }
  0xb4   :  { %v475_v29 = vmax.f32 %v459_v27, 0.0  ;;  %v452_v30 = vadd.f32 %v857_v4, %v432_v28  ;;  %v311_v31 = vpop.f32.mrf.mxu2 }
  0xb5   :  { %v360_v32 = vpop.f32.mrf.mxu3 }
  0xb6   :  { %491 = vst [vmem:[%s943_s4 + $0x48] sm:$0xff] %v475_v29  ;;  %v468_v33 = vmax.f32 %v452_v30, 0.0  ;;  %v361_v34 = vadd.f32 %v360_v32, %v311_v31  ;;  %v293_v35 = vpop.f32.mrf.mxu0 }
  0xb7   :  { %v342_v36 = vpop.f32.mrf.mxu1 }
  0xb8   :  { %484 = vst [vmem:[%s943_s4 + $0x10] sm:$0xff] %v468_v33  ;;  %v440_v37 = vmul.f32 %v852_v1, %v361_v34  ;;  %v343_v38 = vadd.f32 %v342_v36, %v293_v35 }
  0xba   :  { %v460_v39 = vadd.f32 %v857_v4, %v440_v37  ;;  %v433_v40 = vmul.f32 %v852_v1, %v343_v38 }
  0xbc   :  { %v476_v41 = vmax.f32 %v460_v39, 0.0  ;;  %v453_v42 = vadd.f32 %v857_v4, %v433_v40  ;;  %v313_v43 = vpop.f32.mrf.mxu2 }
  0xbd   :  { %v362_v44 = vpop.f32.mrf.mxu3 }
  0xbe   :  { %492 = vst [vmem:[%s943_s4 + $0x50] sm:$0xff] %v476_v41  ;;  %v469_v45 = vmax.f32 %v453_v42, 0.0  ;;  %v363_v46 = vadd.f32 %v362_v44, %v313_v43  ;;  %v296_v47 = vpop.f32.mrf.mxu0 }
  0xbf   :  { %v345_v48 = vpop.f32.mrf.mxu1 }
  0xc0   :  { %485 = vst [vmem:[%s943_s4 + $0x18] sm:$0xff] %v469_v45  ;;  %v441_v49 = vmul.f32 %v852_v1, %v363_v46  ;;  %v346_v50 = vadd.f32 %v345_v48, %v296_v47 }
  0xc2   :  { %v461_v51 = vadd.f32 %v857_v4, %v441_v49  ;;  %v434_v52 = vmul.f32 %v852_v1, %v346_v50 }
  0xc4   :  { %v477_v53 = vmax.f32 %v461_v51, 0.0  ;;  %v454_v54 = vadd.f32 %v857_v4, %v434_v52  ;;  %v316_v55 = vpop.f32.mrf.mxu2 }
  0xc5   :  { %v365_v56 = vpop.f32.mrf.mxu3 }
  0xc6   :  { %493 = vst [vmem:[%s943_s4 + $0x58] sm:$0xff] %v477_v53  ;;  %v470_v57 = vmax.f32 %v454_v54, 0.0  ;;  %v366_v58 = vadd.f32 %v365_v56, %v316_v55  ;;  %v298_v59 = vpop.f32.mrf.mxu0 }
  0xc7   :  { %v347_v60 = vpop.f32.mrf.mxu1 }
  0xc8   :  { %486 = vst [vmem:[%s943_s4 + $0x20] sm:$0xff] %v470_v57  ;;  %v442_v61 = vmul.f32 %v852_v1, %v366_v58  ;;  %v348_v62 = vadd.f32 %v347_v60, %v298_v59 }
  0xca   :  { %v462_v63 = vadd.f32 %v857_v4, %v442_v61  ;;  %v435_v0 = vmul.f32 %v852_v1, %v348_v62 }
  0xcc   :  { %v478_v2 = vmax.f32 %v462_v63, 0.0  ;;  %v455_v3 = vadd.f32 %v857_v4, %v435_v0  ;;  %v318_v5 = vpop.f32.mrf.mxu2 }
  0xcd   :  { %v367_v6 = vpop.f32.mrf.mxu3 }
  0xce   :  { %494 = vst [vmem:[%s943_s4 + $0x60] sm:$0xff] %v478_v2  ;;  %v471_v7 = vmax.f32 %v455_v3, 0.0  ;;  %v368_v8 = vadd.f32 %v367_v6, %v318_v5  ;;  %v301_v9 = vpop.f32.mrf.mxu0 }
  0xcf   :  { %v350_v10 = vpop.f32.mrf.mxu1 }
  0xd0   :  { %487 = vst [vmem:[%s943_s4 + $0x28] sm:$0xff] %v471_v7  ;;  %v443_v11 = vmul.f32 %v852_v1, %v368_v8  ;;  %v351_v12 = vadd.f32 %v350_v10, %v301_v9 }
  0xd2   :  { %v463_v13 = vadd.f32 %v857_v4, %v443_v11  ;;  %v436_v14 = vmul.f32 %v852_v1, %v351_v12 }
  0xd4   :  { %v479_v15 = vmax.f32 %v463_v13, 0.0  ;;  %v456_v16 = vadd.f32 %v857_v4, %v436_v14  ;;  %v321_v17 = vpop.f32.mrf.mxu2 }
  0xd5   :  { %v370_v18 = vpop.f32.mrf.mxu3 }
  0xd6   :  { %495 = vst [vmem:[%s943_s4 + $0x68] sm:$0xff] %v479_v15  ;;  %v472_v19 = vmax.f32 %v456_v16, 0.0  ;;  %v371_v20 = vadd.f32 %v370_v18, %v321_v17  ;;  %v303_v21 = vpop.f32.mrf.mxu0 }
  0xd7   :  { %v352_v22 = vpop.f32.mrf.mxu1 }
  0xd8   :  { %488 = vst [vmem:[%s943_s4 + $0x30] sm:$0xff] %v472_v19  ;;  %v444_v23 = vmul.f32 %v852_v1, %v371_v20  ;;  %v353_v24 = vadd.f32 %v352_v22, %v303_v21 }
  0xda   :  { %v464_v25 = vadd.f32 %v857_v4, %v444_v23  ;;  %v437_v26 = vmul.f32 %v852_v1, %v353_v24 }
  0xdc   :  { %v480_v27 = vmax.f32 %v464_v25, 0.0  ;;  %v457_v28 = vadd.f32 %v857_v4, %v437_v26  ;;  %v323_v29 = vpop.f32.mrf.mxu2 }
  0xdd   :  { %v372_v30 = vpop.f32.mrf.mxu3 }
  0xde   :  { %496 = vst [vmem:[%s943_s4 + $0x70] sm:$0xff] %v480_v27  ;;  %v473_v31 = vmax.f32 %v457_v28, 0.0  ;;  %v373_v32 = vadd.f32 %v372_v30, %v323_v29 }
  0xe0   :  { %489 = vst [vmem:[%s943_s4 + $0x38] sm:$0xff] %v473_v31  ;;  %v445_v33 = vmul.f32 %v852_v1, %v373_v32 }
  0xe2   :  { %v465_v34 = vadd.f32 %v857_v4, %v445_v33 }
  0xe4   :  { %v481_v35 = vmax.f32 %v465_v34, 0.0 }
  0xe6   :  { %497 = vst [vmem:[%s943_s4 + $0x78] sm:$0xff] %v481_v35 }

// kernel: _lambda_.70
= control target key start
LH: loop header
LB: loop body
LE: loop exit
PB: predicated region body
PF: predicated region fallthrough
CT: control target
= control target key end

     0   :  { %s1582_s15 = smov 0   ;;  %s1584_s16 = smov 0   ;;  %s1847_s0 = inlined_call_operand.vmem [shape: bf16[512,256], index: 0, kind: input, shape index: {}]   ;;  %s1848_s1 = inlined_call_operand.vmem [shape: bf16[256,128], index: 1, kind: input, shape index: {}]   ;;  %s1849_s2 = inlined_call_operand.vmem [shape: f32[1,128], index: 2, kind: input, shape index: {}]   ;;  %s1850_s3 = inlined_call_operand.vmem [shape: f32[1,128], index: 3, kind: input, shape index: {}]   ;;  %s1851_s4 = inlined_call_operand.vmem [shape: f32[512,128], index: 4, kind: output, shape index: {}]  }
   0x1   :  { %s1586_s17 = smov 0  }
   0x2 LB: > { %s33_s18 = sadd.s32 1, %s1551_s16  ;;  %p1242_p0 = scmp.ge.s32.totalorder %s1555_s17, 1  ;;  %s1555_s17 = sphi %s1586_s17, %s14_s17   ;;  %s1551_s16 = sphi %s1584_s16, %s1853_s16   ;;  %s1547_s15 = sphi %s1582_s15, %s1852_s15  }
   0x3   : > { %p35_p1 = scmp.ge.s32.totalorder %s33_s18, 2  ;;  %p224_p2 = scmp.lt.s32.totalorder %s1555_s17, 3 }
   0x5   : > { %s1855_s18 = smov (%p35_p1, %s33_s18), 0  ;;  %p225_p3 = pnand %p1242_p0, %p224_p2 }
   0x6   : > { %s1243_s5 = sshll.u32 (!%p225_p3), %s1547_s15, 5 }
   0x7   : > { %228 = sbr.rel (%p225_p3) target bundleno = 306 (0x132), region = 36  ;;  %p274_p4 = scmp.lt.s32.totalorder (!%p225_p3), %s1243_s5, 63 }
   0xc   : > { %v1482_v0 = vld [vmem:[%s1848_s1 + $0x38] sm:$0xff]  ;;  %v1481_v2 = vld [vmem:[%s1848_s1 + $0x30] sm:$0xff]  ;;  %v1480_v4 = vld [vmem:[%s1848_s1 + $0x28] sm:$0xff]  ;;  %s1857_s5 = smov (!%p274_p4, %s1243_s5), 63 }
   0xd   : > { %v1490_v1 = vld [vmem:[%s1848_s1 + $0x78] sm:$0xff]  ;;  %696 = vmatpush.bf16.msra.mxu0 %v1482_v0  ;;  %1491 = vmatpush.bf16.msra.mxu2 %v1482_v0  ;;  %v1489_v3 = vld [vmem:[%s1848_s1 + $0x70] sm:$0xff]  ;;  %v1488_v5 = vld [vmem:[%s1848_s1 + $0x68] sm:$0xff]  ;;  %s1442_s21 = sshll.u32 %s1857_s5, 3 }
   0xe   : > { %785 = vmatpush.bf16.msra.mxu1 %v1490_v1  ;;  %1499 = vmatpush.bf16.msra.mxu3 %v1490_v1  ;;  %v1479_v6 = vld [vmem:[%s1848_s1 + $0x20] sm:$0xff]  ;;  %v1478_v8 = vld [vmem:[%s1848_s1 + $0x18] sm:$0xff]  ;;  %v1477_v10 = vld [vmem:[%s1848_s1 + $0x10] sm:$0xff]  ;;  %s1650_s26 = scalar_lea.vmem %s1847_s0, %s1442_s21  ;;  %s1742_s14 = scalar_lea.vmem %s1851_s4, %s1442_s21 }
   0xf   : > { %v1487_v7 = vld [vmem:[%s1848_s1 + $0x60] sm:$0xff]  ;;  %v1486_v9 = vld [vmem:[%s1848_s1 + $0x58] sm:$0xff]  ;;  %v1485_v11 = vld [vmem:[%s1848_s1 + $0x50] sm:$0xff] }
  0x10   : > { %v1476_v12 = vld [vmem:[%s1848_s1 + $0x8] sm:$0xff]  ;;  %v1475_v14 = vld [vmem:[%s1848_s1] sm:$0xff]  ;;  %v1258_v28 = vld [vmem:[%s1650_s26 + $0x10] sm:$0xf] }
  0x11   : > { %697 = vmatpush.bf16.msra.mxu0 %v1481_v2  ;;  %1492 = vmatpush.bf16.msra.mxu2 %v1481_v2  ;;  %v1484_v13 = vld [vmem:[%s1848_s1 + $0x48] sm:$0xff]  ;;  %v1483_v15 = vld [vmem:[%s1848_s1 + $0x40] sm:$0xff]  ;;  %v1446_v29 = vld [vmem:[%s1650_s26 + $0x14] sm:$0xf0] }
  0x12   : > { %786 = vmatpush.bf16.msra.mxu1 %v1489_v3  ;;  %1500 = vmatpush.bf16.msra.mxu3 %v1489_v3  ;;  %v1250_v16 = vld [vmem:[%s1650_s26] sm:$0xf]  ;;  %v1444_v17 = vld [vmem:[%s1650_s26 + $0x4] sm:$0xf0]  ;;  %v1443_v20 = vld [vmem:[%s1650_s26 + $0x4] sm:$0xf]  ;;  %v1259_v36 = vor.u32 %v1446_v29, %v1258_v28 }
  0x13   : > { %v1314_v18 = vld [vmem:[%s1650_s26 + $0x80] sm:$0xf]  ;;  %v1460_v19 = vld [vmem:[%s1650_s26 + $0x84] sm:$0xf0]  ;;  %v1252_v21 = vld [vmem:[%s1650_s26 + $0x8] sm:$0xf0]  ;;  %v1251_v24 = vor.u32 %v1444_v17, %v1250_v16 }
  0x14   : > { %v1459_v22 = vld [vmem:[%s1650_s26 + $0x84] sm:$0xf]  ;;  %v1316_v23 = vld [vmem:[%s1650_s26 + $0x88] sm:$0xf0]  ;;  %v1315_v25 = vor.u32 %v1460_v19, %v1314_v18  ;;  %v1255_v26 = vor.u32 %v1443_v20, %v1252_v21  ;;  %v1322_v30 = vld [vmem:[%s1650_s26 + $0x90] sm:$0xf] }
  0x15   : > { %698 = vmatpush.bf16.msra.mxu0 %v1480_v4  ;;  %1493 = vmatpush.bf16.msra.mxu2 %v1480_v4  ;;  %v1319_v27 = vor.u32 %v1459_v22, %v1316_v23  ;;  %v1462_v31 = vld [vmem:[%s1650_s26 + $0x94] sm:$0xf0]  ;;  %v1445_v32 = vld [vmem:[%s1650_s26 + $0x14] sm:$0xf]  ;;  %v1260_v33 = vld [vmem:[%s1650_s26 + $0x18] sm:$0xf0] }
  0x16   : > { %787 = vmatpush.bf16.msra.mxu1 %v1488_v5  ;;  %1501 = vmatpush.bf16.msra.mxu3 %v1488_v5  ;;  %v1461_v34 = vld [vmem:[%s1650_s26 + $0x94] sm:$0xf]  ;;  %v1324_v35 = vld [vmem:[%s1650_s26 + $0x98] sm:$0xf0]  ;;  %v1323_v37 = vor.u32 %v1462_v31, %v1322_v30  ;;  %v1263_v38 = vor.u32 %v1445_v32, %v1260_v33  ;;  %v1266_v40 = vld [vmem:[%s1650_s26 + $0x20] sm:$0xf] }
  0x17   : > { %v1327_v39 = vor.u32 %v1461_v34, %v1324_v35  ;;  %v1448_v41 = vld [vmem:[%s1650_s26 + $0x24] sm:$0xf0]  ;;  %v1330_v42 = vld [vmem:[%s1650_s26 + $0xa0] sm:$0xf]  ;;  %v1447_v44 = vld [vmem:[%s1650_s26 + $0x24] sm:$0xf] }
  0x18   : > { %v1464_v43 = vld [vmem:[%s1650_s26 + $0xa4] sm:$0xf0]  ;;  %v1268_v45 = vld [vmem:[%s1650_s26 + $0x28] sm:$0xf0]  ;;  %v1463_v46 = vld [vmem:[%s1650_s26 + $0xa4] sm:$0xf]  ;;  %v1267_v48 = vor.u32 %v1448_v41, %v1266_v40 }
  0x19   : > { %699 = vmatpush.bf16.msra.mxu0 %v1479_v6  ;;  %1494 = vmatpush.bf16.msra.mxu2 %v1479_v6  ;;  %v1332_v47 = vld [vmem:[%s1650_s26 + $0xa8] sm:$0xf0]  ;;  %v1331_v49 = vor.u32 %v1464_v43, %v1330_v42  ;;  %v1271_v50 = vor.u32 %v1447_v44, %v1268_v45  ;;  %v1274_v52 = vld [vmem:[%s1650_s26 + $0x30] sm:$0xf]  ;;  %v1450_v53 = vld [vmem:[%s1650_s26 + $0x34] sm:$0xf0] }
  0x1a   : > { %788 = vmatpush.bf16.msra.mxu1 %v1487_v7  ;;  %1502 = vmatpush.bf16.msra.mxu3 %v1487_v7  ;;  %v1335_v51 = vor.u32 %v1463_v46, %v1332_v47  ;;  %v1338_v54 = vld [vmem:[%s1650_s26 + $0xb0] sm:$0xf]  ;;  %v1466_v55 = vld [vmem:[%s1650_s26 + $0xb4] sm:$0xf0]  ;;  %v1449_v56 = vld [vmem:[%s1650_s26 + $0x34] sm:$0xf]  ;;  %v1275_v60 = vor.u32 %v1450_v53, %v1274_v52 }
  0x1b   : > { %v1276_v57 = vld [vmem:[%s1650_s26 + $0x38] sm:$0xf0]  ;;  %v1465_v58 = vld [vmem:[%s1650_s26 + $0xb4] sm:$0xf]  ;;  %v1339_v61 = vor.u32 %v1466_v55, %v1338_v54  ;;  %v1282_v0 = vld [vmem:[%s1650_s26 + $0x40] sm:$0xf] }
  0x1c   : > { %v1340_v59 = vld [vmem:[%s1650_s26 + $0xb8] sm:$0xf0]  ;;  %v1279_v62 = vor.u32 %v1449_v56, %v1276_v57  ;;  %v1452_v1 = vld [vmem:[%s1650_s26 + $0x44] sm:$0xf0]  ;;  %v1346_v2 = vld [vmem:[%s1650_s26 + $0xc0] sm:$0xf] }
  0x1d   : > { %700 = vmatpush.bf16.msra.mxu0 %v1478_v8  ;;  %1495 = vmatpush.bf16.msra.mxu2 %v1478_v8  ;;  %v1343_v63 = vor.u32 %v1465_v58, %v1340_v59  ;;  %v1468_v3 = vld [vmem:[%s1650_s26 + $0xc4] sm:$0xf0]  ;;  %v1451_v4 = vld [vmem:[%s1650_s26 + $0x44] sm:$0xf]  ;;  %v1284_v5 = vld [vmem:[%s1650_s26 + $0x48] sm:$0xf0]  ;;  %v1283_v8 = vor.u32 %v1452_v1, %v1282_v0 }
  0x1e   : > { %789 = vmatpush.bf16.msra.mxu1 %v1486_v9  ;;  %1503 = vmatpush.bf16.msra.mxu3 %v1486_v9  ;;  %v1467_v6 = vld [vmem:[%s1650_s26 + $0xc4] sm:$0xf]  ;;  %v1348_v7 = vld [vmem:[%s1650_s26 + $0xc8] sm:$0xf0]  ;;  %v1347_v9 = vor.u32 %v1468_v3, %v1346_v2  ;;  %v1453_v16 = vld [vmem:[%s1650_s26 + $0x54] sm:$0xf] }
  0x1f   : > { %v1292_v17 = vld [vmem:[%s1650_s26 + $0x58] sm:$0xf0]  ;;  %v1469_v18 = vld [vmem:[%s1650_s26 + $0xd4] sm:$0xf]  ;;  %v1455_v28 = vld [vmem:[%s1650_s26 + $0x64] sm:$0xf] }
  0x20   : > { %v1356_v19 = vld [vmem:[%s1650_s26 + $0xd8] sm:$0xf0]  ;;  %v1295_v22 = vor.u32 %v1453_v16, %v1292_v17  ;;  %v1300_v29 = vld [vmem:[%s1650_s26 + $0x68] sm:$0xf0]  ;;  %v1471_v30 = vld [vmem:[%s1650_s26 + $0xe4] sm:$0xf] }
  0x21   : > { %701 = vmatpush.bf16.msra.mxu0 %v1477_v10  ;;  %1496 = vmatpush.bf16.msra.mxu2 %v1477_v10  ;;  %v1287_v10 = vor.u32 %v1451_v4, %v1284_v5  ;;  %v1359_v23 = vor.u32 %v1469_v18, %v1356_v19  ;;  %v1364_v31 = vld [vmem:[%s1650_s26 + $0xe8] sm:$0xf0]  ;;  %v1303_v34 = vor.u32 %v1455_v28, %v1300_v29  ;;  %v1457_v40 = vld [vmem:[%s1650_s26 + $0x74] sm:$0xf]  ;;  %v1308_v41 = vld [vmem:[%s1650_s26 + $0x78] sm:$0xf0] }
  0x22   : > { %790 = vmatpush.bf16.msra.mxu1 %v1485_v11  ;;  %1504 = vmatpush.bf16.msra.mxu3 %v1485_v11  ;;  %v1351_v11 = vor.u32 %v1467_v6, %v1348_v7  ;;  %v1367_v35 = vor.u32 %v1471_v30, %v1364_v31  ;;  %v1473_v42 = vld [vmem:[%s1650_s26 + $0xf4] sm:$0xf]  ;;  %v1372_v43 = vld [vmem:[%s1650_s26 + $0xf8] sm:$0xf0]  ;;  %v1311_v46 = vor.u32 %v1457_v40, %v1308_v41  ;;  %v1733_v52 = vld [vmem:[%s1850_s3] ss:$0 sm:$0xff] }
  0x23   : > { %v1375_v47 = vor.u32 %v1473_v42, %v1372_v43 }
  0x25   : > { %702 = vmatpush.bf16.msra.mxu0 %v1476_v12  ;;  %1497 = vmatpush.bf16.msra.mxu2 %v1476_v12  ;;  %v1290_v12 = vld [vmem:[%s1650_s26 + $0x50] sm:$0xf] }
  0x26   : > { %791 = vmatpush.bf16.msra.mxu1 %v1484_v13  ;;  %1505 = vmatpush.bf16.msra.mxu3 %v1484_v13  ;;  %v1454_v13 = vld [vmem:[%s1650_s26 + $0x54] sm:$0xf0] }
  0x27   : > { %v1291_v20 = vor.u32 %v1454_v13, %v1290_v12 }
  0x29   : > { %703 = vmatpush.bf16.msra.mxu0 %v1475_v14  ;;  %1498 = vmatpush.bf16.msra.mxu2 %v1475_v14  ;;  %v1354_v14 = vld [vmem:[%s1650_s26 + $0xd0] sm:$0xf] }
  0x2a   : > { %792 = vmatpush.bf16.msra.mxu1 %v1483_v15  ;;  %1506 = vmatpush.bf16.msra.mxu3 %v1483_v15  ;;  %v1470_v15 = vld [vmem:[%s1650_s26 + $0xd4] sm:$0xf0] }
  0x2b   : > { %v1355_v21 = vor.u32 %v1470_v15, %v1354_v14 }
  0x2c   : > { %704 = vmatmul.bf16.vlgmr.msra.gmra.mxu0 %v1251_v24  ;;  %744 = vmatmul.bf16.vlgmr.msra.gmra.mxu2 %v1315_v25  ;;  %v1298_v24 = vld [vmem:[%s1650_s26 + $0x60] sm:$0xf]  ;;  %v1456_v25 = vld [vmem:[%s1650_s26 + $0x64] sm:$0xf0] }
  0x2d   : > { %793 = vmatmul.bf16.vlgmr.msra.gmra.mxu1 %v1255_v26  ;;  %833 = vmatmul.bf16.vlgmr.msra.gmra.mxu3 %v1319_v27  ;;  %v1362_v26 = vld [vmem:[%s1650_s26 + $0xe0] sm:$0xf]  ;;  %v1472_v27 = vld [vmem:[%s1650_s26 + $0xe4] sm:$0xf0]  ;;  %v1299_v32 = vor.u32 %v1456_v25, %v1298_v24 }
  0x2e   : > { %v1363_v33 = vor.u32 %v1472_v27, %v1362_v26 }
  0x3c   : > { %709 = vmatmul.bf16.gmra.mxu0 %v1259_v36  ;;  %749 = vmatmul.bf16.gmra.mxu2 %v1323_v37  ;;  %v1306_v36 = vld [vmem:[%s1650_s26 + $0x70] sm:$0xf]  ;;  %v1458_v37 = vld [vmem:[%s1650_s26 + $0x74] sm:$0xf0] }
  0x3d   : > { %798 = vmatmul.bf16.gmra.mxu1 %v1263_v38  ;;  %838 = vmatmul.bf16.gmra.mxu3 %v1327_v39  ;;  %v1370_v38 = vld [vmem:[%s1650_s26 + $0xf0] sm:$0xf]  ;;  %v1474_v39 = vld [vmem:[%s1650_s26 + $0xf4] sm:$0xf0]  ;;  %v1307_v44 = vor.u32 %v1458_v37, %v1306_v36 }
  0x3e   : > { %v1371_v45 = vor.u32 %v1474_v39, %v1370_v38 }
  0x4c   : > { %714 = vmatmul.bf16.gmra.mxu0 %v1267_v48  ;;  %754 = vmatmul.bf16.gmra.mxu2 %v1331_v49  ;;  %v1728_v49 = vld [vmem:[%s1849_s2] ss:$0 sm:$0xff] }
  0x4d   : > { %803 = vmatmul.bf16.gmra.mxu1 %v1271_v50  ;;  %843 = vmatmul.bf16.gmra.mxu3 %v1335_v51 }
  0x5c   : > { %719 = vmatmul.bf16.gmra.mxu0 %v1275_v60  ;;  %759 = vmatmul.bf16.gmra.mxu2 %v1339_v61 }
  0x5d   : > { %808 = vmatmul.bf16.gmra.mxu1 %v1279_v62  ;;  %848 = vmatmul.bf16.gmra.mxu3 %v1343_v63 }
  0x6c   : > { %724 = vmatmul.bf16.gmra.mxu0 %v1283_v8  ;;  %764 = vmatmul.bf16.gmra.mxu2 %v1347_v9 }
  0x6d   : > { %813 = vmatmul.bf16.gmra.mxu1 %v1287_v10  ;;  %853 = vmatmul.bf16.gmra.mxu3 %v1351_v11 }
  0x7c   : > { %729 = vmatmul.bf16.gmra.mxu0 %v1291_v20  ;;  %769 = vmatmul.bf16.gmra.mxu2 %v1355_v21 }
  0x7d   : > { %818 = vmatmul.bf16.gmra.mxu1 %v1295_v22  ;;  %858 = vmatmul.bf16.gmra.mxu3 %v1359_v23 }
  0x8c   : > { %734 = vmatmul.bf16.gmra.mxu0 %v1299_v32  ;;  %774 = vmatmul.bf16.gmra.mxu2 %v1363_v33 }
  0x8d   : > { %823 = vmatmul.bf16.gmra.mxu1 %v1303_v34  ;;  %863 = vmatmul.bf16.gmra.mxu3 %v1367_v35 }
  0x9c   : > { %739 = vmatmul.bf16.gmra.mxu0 %v1307_v44  ;;  %779 = vmatmul.bf16.gmra.mxu2 %v1371_v45 }
  0x9d   : > { %828 = vmatmul.bf16.gmra.mxu1 %v1311_v46  ;;  %868 = vmatmul.bf16.gmra.mxu3 %v1375_v47 }
  0xa9   : > { %v705_v48 = vpop.f32.mrf.mxu0 }
  0xaa   : > { %v794_v50 = vpop.f32.mrf.mxu1 }
  0xab   : > { %v795_v51 = vadd.f32 %v794_v50, %v705_v48 }
  0xad   : > { %v977_v53 = vmul.f32 %v1728_v49, %v795_v51 }
  0xaf   : > { %v1013_v54 = vadd.f32 %v1733_v52, %v977_v53  ;;  %v745_v55 = vpop.f32.mrf.mxu2 }
  0xb0   : > { %v834_v56 = vpop.f32.mrf.mxu3 }
  0xb1   : > { %v1045_v57 = vmax.f32 %v1013_v54, 0.0  ;;  %v835_v58 = vadd.f32 %v834_v56, %v745_v55  ;;  %v707_v59 = vpop.f32.mrf.mxu0 }
  0xb2   : > { %v796_v60 = vpop.f32.mrf.mxu1 }
  0xb3   : > { %1077 = vst [vmem:[%s1742_s14] sm:$0xff] %v1045_v57  ;;  %v993_v61 = vmul.f32 %v1728_v49, %v835_v58  ;;  %v797_v62 = vadd.f32 %v796_v60, %v707_v59 }
  0xb5   : > { %v1029_v63 = vadd.f32 %v1733_v52, %v993_v61  ;;  %v978_v0 = vmul.f32 %v1728_v49, %v797_v62 }
  0xb7   : > { %v1061_v1 = vmax.f32 %v1029_v63, 0.0  ;;  %v1014_v2 = vadd.f32 %v1733_v52, %v978_v0  ;;  %v747_v3 = vpop.f32.mrf.mxu2 }
  0xb8   : > { %v836_v4 = vpop.f32.mrf.mxu3 }
  0xb9   : > { %1093 = vst [vmem:[%s1742_s14 + $0x80] sm:$0xff] %v1061_v1  ;;  %v1046_v5 = vmax.f32 %v1014_v2, 0.0  ;;  %v837_v6 = vadd.f32 %v836_v4, %v747_v3  ;;  %v710_v7 = vpop.f32.mrf.mxu0 }
  0xba   : > { %v799_v8 = vpop.f32.mrf.mxu1 }
  0xbb   : > { %1078 = vst [vmem:[%s1742_s14 + $0x8] sm:$0xff] %v1046_v5  ;;  %v994_v9 = vmul.f32 %v1728_v49, %v837_v6  ;;  %v800_v10 = vadd.f32 %v799_v8, %v710_v7 }
  0xbd   : > { %v1030_v11 = vadd.f32 %v1733_v52, %v994_v9  ;;  %v979_v12 = vmul.f32 %v1728_v49, %v800_v10 }
  0xbf   : > { %v1062_v13 = vmax.f32 %v1030_v11, 0.0  ;;  %v1015_v14 = vadd.f32 %v1733_v52, %v979_v12  ;;  %v750_v15 = vpop.f32.mrf.mxu2 }
  0xc0   : > { %v839_v16 = vpop.f32.mrf.mxu3 }
  0xc1   : > { %1094 = vst [vmem:[%s1742_s14 + $0x88] sm:$0xff] %v1062_v13  ;;  %v1047_v17 = vmax.f32 %v1015_v14, 0.0  ;;  %v840_v18 = vadd.f32 %v839_v16, %v750_v15  ;;  %v712_v19 = vpop.f32.mrf.mxu0 }
  0xc2   : > { %v801_v20 = vpop.f32.mrf.mxu1 }
  0xc3   : > { %1079 = vst [vmem:[%s1742_s14 + $0x10] sm:$0xff] %v1047_v17  ;;  %v995_v21 = vmul.f32 %v1728_v49, %v840_v18  ;;  %v802_v22 = vadd.f32 %v801_v20, %v712_v19 }
  0xc5   : > { %v1031_v23 = vadd.f32 %v1733_v52, %v995_v21  ;;  %v980_v24 = vmul.f32 %v1728_v49, %v802_v22 }
  0xc7   : > { %v1063_v25 = vmax.f32 %v1031_v23, 0.0  ;;  %v1016_v26 = vadd.f32 %v1733_v52, %v980_v24  ;;  %v752_v27 = vpop.f32.mrf.mxu2 }
  0xc8   : > { %v841_v28 = vpop.f32.mrf.mxu3 }
  0xc9   : > { %1095 = vst [vmem:[%s1742_s14 + $0x90] sm:$0xff] %v1063_v25  ;;  %v1048_v29 = vmax.f32 %v1016_v26, 0.0  ;;  %v842_v30 = vadd.f32 %v841_v28, %v752_v27  ;;  %v715_v31 = vpop.f32.mrf.mxu0 }
  0xca   : > { %v804_v32 = vpop.f32.mrf.mxu1 }
  0xcb   : > { %1080 = vst [vmem:[%s1742_s14 + $0x18] sm:$0xff] %v1048_v29  ;;  %v996_v33 = vmul.f32 %v1728_v49, %v842_v30  ;;  %v805_v34 = vadd.f32 %v804_v32, %v715_v31 }
  0xcd   : > { %v1032_v35 = vadd.f32 %v1733_v52, %v996_v33  ;;  %v981_v36 = vmul.f32 %v1728_v49, %v805_v34 }
  0xcf   : > { %v1064_v37 = vmax.f32 %v1032_v35, 0.0  ;;  %v1017_v38 = vadd.f32 %v1733_v52, %v981_v36  ;;  %v755_v39 = vpop.f32.mrf.mxu2 }
  0xd0   : > { %v844_v40 = vpop.f32.mrf.mxu3 }
  0xd1   : > { %1096 = vst [vmem:[%s1742_s14 + $0x98] sm:$0xff] %v1064_v37  ;;  %v1049_v41 = vmax.f32 %v1017_v38, 0.0  ;;  %v845_v42 = vadd.f32 %v844_v40, %v755_v39  ;;  %v717_v43 = vpop.f32.mrf.mxu0 }
  0xd2   : > { %v806_v44 = vpop.f32.mrf.mxu1 }
  0xd3   : > { %1081 = vst [vmem:[%s1742_s14 + $0x20] sm:$0xff] %v1049_v41  ;;  %v997_v45 = vmul.f32 %v1728_v49, %v845_v42  ;;  %v807_v46 = vadd.f32 %v806_v44, %v717_v43 }
  0xd5   : > { %v1033_v47 = vadd.f32 %v1733_v52, %v997_v45  ;;  %v982_v48 = vmul.f32 %v1728_v49, %v807_v46 }
  0xd7   : > { %v1065_v50 = vmax.f32 %v1033_v47, 0.0  ;;  %v1018_v51 = vadd.f32 %v1733_v52, %v982_v48  ;;  %v757_v53 = vpop.f32.mrf.mxu2 }
  0xd8   : > { %v846_v54 = vpop.f32.mrf.mxu3 }
  0xd9   : > { %1097 = vst [vmem:[%s1742_s14 + $0xa0] sm:$0xff] %v1065_v50  ;;  %v1050_v55 = vmax.f32 %v1018_v51, 0.0  ;;  %v847_v56 = vadd.f32 %v846_v54, %v757_v53  ;;  %v720_v57 = vpop.f32.mrf.mxu0 }
  0xda   : > { %v809_v58 = vpop.f32.mrf.mxu1 }
  0xdb   : > { %1082 = vst [vmem:[%s1742_s14 + $0x28] sm:$0xff] %v1050_v55  ;;  %v998_v59 = vmul.f32 %v1728_v49, %v847_v56  ;;  %v810_v60 = vadd.f32 %v809_v58, %v720_v57 }
  0xdd   : > { %v1034_v61 = vadd.f32 %v1733_v52, %v998_v59  ;;  %v983_v62 = vmul.f32 %v1728_v49, %v810_v60 }
  0xdf   : > { %v1066_v63 = vmax.f32 %v1034_v61, 0.0  ;;  %v1019_v0 = vadd.f32 %v1733_v52, %v983_v62  ;;  %v760_v1 = vpop.f32.mrf.mxu2 }
  0xe0   : > { %v849_v2 = vpop.f32.mrf.mxu3 }
  0xe1   : > { %1098 = vst [vmem:[%s1742_s14 + $0xa8] sm:$0xff] %v1066_v63  ;;  %v1051_v3 = vmax.f32 %v1019_v0, 0.0  ;;  %v850_v4 = vadd.f32 %v849_v2, %v760_v1  ;;  %v722_v5 = vpop.f32.mrf.mxu0 }
  0xe2   : > { %v811_v6 = vpop.f32.mrf.mxu1 }
  0xe3   : > { %1083 = vst [vmem:[%s1742_s14 + $0x30] sm:$0xff] %v1051_v3  ;;  %v999_v7 = vmul.f32 %v1728_v49, %v850_v4  ;;  %v812_v8 = vadd.f32 %v811_v6, %v722_v5 }
  0xe5   : > { %v1035_v9 = vadd.f32 %v1733_v52, %v999_v7  ;;  %v984_v10 = vmul.f32 %v1728_v49, %v812_v8 }
  0xe7   : > { %v1067_v11 = vmax.f32 %v1035_v9, 0.0  ;;  %v1020_v12 = vadd.f32 %v1733_v52, %v984_v10  ;;  %v762_v13 = vpop.f32.mrf.mxu2 }
  0xe8   : > { %v851_v14 = vpop.f32.mrf.mxu3 }
  0xe9   : > { %1099 = vst [vmem:[%s1742_s14 + $0xb0] sm:$0xff] %v1067_v11  ;;  %v1052_v15 = vmax.f32 %v1020_v12, 0.0  ;;  %v852_v16 = vadd.f32 %v851_v14, %v762_v13  ;;  %v725_v17 = vpop.f32.mrf.mxu0 }
  0xea   : > { %v814_v18 = vpop.f32.mrf.mxu1 }
  0xeb   : > { %1084 = vst [vmem:[%s1742_s14 + $0x38] sm:$0xff] %v1052_v15  ;;  %v1000_v19 = vmul.f32 %v1728_v49, %v852_v16  ;;  %v815_v20 = vadd.f32 %v814_v18, %v725_v17 }
  0xed   : > { %v1036_v21 = vadd.f32 %v1733_v52, %v1000_v19  ;;  %v985_v22 = vmul.f32 %v1728_v49, %v815_v20 }
  0xef   : > { %v1068_v23 = vmax.f32 %v1036_v21, 0.0  ;;  %v1021_v24 = vadd.f32 %v1733_v52, %v985_v22  ;;  %v765_v25 = vpop.f32.mrf.mxu2 }
  0xf0   : > { %v854_v26 = vpop.f32.mrf.mxu3 }
  0xf1   : > { %1100 = vst [vmem:[%s1742_s14 + $0xb8] sm:$0xff] %v1068_v23  ;;  %v1053_v27 = vmax.f32 %v1021_v24, 0.0  ;;  %v855_v28 = vadd.f32 %v854_v26, %v765_v25  ;;  %v727_v29 = vpop.f32.mrf.mxu0 }
  0xf2   : > { %v816_v30 = vpop.f32.mrf.mxu1 }
  0xf3   : > { %1085 = vst [vmem:[%s1742_s14 + $0x40] sm:$0xff] %v1053_v27  ;;  %v1001_v31 = vmul.f32 %v1728_v49, %v855_v28  ;;  %v817_v32 = vadd.f32 %v816_v30, %v727_v29 }
  0xf5   : > { %v1037_v33 = vadd.f32 %v1733_v52, %v1001_v31  ;;  %v986_v34 = vmul.f32 %v1728_v49, %v817_v32 }
  0xf7   : > { %v1069_v35 = vmax.f32 %v1037_v33, 0.0  ;;  %v1022_v36 = vadd.f32 %v1733_v52, %v986_v34  ;;  %v767_v37 = vpop.f32.mrf.mxu2 }
  0xf8   : > { %v856_v38 = vpop.f32.mrf.mxu3 }
  0xf9   : > { %1101 = vst [vmem:[%s1742_s14 + $0xc0] sm:$0xff] %v1069_v35  ;;  %v1054_v39 = vmax.f32 %v1022_v36, 0.0  ;;  %v857_v40 = vadd.f32 %v856_v38, %v767_v37  ;;  %v730_v41 = vpop.f32.mrf.mxu0 }
  0xfa   : > { %v819_v42 = vpop.f32.mrf.mxu1 }
  0xfb   : > { %1086 = vst [vmem:[%s1742_s14 + $0x48] sm:$0xff] %v1054_v39  ;;  %v1002_v43 = vmul.f32 %v1728_v49, %v857_v40  ;;  %v820_v44 = vadd.f32 %v819_v42, %v730_v41 }
  0xfd   : > { %v1038_v45 = vadd.f32 %v1733_v52, %v1002_v43  ;;  %v987_v46 = vmul.f32 %v1728_v49, %v820_v44 }
  0xff   : > { %v1070_v47 = vmax.f32 %v1038_v45, 0.0  ;;  %v1023_v48 = vadd.f32 %v1733_v52, %v987_v46  ;;  %v770_v50 = vpop.f32.mrf.mxu2 }
 0x100   : > { %v859_v51 = vpop.f32.mrf.mxu3 }
 0x101   : > { %1102 = vst [vmem:[%s1742_s14 + $0xc8] sm:$0xff] %v1070_v47  ;;  %v1055_v53 = vmax.f32 %v1023_v48, 0.0  ;;  %v860_v54 = vadd.f32 %v859_v51, %v770_v50  ;;  %v732_v55 = vpop.f32.mrf.mxu0 }
 0x102   : > { %v821_v56 = vpop.f32.mrf.mxu1 }
 0x103   : > { %1087 = vst [vmem:[%s1742_s14 + $0x50] sm:$0xff] %v1055_v53  ;;  %v1003_v57 = vmul.f32 %v1728_v49, %v860_v54  ;;  %v822_v58 = vadd.f32 %v821_v56, %v732_v55 }
 0x105   : > { %v1039_v59 = vadd.f32 %v1733_v52, %v1003_v57  ;;  %v988_v60 = vmul.f32 %v1728_v49, %v822_v58 }
 0x107   : > { %v1071_v61 = vmax.f32 %v1039_v59, 0.0  ;;  %v1024_v62 = vadd.f32 %v1733_v52, %v988_v60  ;;  %v772_v63 = vpop.f32.mrf.mxu2 }
 0x108   : > { %v861_v0 = vpop.f32.mrf.mxu3 }
 0x109   : > { %1103 = vst [vmem:[%s1742_s14 + $0xd0] sm:$0xff] %v1071_v61  ;;  %v1056_v1 = vmax.f32 %v1024_v62, 0.0  ;;  %v862_v2 = vadd.f32 %v861_v0, %v772_v63  ;;  %v735_v3 = vpop.f32.mrf.mxu0 }
 0x10a   : > { %v824_v4 = vpop.f32.mrf.mxu1 }
 0x10b   : > { %1088 = vst [vmem:[%s1742_s14 + $0x58] sm:$0xff] %v1056_v1  ;;  %v1004_v5 = vmul.f32 %v1728_v49, %v862_v2  ;;  %v825_v6 = vadd.f32 %v824_v4, %v735_v3 }
 0x10d   : > { %v1040_v7 = vadd.f32 %v1733_v52, %v1004_v5  ;;  %v989_v8 = vmul.f32 %v1728_v49, %v825_v6 }
 0x10f   : > { %v1072_v9 = vmax.f32 %v1040_v7, 0.0  ;;  %v1025_v10 = vadd.f32 %v1733_v52, %v989_v8  ;;  %v775_v11 = vpop.f32.mrf.mxu2 }
 0x110   : > { %v864_v12 = vpop.f32.mrf.mxu3 }
 0x111   : > { %1104 = vst [vmem:[%s1742_s14 + $0xd8] sm:$0xff] %v1072_v9  ;;  %v1057_v13 = vmax.f32 %v1025_v10, 0.0  ;;  %v865_v14 = vadd.f32 %v864_v12, %v775_v11  ;;  %v737_v15 = vpop.f32.mrf.mxu0 }
 0x112   : > { %v826_v16 = vpop.f32.mrf.mxu1 }
 0x113   : > { %1089 = vst [vmem:[%s1742_s14 + $0x60] sm:$0xff] %v1057_v13  ;;  %v1005_v17 = vmul.f32 %v1728_v49, %v865_v14  ;;  %v827_v18 = vadd.f32 %v826_v16, %v737_v15 }
 0x115   : > { %v1041_v19 = vadd.f32 %v1733_v52, %v1005_v17  ;;  %v990_v20 = vmul.f32 %v1728_v49, %v827_v18 }
 0x117   : > { %v1073_v21 = vmax.f32 %v1041_v19, 0.0  ;;  %v1026_v22 = vadd.f32 %v1733_v52, %v990_v20  ;;  %v777_v23 = vpop.f32.mrf.mxu2 }
 0x118   : > { %v866_v24 = vpop.f32.mrf.mxu3 }
 0x119   : > { %1105 = vst [vmem:[%s1742_s14 + $0xe0] sm:$0xff] %v1073_v21  ;;  %v1058_v25 = vmax.f32 %v1026_v22, 0.0  ;;  %v867_v26 = vadd.f32 %v866_v24, %v777_v23  ;;  %v740_v27 = vpop.f32.mrf.mxu0 }
 0x11a   : > { %v829_v28 = vpop.f32.mrf.mxu1 }
 0x11b   : > { %1090 = vst [vmem:[%s1742_s14 + $0x68] sm:$0xff] %v1058_v25  ;;  %v1006_v29 = vmul.f32 %v1728_v49, %v867_v26  ;;  %v830_v30 = vadd.f32 %v829_v28, %v740_v27 }
 0x11d   : > { %v1042_v31 = vadd.f32 %v1733_v52, %v1006_v29  ;;  %v991_v32 = vmul.f32 %v1728_v49, %v830_v30 }
 0x11f   : > { %v1074_v33 = vmax.f32 %v1042_v31, 0.0  ;;  %v1027_v34 = vadd.f32 %v1733_v52, %v991_v32  ;;  %v780_v35 = vpop.f32.mrf.mxu2 }
 0x120   : > { %v869_v36 = vpop.f32.mrf.mxu3 }
 0x121   : > { %1106 = vst [vmem:[%s1742_s14 + $0xe8] sm:$0xff] %v1074_v33  ;;  %v1059_v37 = vmax.f32 %v1027_v34, 0.0  ;;  %v870_v38 = vadd.f32 %v869_v36, %v780_v35  ;;  %v742_v39 = vpop.f32.mrf.mxu0 }
 0x122   : > { %v831_v40 = vpop.f32.mrf.mxu1 }
 0x123   : > { %1091 = vst [vmem:[%s1742_s14 + $0x70] sm:$0xff] %v1059_v37  ;;  %v1007_v41 = vmul.f32 %v1728_v49, %v870_v38  ;;  %v832_v42 = vadd.f32 %v831_v40, %v742_v39 }
 0x125   : > { %v1043_v43 = vadd.f32 %v1733_v52, %v1007_v41  ;;  %v992_v44 = vmul.f32 %v1728_v49, %v832_v42 }
 0x127   : > { %v1075_v45 = vmax.f32 %v1043_v43, 0.0  ;;  %v1028_v46 = vadd.f32 %v1733_v52, %v992_v44  ;;  %v782_v47 = vpop.f32.mrf.mxu2 }
 0x128   : > { %v871_v48 = vpop.f32.mrf.mxu3 }
 0x129   : > { %1107 = vst [vmem:[%s1742_s14 + $0xf0] sm:$0xff] %v1075_v45  ;;  %v1060_v50 = vmax.f32 %v1028_v46, 0.0  ;;  %v872_v51 = vadd.f32 %v871_v48, %v782_v47 }
 0x12b   : > { %1092 = vst [vmem:[%s1742_s14 + $0x78] sm:$0xff] %v1060_v50  ;;  %v1008_v53 = vmul.f32 %v1728_v49, %v872_v51 }
 0x12d   : > { %v1044_v54 = vadd.f32 %v1733_v52, %v1008_v53 }
 0x12f   : > { %v1076_v55 = vmax.f32 %v1044_v54, 0.0 }
 0x131   : > { %1108 = vst [vmem:[%s1742_s14 + $0xf8] sm:$0xff] %v1076_v55 }
 0x132 PF: > { %s14_s17 = sadd.s32 1, %s1555_s17   ;;  %s1852_s15 = smov %s1551_s16 }
 0x133   : > { %p11_p5 = scmp.ge.s32.totalorder %s14_s17, 4   ;;  %s1853_s16 = smov %s1855_s18 }
 0x135   :  { %13 = sbr.rel (!%p11_p5) target bundleno = 2 (0x2), region = 83 }

// kernel: _lambda_.78
= control target key start
LH: loop header
LB: loop body
LE: loop exit
PB: predicated region body
PF: predicated region fallthrough
CT: control target
= control target key end

     0   :  { %s1208_s15 = smov 0   ;;  %s1210_s16 = smov 0   ;;  %s1398_s0 = inlined_call_operand.vmem [shape: bf16[512,128], index: 0, kind: input, shape index: {}]   ;;  %s1399_s1 = inlined_call_operand.vmem [shape: bf16[128,128], index: 1, kind: input, shape index: {}]   ;;  %s1400_s2 = inlined_call_operand.vmem [shape: f32[1,128], index: 2, kind: input, shape index: {}]   ;;  %s1401_s3 = inlined_call_operand.vmem [shape: f32[1,128], index: 3, kind: input, shape index: {}]   ;;  %s1402_s4 = inlined_call_operand.vmem [shape: f32[512,128], index: 4, kind: output, shape index: {}]  }
   0x1   :  { %s1212_s17 = smov 0  }
   0x2 LB: > { %s33_s18 = sadd.s32 1, %s1177_s16  ;;  %p982_p0 = scmp.ge.s32.totalorder %s1181_s17, 1  ;;  %s1181_s17 = sphi %s1212_s17, %s14_s17   ;;  %s1177_s16 = sphi %s1210_s16, %s1404_s16   ;;  %s1173_s15 = sphi %s1208_s15, %s1403_s15  }
   0x3   : > { %p35_p1 = scmp.ge.s32.totalorder %s33_s18, 2  ;;  %p221_p2 = scmp.lt.s32.totalorder %s1181_s17, 3 }
   0x5   : > { %s1406_s18 = smov (%p35_p1, %s33_s18), 0  ;;  %p222_p3 = pnand %p982_p0, %p221_p2 }
   0x6   : > { %s983_s27 = sshll.u32 (!%p222_p3), %s1173_s15, 5 }
   0x7   : > { %225 = sbr.rel (%p222_p3) target bundleno = 239 (0xef), region = 36  ;;  %p268_p4 = scmp.lt.s32.totalorder (!%p222_p3), %s983_s27, 63 }
   0xc   : > { %v1108_v0 = vld [vmem:[%s1399_s1 + $0x38] sm:$0xff]  ;;  %v1107_v1 = vld [vmem:[%s1399_s1 + $0x30] sm:$0xff]  ;;  %v1106_v2 = vld [vmem:[%s1399_s1 + $0x28] sm:$0xff]  ;;  %s1408_s27 = smov (!%p268_p4, %s983_s27), 63 }
   0xd   : > { %560 = vmatpush.bf16.msra.mxu0 %v1108_v0  ;;  %1109 = vmatpush.bf16.msra.mxu1 %v1108_v0  ;;  %v1105_v3 = vld [vmem:[%s1399_s1 + $0x20] sm:$0xff]  ;;  %v1104_v4 = vld [vmem:[%s1399_s1 + $0x18] sm:$0xff]  ;;  %v1103_v5 = vld [vmem:[%s1399_s1 + $0x10] sm:$0xff]  ;;  %s984_s8 = sshll.u32 %s1408_s27, 2  ;;  %s986_s19 = sshll.u32 %s1408_s27, 3 }
   0xe   : > { %1110 = vmatpush.bf16.msra.mxu2 %v1108_v0  ;;  %1111 = vmatpush.bf16.msra.mxu3 %v1108_v0  ;;  %v1102_v6 = vld [vmem:[%s1399_s1 + $0x8] sm:$0xff]  ;;  %v1101_v7 = vld [vmem:[%s1399_s1] sm:$0xff]  ;;  %s1259_s13 = scalar_lea.vmem %s1398_s0, %s984_s8  ;;  %s1293_s24 = scalar_lea.vmem %s1402_s4, %s986_s19 }
   0xf   : > { %v1085_v8 = vld [vmem:[%s1259_s13] sm:$0xff]  ;;  %v1086_v12 = vld [vmem:[%s1259_s13 + $0x8] sm:$0xff]  ;;  %v1087_v16 = vld [vmem:[%s1259_s13 + $0x10] sm:$0xff] }
  0x10   : > { %v1089_v9 = vld [vmem:[%s1259_s13 + $0x20] sm:$0xff]  ;;  %v1090_v13 = vld [vmem:[%s1259_s13 + $0x28] sm:$0xff]  ;;  %v1091_v17 = vld [vmem:[%s1259_s13 + $0x30] sm:$0xff] }
  0x11   : > { %561 = vmatpush.bf16.msra.mxu0 %v1107_v1  ;;  %1112 = vmatpush.bf16.msra.mxu1 %v1107_v1  ;;  %v1093_v10 = vld [vmem:[%s1259_s13 + $0x40] sm:$0xff]  ;;  %v1094_v14 = vld [vmem:[%s1259_s13 + $0x48] sm:$0xff]  ;;  %v1095_v18 = vld [vmem:[%s1259_s13 + $0x50] sm:$0xff] }
  0x12   : > { %1113 = vmatpush.bf16.msra.mxu2 %v1107_v1  ;;  %1114 = vmatpush.bf16.msra.mxu3 %v1107_v1  ;;  %v1097_v11 = vld [vmem:[%s1259_s13 + $0x60] sm:$0xff]  ;;  %v1098_v15 = vld [vmem:[%s1259_s13 + $0x68] sm:$0xff]  ;;  %v1099_v19 = vld [vmem:[%s1259_s13 + $0x70] sm:$0xff] }
  0x13   : > { %v1088_v20 = vld [vmem:[%s1259_s13 + $0x18] sm:$0xff]  ;;  %v1280_v24 = vld [vmem:[%s1400_s2] ss:$0 sm:$0xff] }
  0x14   : > { %v1092_v21 = vld [vmem:[%s1259_s13 + $0x38] sm:$0xff]  ;;  %v1286_v25 = vld [vmem:[%s1401_s3] ss:$0 sm:$0xff] }
  0x15   : > { %562 = vmatpush.bf16.msra.mxu0 %v1106_v2  ;;  %1115 = vmatpush.bf16.msra.mxu1 %v1106_v2  ;;  %v1096_v22 = vld [vmem:[%s1259_s13 + $0x58] sm:$0xff] }
  0x16   : > { %1116 = vmatpush.bf16.msra.mxu2 %v1106_v2  ;;  %1117 = vmatpush.bf16.msra.mxu3 %v1106_v2  ;;  %v1100_v23 = vld [vmem:[%s1259_s13 + $0x78] sm:$0xff] }
  0x19   : > { %563 = vmatpush.bf16.msra.mxu0 %v1105_v3  ;;  %1118 = vmatpush.bf16.msra.mxu1 %v1105_v3 }
  0x1a   : > { %1119 = vmatpush.bf16.msra.mxu2 %v1105_v3  ;;  %1120 = vmatpush.bf16.msra.mxu3 %v1105_v3 }
  0x1d   : > { %564 = vmatpush.bf16.msra.mxu0 %v1104_v4  ;;  %1121 = vmatpush.bf16.msra.mxu1 %v1104_v4 }
  0x1e   : > { %1122 = vmatpush.bf16.msra.mxu2 %v1104_v4  ;;  %1123 = vmatpush.bf16.msra.mxu3 %v1104_v4 }
  0x21   : > { %565 = vmatpush.bf16.msra.mxu0 %v1103_v5  ;;  %1124 = vmatpush.bf16.msra.mxu1 %v1103_v5 }
  0x22   : > { %1125 = vmatpush.bf16.msra.mxu2 %v1103_v5  ;;  %1126 = vmatpush.bf16.msra.mxu3 %v1103_v5 }
  0x25   : > { %566 = vmatpush.bf16.msra.mxu0 %v1102_v6  ;;  %1127 = vmatpush.bf16.msra.mxu1 %v1102_v6 }
  0x26   : > { %1128 = vmatpush.bf16.msra.mxu2 %v1102_v6  ;;  %1129 = vmatpush.bf16.msra.mxu3 %v1102_v6 }
  0x29   : > { %567 = vmatpush.bf16.msra.mxu0 %v1101_v7  ;;  %1130 = vmatpush.bf16.msra.mxu1 %v1101_v7 }
  0x2a   : > { %1131 = vmatpush.bf16.msra.mxu2 %v1101_v7  ;;  %1132 = vmatpush.bf16.msra.mxu3 %v1101_v7 }
  0x2c   : > { %568 = vmatmul.bf16.vlgmr.msra.gmra.mxu0 %v1085_v8  ;;  %588 = vmatmul.bf16.vlgmr.msra.gmra.mxu1 %v1089_v9 }
  0x2d   : > { %608 = vmatmul.bf16.vlgmr.msra.gmra.mxu2 %v1093_v10  ;;  %628 = vmatmul.bf16.vlgmr.msra.gmra.mxu3 %v1097_v11 }
  0x3c   : > { %573 = vmatmul.bf16.gmra.mxu0 %v1086_v12  ;;  %593 = vmatmul.bf16.gmra.mxu1 %v1090_v13 }
  0x3d   : > { %613 = vmatmul.bf16.gmra.mxu2 %v1094_v14  ;;  %633 = vmatmul.bf16.gmra.mxu3 %v1098_v15 }
  0x4c   : > { %578 = vmatmul.bf16.gmra.mxu0 %v1087_v16  ;;  %598 = vmatmul.bf16.gmra.mxu1 %v1091_v17 }
  0x4d   : > { %618 = vmatmul.bf16.gmra.mxu2 %v1095_v18  ;;  %638 = vmatmul.bf16.gmra.mxu3 %v1099_v19 }
  0x5c   : > { %583 = vmatmul.bf16.gmra.mxu0 %v1088_v20  ;;  %603 = vmatmul.bf16.gmra.mxu1 %v1092_v21 }
  0x5d   : > { %623 = vmatmul.bf16.gmra.mxu2 %v1096_v22  ;;  %643 = vmatmul.bf16.gmra.mxu3 %v1100_v23 }
  0xa9   : > { %v569_v26 = vpop.f32.mrf.mxu0  ;;  %v589_v27 = vpop.f32.mrf.mxu1 }
  0xaa   : > { %v752_v28 = vmul.f32 %v1280_v24, %v569_v26  ;;  %v760_v29 = vmul.f32 %v1280_v24, %v589_v27 }
  0xac   : > { %v788_v30 = vadd.f32 %v1286_v25, %v752_v28  ;;  %v796_v31 = vadd.f32 %v1286_v25, %v760_v29 }
  0xae   : > { %820 = vst [vmem:[%s1293_s24] sm:$0xff] %v788_v30 }
  0xaf   : > { %828 = vst [vmem:[%s1293_s24 + $0x40] sm:$0xff] %v796_v31 }
  0xb0   : > { %v609_v32 = vpop.f32.mrf.mxu2  ;;  %v629_v33 = vpop.f32.mrf.mxu3 }
  0xb1   : > { %v768_v34 = vmul.f32 %v1280_v24, %v609_v32  ;;  %v776_v35 = vmul.f32 %v1280_v24, %v629_v33  ;;  %v571_v36 = vpop.f32.mrf.mxu0  ;;  %v591_v37 = vpop.f32.mrf.mxu1 }
  0xb2   : > { %v753_v38 = vmul.f32 %v1280_v24, %v571_v36  ;;  %v761_v39 = vmul.f32 %v1280_v24, %v591_v37 }
  0xb3   : > { %v804_v40 = vadd.f32 %v1286_v25, %v768_v34  ;;  %v812_v41 = vadd.f32 %v1286_v25, %v776_v35 }
  0xb4   : > { %v789_v42 = vadd.f32 %v1286_v25, %v753_v38  ;;  %v797_v43 = vadd.f32 %v1286_v25, %v761_v39 }
  0xb5   : > { %836 = vst [vmem:[%s1293_s24 + $0x80] sm:$0xff] %v804_v40 }
  0xb6   : > { %844 = vst [vmem:[%s1293_s24 + $0xc0] sm:$0xff] %v812_v41 }
  0xb7   : > { %821 = vst [vmem:[%s1293_s24 + $0x8] sm:$0xff] %v789_v42 }
  0xb8   : > { %829 = vst [vmem:[%s1293_s24 + $0x48] sm:$0xff] %v797_v43  ;;  %v611_v44 = vpop.f32.mrf.mxu2  ;;  %v631_v45 = vpop.f32.mrf.mxu3 }
  0xb9   : > { %v769_v46 = vmul.f32 %v1280_v24, %v611_v44  ;;  %v777_v47 = vmul.f32 %v1280_v24, %v631_v45  ;;  %v574_v48 = vpop.f32.mrf.mxu0  ;;  %v594_v49 = vpop.f32.mrf.mxu1 }
  0xba   : > { %v754_v50 = vmul.f32 %v1280_v24, %v574_v48  ;;  %v762_v51 = vmul.f32 %v1280_v24, %v594_v49 }
  0xbb   : > { %v805_v52 = vadd.f32 %v1286_v25, %v769_v46  ;;  %v813_v53 = vadd.f32 %v1286_v25, %v777_v47 }
  0xbc   : > { %v790_v54 = vadd.f32 %v1286_v25, %v754_v50  ;;  %v798_v55 = vadd.f32 %v1286_v25, %v762_v51 }
  0xbd   : > { %837 = vst [vmem:[%s1293_s24 + $0x88] sm:$0xff] %v805_v52 }
  0xbe   : > { %845 = vst [vmem:[%s1293_s24 + $0xc8] sm:$0xff] %v813_v53 }
  0xbf   : > { %822 = vst [vmem:[%s1293_s24 + $0x10] sm:$0xff] %v790_v54 }
  0xc0   : > { %830 = vst [vmem:[%s1293_s24 + $0x50] sm:$0xff] %v798_v55  ;;  %v614_v56 = vpop.f32.mrf.mxu2  ;;  %v634_v57 = vpop.f32.mrf.mxu3 }
  0xc1   : > { %v770_v58 = vmul.f32 %v1280_v24, %v614_v56  ;;  %v778_v59 = vmul.f32 %v1280_v24, %v634_v57  ;;  %v576_v60 = vpop.f32.mrf.mxu0  ;;  %v596_v61 = vpop.f32.mrf.mxu1 }
  0xc2   : > { %v755_v62 = vmul.f32 %v1280_v24, %v576_v60  ;;  %v763_v63 = vmul.f32 %v1280_v24, %v596_v61 }
  0xc3   : > { %v806_v0 = vadd.f32 %v1286_v25, %v770_v58  ;;  %v814_v1 = vadd.f32 %v1286_v25, %v778_v59 }
  0xc4   : > { %v791_v2 = vadd.f32 %v1286_v25, %v755_v62  ;;  %v799_v3 = vadd.f32 %v1286_v25, %v763_v63 }
  0xc5   : > { %838 = vst [vmem:[%s1293_s24 + $0x90] sm:$0xff] %v806_v0 }
  0xc6   : > { %846 = vst [vmem:[%s1293_s24 + $0xd0] sm:$0xff] %v814_v1 }
  0xc7   : > { %823 = vst [vmem:[%s1293_s24 + $0x18] sm:$0xff] %v791_v2 }
  0xc8   : > { %831 = vst [vmem:[%s1293_s24 + $0x58] sm:$0xff] %v799_v3  ;;  %v616_v4 = vpop.f32.mrf.mxu2  ;;  %v636_v5 = vpop.f32.mrf.mxu3 }
  0xc9   : > { %v771_v6 = vmul.f32 %v1280_v24, %v616_v4  ;;  %v779_v7 = vmul.f32 %v1280_v24, %v636_v5  ;;  %v579_v8 = vpop.f32.mrf.mxu0  ;;  %v599_v9 = vpop.f32.mrf.mxu1 }
  0xca   : > { %v756_v10 = vmul.f32 %v1280_v24, %v579_v8  ;;  %v764_v11 = vmul.f32 %v1280_v24, %v599_v9 }
  0xcb   : > { %v807_v12 = vadd.f32 %v1286_v25, %v771_v6  ;;  %v815_v13 = vadd.f32 %v1286_v25, %v779_v7 }
  0xcc   : > { %v792_v14 = vadd.f32 %v1286_v25, %v756_v10  ;;  %v800_v15 = vadd.f32 %v1286_v25, %v764_v11 }
  0xcd   : > { %839 = vst [vmem:[%s1293_s24 + $0x98] sm:$0xff] %v807_v12 }
  0xce   : > { %847 = vst [vmem:[%s1293_s24 + $0xd8] sm:$0xff] %v815_v13 }
  0xcf   : > { %824 = vst [vmem:[%s1293_s24 + $0x20] sm:$0xff] %v792_v14 }
  0xd0   : > { %832 = vst [vmem:[%s1293_s24 + $0x60] sm:$0xff] %v800_v15  ;;  %v619_v16 = vpop.f32.mrf.mxu2  ;;  %v639_v17 = vpop.f32.mrf.mxu3 }
  0xd1   : > { %v772_v18 = vmul.f32 %v1280_v24, %v619_v16  ;;  %v780_v19 = vmul.f32 %v1280_v24, %v639_v17  ;;  %v581_v20 = vpop.f32.mrf.mxu0  ;;  %v601_v21 = vpop.f32.mrf.mxu1 }
  0xd2   : > { %v757_v22 = vmul.f32 %v1280_v24, %v581_v20  ;;  %v765_v23 = vmul.f32 %v1280_v24, %v601_v21 }
  0xd3   : > { %v808_v26 = vadd.f32 %v1286_v25, %v772_v18  ;;  %v816_v27 = vadd.f32 %v1286_v25, %v780_v19 }
  0xd4   : > { %v793_v28 = vadd.f32 %v1286_v25, %v757_v22  ;;  %v801_v29 = vadd.f32 %v1286_v25, %v765_v23 }
  0xd5   : > { %840 = vst [vmem:[%s1293_s24 + $0xa0] sm:$0xff] %v808_v26 }
  0xd6   : > { %848 = vst [vmem:[%s1293_s24 + $0xe0] sm:$0xff] %v816_v27 }
  0xd7   : > { %825 = vst [vmem:[%s1293_s24 + $0x28] sm:$0xff] %v793_v28 }
  0xd8   : > { %833 = vst [vmem:[%s1293_s24 + $0x68] sm:$0xff] %v801_v29  ;;  %v621_v30 = vpop.f32.mrf.mxu2  ;;  %v641_v31 = vpop.f32.mrf.mxu3 }
  0xd9   : > { %v773_v32 = vmul.f32 %v1280_v24, %v621_v30  ;;  %v781_v33 = vmul.f32 %v1280_v24, %v641_v31  ;;  %v584_v34 = vpop.f32.mrf.mxu0  ;;  %v604_v35 = vpop.f32.mrf.mxu1 }
  0xda   : > { %v758_v36 = vmul.f32 %v1280_v24, %v584_v34  ;;  %v766_v37 = vmul.f32 %v1280_v24, %v604_v35 }
  0xdb   : > { %v809_v38 = vadd.f32 %v1286_v25, %v773_v32  ;;  %v817_v39 = vadd.f32 %v1286_v25, %v781_v33 }
  0xdc   : > { %v794_v40 = vadd.f32 %v1286_v25, %v758_v36  ;;  %v802_v41 = vadd.f32 %v1286_v25, %v766_v37 }
  0xdd   : > { %841 = vst [vmem:[%s1293_s24 + $0xa8] sm:$0xff] %v809_v38 }
  0xde   : > { %849 = vst [vmem:[%s1293_s24 + $0xe8] sm:$0xff] %v817_v39 }
  0xdf   : > { %826 = vst [vmem:[%s1293_s24 + $0x30] sm:$0xff] %v794_v40 }
  0xe0   : > { %834 = vst [vmem:[%s1293_s24 + $0x70] sm:$0xff] %v802_v41  ;;  %v624_v42 = vpop.f32.mrf.mxu2  ;;  %v644_v43 = vpop.f32.mrf.mxu3 }
  0xe1   : > { %v774_v44 = vmul.f32 %v1280_v24, %v624_v42  ;;  %v782_v45 = vmul.f32 %v1280_v24, %v644_v43  ;;  %v586_v46 = vpop.f32.mrf.mxu0  ;;  %v606_v47 = vpop.f32.mrf.mxu1 }
  0xe2   : > { %v759_v48 = vmul.f32 %v1280_v24, %v586_v46  ;;  %v767_v49 = vmul.f32 %v1280_v24, %v606_v47 }
  0xe3   : > { %v810_v50 = vadd.f32 %v1286_v25, %v774_v44  ;;  %v818_v51 = vadd.f32 %v1286_v25, %v782_v45 }
  0xe4   : > { %v795_v52 = vadd.f32 %v1286_v25, %v759_v48  ;;  %v803_v53 = vadd.f32 %v1286_v25, %v767_v49 }
  0xe5   : > { %842 = vst [vmem:[%s1293_s24 + $0xb0] sm:$0xff] %v810_v50 }
  0xe6   : > { %850 = vst [vmem:[%s1293_s24 + $0xf0] sm:$0xff] %v818_v51 }
  0xe7   : > { %827 = vst [vmem:[%s1293_s24 + $0x38] sm:$0xff] %v795_v52 }
  0xe8   : > { %835 = vst [vmem:[%s1293_s24 + $0x78] sm:$0xff] %v803_v53  ;;  %v626_v54 = vpop.f32.mrf.mxu2  ;;  %v646_v55 = vpop.f32.mrf.mxu3 }
  0xe9   : > { %v775_v56 = vmul.f32 %v1280_v24, %v626_v54  ;;  %v783_v57 = vmul.f32 %v1280_v24, %v646_v55 }
  0xeb   : > { %v811_v58 = vadd.f32 %v1286_v25, %v775_v56  ;;  %v819_v59 = vadd.f32 %v1286_v25, %v783_v57 }
  0xed   : > { %843 = vst [vmem:[%s1293_s24 + $0xb8] sm:$0xff] %v811_v58 }
  0xee   : > { %851 = vst [vmem:[%s1293_s24 + $0xf8] sm:$0xff] %v819_v59 }
  0xef PF: > { %s14_s17 = sadd.s32 1, %s1181_s17   ;;  %s1403_s15 = smov %s1177_s16 }
  0xf0   : > { %p11_p5 = scmp.ge.s32.totalorder %s14_s17, 4   ;;  %s1404_s16 = smov %s1406_s18 }
  0xf2   :  { %13 = sbr.rel (!%p11_p5) target bundleno = 2 (0x2), region = 83 }

// kernel: _lambda_.77
= control target key start
LH: loop header
LB: loop body
LE: loop exit
PB: predicated region body
PF: predicated region fallthrough
CT: control target
= control target key end

     0   :  { %s592_s1 = inlined_call_operand.vmem [shape: bf16[128,128], index: 1, kind: input, shape index: {}]   ;;  %s593_s2 = inlined_call_operand.vmem [shape: f32[1,128], index: 2, kind: input, shape index: {}]   ;;  %s594_s3 = inlined_call_operand.vmem [shape: f32[1,128], index: 3, kind: input, shape index: {}]   ;;  %s595_s0 = inlined_call_operand.vmem [shape: bf16[128,128], index: 0, kind: input, shape index: {}]   ;;  %s596_s4 = inlined_call_operand.vmem [shape: f32[128,128], index: 4, kind: output, shape index: {}]  }
   0x1   :  { %v420_v0 = vld [vmem:[%s592_s1 + $0x38] sm:$0xff]  ;;  %v419_v1 = vld [vmem:[%s592_s1 + $0x30] sm:$0xff]  ;;  %v418_v2 = vld [vmem:[%s592_s1 + $0x28] sm:$0xff] }
   0x2   :  { %181 = vmatpush.bf16.msra.mxu0 %v420_v0  ;;  %421 = vmatpush.bf16.msra.mxu1 %v420_v0  ;;  %v417_v3 = vld [vmem:[%s592_s1 + $0x20] sm:$0xff]  ;;  %v416_v4 = vld [vmem:[%s592_s1 + $0x18] sm:$0xff]  ;;  %v415_v5 = vld [vmem:[%s592_s1 + $0x10] sm:$0xff] }
   0x3   :  { %422 = vmatpush.bf16.msra.mxu2 %v420_v0  ;;  %423 = vmatpush.bf16.msra.mxu3 %v420_v0  ;;  %v414_v6 = vld [vmem:[%s592_s1 + $0x8] sm:$0xff]  ;;  %v413_v7 = vld [vmem:[%s592_s1] sm:$0xff]  ;;  %v407_v9 = vld [vmem:[%s595_s0 + $0x10] sm:$0xff] }
   0x4   :  { %v405_v8 = vld [vmem:[%s595_s0] sm:$0xff]  ;;  %v411_v11 = vld [vmem:[%s595_s0 + $0x30] sm:$0xff]  ;;  %v406_v12 = vld [vmem:[%s595_s0 + $0x8] sm:$0xff] }
   0x5   :  { %v409_v10 = vld [vmem:[%s595_s0 + $0x20] sm:$0xff]  ;;  %v408_v13 = vld [vmem:[%s595_s0 + $0x18] sm:$0xff]  ;;  %v410_v14 = vld [vmem:[%s595_s0 + $0x28] sm:$0xff] }
   0x6   :  { %182 = vmatpush.bf16.msra.mxu0 %v419_v1  ;;  %424 = vmatpush.bf16.msra.mxu1 %v419_v1  ;;  %v412_v15 = vld [vmem:[%s595_s0 + $0x38] sm:$0xff]  ;;  %v445_v16 = vld [vmem:[%s593_s2] ss:$0 sm:$0xff] }
   0x7   :  { %425 = vmatpush.bf16.msra.mxu2 %v419_v1  ;;  %426 = vmatpush.bf16.msra.mxu3 %v419_v1  ;;  %v526_v17 = vld [vmem:[%s594_s3] ss:$0 sm:$0xff] }
   0xa   :  { %183 = vmatpush.bf16.msra.mxu0 %v418_v2  ;;  %427 = vmatpush.bf16.msra.mxu1 %v418_v2 }
   0xb   :  { %428 = vmatpush.bf16.msra.mxu2 %v418_v2  ;;  %429 = vmatpush.bf16.msra.mxu3 %v418_v2 }
   0xe   :  { %184 = vmatpush.bf16.msra.mxu0 %v417_v3  ;;  %430 = vmatpush.bf16.msra.mxu1 %v417_v3 }
   0xf   :  { %431 = vmatpush.bf16.msra.mxu2 %v417_v3  ;;  %432 = vmatpush.bf16.msra.mxu3 %v417_v3 }
  0x12   :  { %185 = vmatpush.bf16.msra.mxu0 %v416_v4  ;;  %433 = vmatpush.bf16.msra.mxu1 %v416_v4 }
  0x13   :  { %434 = vmatpush.bf16.msra.mxu2 %v416_v4  ;;  %435 = vmatpush.bf16.msra.mxu3 %v416_v4 }
  0x16   :  { %186 = vmatpush.bf16.msra.mxu0 %v415_v5  ;;  %436 = vmatpush.bf16.msra.mxu1 %v415_v5 }
  0x17   :  { %437 = vmatpush.bf16.msra.mxu2 %v415_v5  ;;  %438 = vmatpush.bf16.msra.mxu3 %v415_v5 }
  0x1a   :  { %187 = vmatpush.bf16.msra.mxu0 %v414_v6  ;;  %439 = vmatpush.bf16.msra.mxu1 %v414_v6 }
  0x1b   :  { %440 = vmatpush.bf16.msra.mxu2 %v414_v6  ;;  %441 = vmatpush.bf16.msra.mxu3 %v414_v6 }
  0x1e   :  { %188 = vmatpush.bf16.msra.mxu0 %v413_v7  ;;  %442 = vmatpush.bf16.msra.mxu1 %v413_v7 }
  0x1f   :  { %443 = vmatpush.bf16.msra.mxu2 %v413_v7  ;;  %444 = vmatpush.bf16.msra.mxu3 %v413_v7 }
  0x21   :  { %189 = vmatmul.bf16.vlgmr.msra.gmra.mxu0 %v405_v8  ;;  %199 = vmatmul.bf16.vlgmr.msra.gmra.mxu1 %v407_v9 }
  0x22   :  { %209 = vmatmul.bf16.vlgmr.msra.gmra.mxu2 %v409_v10  ;;  %219 = vmatmul.bf16.vlgmr.msra.gmra.mxu3 %v411_v11 }
  0x31   :  { %194 = vmatmul.bf16.gmra.mxu0 %v406_v12  ;;  %204 = vmatmul.bf16.gmra.mxu1 %v408_v13 }
  0x32   :  { %214 = vmatmul.bf16.gmra.mxu2 %v410_v14  ;;  %224 = vmatmul.bf16.gmra.mxu3 %v412_v15 }
  0x9e   :  { %v190_v18 = vpop.f32.mrf.mxu0  ;;  %v200_v19 = vpop.f32.mrf.mxu1 }
  0x9f   :  { %v285_v20 = vmul.f32 %v445_v16, %v190_v18  ;;  %v289_v21 = vmul.f32 %v445_v16, %v200_v19 }
  0xa1   :  { %v305_v22 = vadd.f32 %v526_v17, %v285_v20  ;;  %v309_v23 = vadd.f32 %v526_v17, %v289_v21 }
  0xa3   :  { %321 = vst [vmem:[%s596_s4] sm:$0xff] %v305_v22 }
  0xa4   :  { %325 = vst [vmem:[%s596_s4 + $0x20] sm:$0xff] %v309_v23 }
  0xa5   :  { %v210_v24 = vpop.f32.mrf.mxu2  ;;  %v220_v25 = vpop.f32.mrf.mxu3 }
  0xa6   :  { %v293_v26 = vmul.f32 %v445_v16, %v210_v24  ;;  %v297_v27 = vmul.f32 %v445_v16, %v220_v25  ;;  %v192_v28 = vpop.f32.mrf.mxu0  ;;  %v202_v29 = vpop.f32.mrf.mxu1 }
  0xa7   :  { %v286_v30 = vmul.f32 %v445_v16, %v192_v28  ;;  %v290_v31 = vmul.f32 %v445_v16, %v202_v29 }
  0xa8   :  { %v313_v32 = vadd.f32 %v526_v17, %v293_v26  ;;  %v317_v33 = vadd.f32 %v526_v17, %v297_v27 }
  0xa9   :  { %v306_v34 = vadd.f32 %v526_v17, %v286_v30  ;;  %v310_v35 = vadd.f32 %v526_v17, %v290_v31 }
  0xaa   :  { %329 = vst [vmem:[%s596_s4 + $0x40] sm:$0xff] %v313_v32 }
  0xab   :  { %333 = vst [vmem:[%s596_s4 + $0x60] sm:$0xff] %v317_v33 }
  0xac   :  { %322 = vst [vmem:[%s596_s4 + $0x8] sm:$0xff] %v306_v34 }
  0xad   :  { %326 = vst [vmem:[%s596_s4 + $0x28] sm:$0xff] %v310_v35  ;;  %v212_v36 = vpop.f32.mrf.mxu2  ;;  %v222_v37 = vpop.f32.mrf.mxu3 }
  0xae   :  { %v294_v38 = vmul.f32 %v445_v16, %v212_v36  ;;  %v298_v39 = vmul.f32 %v445_v16, %v222_v37  ;;  %v195_v40 = vpop.f32.mrf.mxu0  ;;  %v205_v41 = vpop.f32.mrf.mxu1 }
  0xaf   :  { %v287_v42 = vmul.f32 %v445_v16, %v195_v40  ;;  %v291_v43 = vmul.f32 %v445_v16, %v205_v41 }
  0xb0   :  { %v314_v44 = vadd.f32 %v526_v17, %v294_v38  ;;  %v318_v45 = vadd.f32 %v526_v17, %v298_v39 }
  0xb1   :  { %v307_v46 = vadd.f32 %v526_v17, %v287_v42  ;;  %v311_v47 = vadd.f32 %v526_v17, %v291_v43 }
  0xb2   :  { %330 = vst [vmem:[%s596_s4 + $0x48] sm:$0xff] %v314_v44 }
  0xb3   :  { %334 = vst [vmem:[%s596_s4 + $0x68] sm:$0xff] %v318_v45 }
  0xb4   :  { %323 = vst [vmem:[%s596_s4 + $0x10] sm:$0xff] %v307_v46 }
  0xb5   :  { %327 = vst [vmem:[%s596_s4 + $0x30] sm:$0xff] %v311_v47  ;;  %v215_v48 = vpop.f32.mrf.mxu2  ;;  %v225_v49 = vpop.f32.mrf.mxu3 }
  0xb6   :  { %v295_v50 = vmul.f32 %v445_v16, %v215_v48  ;;  %v299_v51 = vmul.f32 %v445_v16, %v225_v49  ;;  %v197_v52 = vpop.f32.mrf.mxu0  ;;  %v207_v53 = vpop.f32.mrf.mxu1 }
  0xb7   :  { %v288_v54 = vmul.f32 %v445_v16, %v197_v52  ;;  %v292_v55 = vmul.f32 %v445_v16, %v207_v53 }
  0xb8   :  { %v315_v56 = vadd.f32 %v526_v17, %v295_v50  ;;  %v319_v57 = vadd.f32 %v526_v17, %v299_v51 }
  0xb9   :  { %v308_v58 = vadd.f32 %v526_v17, %v288_v54  ;;  %v312_v59 = vadd.f32 %v526_v17, %v292_v55 }
  0xba   :  { %331 = vst [vmem:[%s596_s4 + $0x50] sm:$0xff] %v315_v56 }
  0xbb   :  { %335 = vst [vmem:[%s596_s4 + $0x70] sm:$0xff] %v319_v57 }
  0xbc   :  { %324 = vst [vmem:[%s596_s4 + $0x18] sm:$0xff] %v308_v58 }
  0xbd   :  { %328 = vst [vmem:[%s596_s4 + $0x38] sm:$0xff] %v312_v59  ;;  %v217_v60 = vpop.f32.mrf.mxu2  ;;  %v227_v61 = vpop.f32.mrf.mxu3 }
  0xbe   :  { %v296_v62 = vmul.f32 %v445_v16, %v217_v60  ;;  %v300_v63 = vmul.f32 %v445_v16, %v227_v61 }
  0xc0   :  { %v316_v0 = vadd.f32 %v526_v17, %v296_v62  ;;  %v320_v1 = vadd.f32 %v526_v17, %v300_v63 }
  0xc2   :  { %332 = vst [vmem:[%s596_s4 + $0x58] sm:$0xff] %v316_v0 }
  0xc3   :  { %336 = vst [vmem:[%s596_s4 + $0x78] sm:$0xff] %v320_v1 }

// kernel: _lambda_.76
= control target key start
LH: loop header
LB: loop body
LE: loop exit
PB: predicated region body
PF: predicated region fallthrough
CT: control target
= control target key end

     0   :  { %s300_s1 = inlined_call_operand.vmem [shape: bf16[128,128], index: 1, kind: input, shape index: {}]   ;;  %s301_s2 = inlined_call_operand.vmem [shape: f32[1,128], index: 2, kind: input, shape index: {}]   ;;  %s302_s3 = inlined_call_operand.vmem [shape: f32[1,128], index: 3, kind: input, shape index: {}]   ;;  %s303_s0 = inlined_call_operand.vmem [shape: bf16[32,128], index: 0, kind: input, shape index: {}]   ;;  %s304_s4 = inlined_call_operand.vmem [shape: f32[32,128], index: 4, kind: output, shape index: {}]  }
   0x1   :  { %v216_v0 = vld [vmem:[%s300_s1 + $0x38] sm:$0xff]  ;;  %v215_v1 = vld [vmem:[%s300_s1 + $0x30] sm:$0xff]  ;;  %v214_v2 = vld [vmem:[%s300_s1 + $0x28] sm:$0xff] }
   0x2   :  { %109 = vmatpush.bf16.msra.mxu0 %v216_v0  ;;  %217 = vmatpush.bf16.msra.mxu1 %v216_v0  ;;  %v213_v3 = vld [vmem:[%s300_s1 + $0x20] sm:$0xff]  ;;  %v212_v4 = vld [vmem:[%s300_s1 + $0x18] sm:$0xff]  ;;  %v211_v5 = vld [vmem:[%s300_s1 + $0x10] sm:$0xff] }
   0x3   :  { %v210_v6 = vld [vmem:[%s300_s1 + $0x8] sm:$0xff]  ;;  %v209_v7 = vld [vmem:[%s300_s1] sm:$0xff] }
   0x4   :  { %v207_v8 = vld [vmem:[%s303_s0] sm:$0xff]  ;;  %v208_v9 = vld [vmem:[%s303_s0 + $0x8] sm:$0xff] }
   0x5   :  { %v225_v10 = vld [vmem:[%s301_s2] ss:$0 sm:$0xff] }
   0x6   :  { %110 = vmatpush.bf16.msra.mxu0 %v215_v1  ;;  %218 = vmatpush.bf16.msra.mxu1 %v215_v1  ;;  %v226_v11 = vld [vmem:[%s302_s3] ss:$0 sm:$0xff] }
   0xa   :  { %111 = vmatpush.bf16.msra.mxu0 %v214_v2  ;;  %219 = vmatpush.bf16.msra.mxu1 %v214_v2 }
   0xe   :  { %112 = vmatpush.bf16.msra.mxu0 %v213_v3  ;;  %220 = vmatpush.bf16.msra.mxu1 %v213_v3 }
  0x12   :  { %113 = vmatpush.bf16.msra.mxu0 %v212_v4  ;;  %221 = vmatpush.bf16.msra.mxu1 %v212_v4 }
  0x16   :  { %114 = vmatpush.bf16.msra.mxu0 %v211_v5  ;;  %222 = vmatpush.bf16.msra.mxu1 %v211_v5 }
  0x1a   :  { %115 = vmatpush.bf16.msra.mxu0 %v210_v6  ;;  %223 = vmatpush.bf16.msra.mxu1 %v210_v6 }
  0x1e   :  { %116 = vmatpush.bf16.msra.mxu0 %v209_v7  ;;  %224 = vmatpush.bf16.msra.mxu1 %v209_v7 }
  0x21   :  { %117 = vmatmul.bf16.vlgmr.msra.gmra.mxu0 %v207_v8  ;;  %122 = vmatmul.bf16.vlgmr.msra.gmra.mxu1 %v208_v9 }
  0x9e   :  { %v118_v12 = vpop.f32.mrf.mxu0  ;;  %v123_v13 = vpop.f32.mrf.mxu1 }
  0x9f   :  { %v147_v14 = vmul.f32 %v225_v10, %v118_v12  ;;  %v149_v15 = vmul.f32 %v225_v10, %v123_v13 }
  0xa1   :  { %v155_v16 = vadd.f32 %v226_v11, %v147_v14  ;;  %v157_v17 = vadd.f32 %v226_v11, %v149_v15 }
  0xa3   :  { %159 = vst [vmem:[%s304_s4] sm:$0xff] %v155_v16 }
  0xa4   :  { %161 = vst [vmem:[%s304_s4 + $0x10] sm:$0xff] %v157_v17 }
  0xa6   :  { %v120_v18 = vpop.f32.mrf.mxu0  ;;  %v125_v19 = vpop.f32.mrf.mxu1 }
  0xa7   :  { %v148_v20 = vmul.f32 %v225_v10, %v120_v18  ;;  %v150_v21 = vmul.f32 %v225_v10, %v125_v19 }
  0xa9   :  { %v156_v22 = vadd.f32 %v226_v11, %v148_v20  ;;  %v158_v23 = vadd.f32 %v226_v11, %v150_v21 }
  0xab   :  { %160 = vst [vmem:[%s304_s4 + $0x8] sm:$0xff] %v156_v22 }
  0xac   :  { %162 = vst [vmem:[%s304_s4 + $0x18] sm:$0xff] %v158_v23 }

// kernel: _lambda_.79
= control target key start
LH: loop header
LB: loop body
LE: loop exit
PB: predicated region body
PF: predicated region fallthrough
CT: control target
= control target key end

     0   :  { %s1946_s15 = smov 0   ;;  %s1948_s16 = smov 0   ;;  %s2559_s0 = inlined_call_operand.vmem [shape: bf16[512,128], index: 0, kind: input, shape index: {}]   ;;  %s2560_s1 = inlined_call_operand.vmem [shape: bf16[128,128], index: 1, kind: input, shape index: {}]   ;;  %s2561_s2 = inlined_call_operand.vmem [shape: f32[1,128], index: 2, kind: input, shape index: {}]   ;;  %s2562_s3 = inlined_call_operand.vmem [shape: f32[1,128], index: 3, kind: input, shape index: {}]   ;;  %s2563_s4 = inlined_call_operand.vmem [shape: f32[512,128], index: 4, kind: output, shape index: {}]  }
   0x1   :  { %s1950_s17 = smov 0  }
   0x2 LB: > { %s33_s18 = sadd.s32 1, %s1915_s16  ;;  %p1590_p0 = scmp.ge.s32.totalorder %s1919_s17, 1  ;;  %s1919_s17 = sphi %s1950_s17, %s14_s17   ;;  %s1915_s16 = sphi %s1948_s16, %s2609_s16   ;;  %s1911_s15 = sphi %s1946_s15, %s2608_s15  }
   0x3   : > { %p35_p1 = scmp.ge.s32.totalorder %s33_s18, 2  ;;  %p221_p2 = scmp.lt.s32.totalorder %s1919_s17, 3 }
   0x5   : > { %s2611_s18 = smov (%p35_p1, %s33_s18), 0  ;;  %p222_p3 = pnand %p1590_p0, %p221_p2 }
   0x6   : > { %s1591_s27 = sshll.u32 (!%p222_p3), %s1911_s15, 5 }
   0x7   : > { %225 = sbr.rel (%p222_p3) target bundleno = 340 (0x154), region = 36  ;;  %p268_p4 = scmp.lt.s32.totalorder (!%p222_p3), %s1591_s27, 63 }
   0xc   : > { %v1716_v0 = vld [vmem:[%s2560_s1 + $0x38] sm:$0xff]  ;;  %v1715_v1 = vld [vmem:[%s2560_s1 + $0x30] sm:$0xff]  ;;  %v1714_v2 = vld [vmem:[%s2560_s1 + $0x28] sm:$0xff]  ;;  %s2613_s27 = smov (!%p268_p4, %s1591_s27), 63 }
   0xd   : > { %560 = vmatpush.bf16.msra.mxu0 %v1716_v0  ;;  %1717 = vmatpush.bf16.msra.mxu1 %v1716_v0  ;;  %v1713_v3 = vld [vmem:[%s2560_s1 + $0x20] sm:$0xff]  ;;  %v1712_v4 = vld [vmem:[%s2560_s1 + $0x18] sm:$0xff]  ;;  %v1711_v5 = vld [vmem:[%s2560_s1 + $0x10] sm:$0xff]  ;;  %s1592_s8 = sshll.u32 %s2613_s27, 2  ;;  %s1594_s21 = sshll.u32 %s2613_s27, 3 }
   0xe   : > { %1718 = vmatpush.bf16.msra.mxu2 %v1716_v0  ;;  %1719 = vmatpush.bf16.msra.mxu3 %v1716_v0  ;;  %v1710_v6 = vld [vmem:[%s2560_s1 + $0x8] sm:$0xff]  ;;  %v1709_v7 = vld [vmem:[%s2560_s1] sm:$0xff]  ;;  %s1997_s13 = scalar_lea.vmem %s2559_s0, %s1592_s8  ;;  %s2093_s24 = scalar_lea.vmem %s2563_s4, %s1594_s21 }
   0xf   : > { %v1693_v8 = vld [vmem:[%s1997_s13] sm:$0xff]  ;;  %v1694_v12 = vld [vmem:[%s1997_s13 + $0x8] sm:$0xff]  ;;  %v1695_v16 = vld [vmem:[%s1997_s13 + $0x10] sm:$0xff] }
  0x10   : > { %v1697_v9 = vld [vmem:[%s1997_s13 + $0x20] sm:$0xff]  ;;  %v1698_v13 = vld [vmem:[%s1997_s13 + $0x28] sm:$0xff]  ;;  %v1699_v17 = vld [vmem:[%s1997_s13 + $0x30] sm:$0xff] }
  0x11   : > { %561 = vmatpush.bf16.msra.mxu0 %v1715_v1  ;;  %1720 = vmatpush.bf16.msra.mxu1 %v1715_v1  ;;  %v1701_v10 = vld [vmem:[%s1997_s13 + $0x40] sm:$0xff]  ;;  %v1702_v14 = vld [vmem:[%s1997_s13 + $0x48] sm:$0xff]  ;;  %v1703_v18 = vld [vmem:[%s1997_s13 + $0x50] sm:$0xff] }
  0x12   : > { %1721 = vmatpush.bf16.msra.mxu2 %v1715_v1  ;;  %1722 = vmatpush.bf16.msra.mxu3 %v1715_v1  ;;  %v1705_v11 = vld [vmem:[%s1997_s13 + $0x60] sm:$0xff]  ;;  %v1706_v15 = vld [vmem:[%s1997_s13 + $0x68] sm:$0xff]  ;;  %v1707_v19 = vld [vmem:[%s1997_s13 + $0x70] sm:$0xff] }
  0x13   : > { %v1696_v20 = vld [vmem:[%s1997_s13 + $0x18] sm:$0xff]  ;;  %v2018_v24 = vld [vmem:[%s2561_s2] ss:$0 sm:$0xff] }
  0x14   : > { %v1700_v21 = vld [vmem:[%s1997_s13 + $0x38] sm:$0xff]  ;;  %v2023_v25 = vld [vmem:[%s2562_s3] ss:$0 sm:$0xff] }
  0x15   : > { %562 = vmatpush.bf16.msra.mxu0 %v1714_v2  ;;  %1723 = vmatpush.bf16.msra.mxu1 %v1714_v2  ;;  %v1704_v22 = vld [vmem:[%s1997_s13 + $0x58] sm:$0xff] }
  0x16   : > { %1724 = vmatpush.bf16.msra.mxu2 %v1714_v2  ;;  %1725 = vmatpush.bf16.msra.mxu3 %v1714_v2  ;;  %v1708_v23 = vld [vmem:[%s1997_s13 + $0x78] sm:$0xff] }
  0x19   : > { %563 = vmatpush.bf16.msra.mxu0 %v1713_v3  ;;  %1726 = vmatpush.bf16.msra.mxu1 %v1713_v3 }
  0x1a   : > { %1727 = vmatpush.bf16.msra.mxu2 %v1713_v3  ;;  %1728 = vmatpush.bf16.msra.mxu3 %v1713_v3 }
  0x1d   : > { %564 = vmatpush.bf16.msra.mxu0 %v1712_v4  ;;  %1729 = vmatpush.bf16.msra.mxu1 %v1712_v4 }
  0x1e   : > { %1730 = vmatpush.bf16.msra.mxu2 %v1712_v4  ;;  %1731 = vmatpush.bf16.msra.mxu3 %v1712_v4 }
  0x21   : > { %565 = vmatpush.bf16.msra.mxu0 %v1711_v5  ;;  %1732 = vmatpush.bf16.msra.mxu1 %v1711_v5 }
  0x22   : > { %1733 = vmatpush.bf16.msra.mxu2 %v1711_v5  ;;  %1734 = vmatpush.bf16.msra.mxu3 %v1711_v5 }
  0x25   : > { %566 = vmatpush.bf16.msra.mxu0 %v1710_v6  ;;  %1735 = vmatpush.bf16.msra.mxu1 %v1710_v6 }
  0x26   : > { %1736 = vmatpush.bf16.msra.mxu2 %v1710_v6  ;;  %1737 = vmatpush.bf16.msra.mxu3 %v1710_v6 }
  0x29   : > { %567 = vmatpush.bf16.msra.mxu0 %v1709_v7  ;;  %1738 = vmatpush.bf16.msra.mxu1 %v1709_v7 }
  0x2a   : > { %1739 = vmatpush.bf16.msra.mxu2 %v1709_v7  ;;  %1740 = vmatpush.bf16.msra.mxu3 %v1709_v7 }
  0x2c   : > { %568 = vmatmul.bf16.vlgmr.msra.gmra.mxu0 %v1693_v8  ;;  %588 = vmatmul.bf16.vlgmr.msra.gmra.mxu1 %v1697_v9 }
  0x2d   : > { %608 = vmatmul.bf16.vlgmr.msra.gmra.mxu2 %v1701_v10  ;;  %628 = vmatmul.bf16.vlgmr.msra.gmra.mxu3 %v1705_v11 }
  0x3c   : > { %573 = vmatmul.bf16.gmra.mxu0 %v1694_v12  ;;  %593 = vmatmul.bf16.gmra.mxu1 %v1698_v13 }
  0x3d   : > { %613 = vmatmul.bf16.gmra.mxu2 %v1702_v14  ;;  %633 = vmatmul.bf16.gmra.mxu3 %v1706_v15 }
  0x4c   : > { %578 = vmatmul.bf16.gmra.mxu0 %v1695_v16  ;;  %598 = vmatmul.bf16.gmra.mxu1 %v1699_v17 }
  0x4d   : > { %618 = vmatmul.bf16.gmra.mxu2 %v1703_v18  ;;  %638 = vmatmul.bf16.gmra.mxu3 %v1707_v19 }
  0x5c   : > { %583 = vmatmul.bf16.gmra.mxu0 %v1696_v20  ;;  %603 = vmatmul.bf16.gmra.mxu1 %v1700_v21 }
  0x5d   : > { %623 = vmatmul.bf16.gmra.mxu2 %v1704_v22  ;;  %643 = vmatmul.bf16.gmra.mxu3 %v1708_v23 }
  0xa9   : > { %v569_v26 = vpop.f32.mrf.mxu0  ;;  %v589_v27 = vpop.f32.mrf.mxu1 }
  0xaa   : > { %v752_v28 = vmul.f32 %v2018_v24, %v569_v26  ;;  %v760_v29 = vmul.f32 %v2018_v24, %v589_v27 }
  0xac   : > { %v788_v30 = vadd.f32 %v2023_v25, %v752_v28  ;;  %v796_v31 = vadd.f32 %v2023_v25, %v760_v29 }
  0xae   : > { %v820_v32 = vsub.f32 0.0, %v788_v30  ;;  %v828_v33 = vsub.f32 0.0, %v796_v31 }
  0xb0   : > { %v852_v34 = vmul.f32 1.442695, %v820_v32  ;;  %v868_v35 = vmul.f32 1.442695, %v828_v33  ;;  %v609_v36 = vpop.f32.mrf.mxu2  ;;  %v629_v37 = vpop.f32.mrf.mxu3 }
  0xb1   : > { %v768_v38 = vmul.f32 %v2018_v24, %v609_v36  ;;  %v776_v39 = vmul.f32 %v2018_v24, %v629_v37  ;;  %v571_v40 = vpop.f32.mrf.mxu0  ;;  %v591_v41 = vpop.f32.mrf.mxu1 }
  0xb2   : > { %1767 = vpow2.f32 %v852_v34  ;;  %v753_v42 = vmul.f32 %v2018_v24, %v571_v40  ;;  %v761_v43 = vmul.f32 %v2018_v24, %v591_v41 }
  0xb3   : > { %1769 = vpow2.f32 %v868_v35  ;;  %v804_v44 = vadd.f32 %v2023_v25, %v768_v38  ;;  %v812_v45 = vadd.f32 %v2023_v25, %v776_v39 }
  0xb4   : > { %v789_v46 = vadd.f32 %v2023_v25, %v753_v42  ;;  %v797_v47 = vadd.f32 %v2023_v25, %v761_v43 }
  0xb5   : > { %v836_v48 = vsub.f32 0.0, %v804_v44  ;;  %v844_v49 = vsub.f32 0.0, %v812_v45 }
  0xb6   : > { %v821_v50 = vsub.f32 0.0, %v789_v46  ;;  %v829_v51 = vsub.f32 0.0, %v797_v47 }
  0xb7   : > { %v884_v52 = vmul.f32 1.442695, %v836_v48  ;;  %v900_v53 = vmul.f32 1.442695, %v844_v49 }
  0xb8   : > { %v1768_v54 = vpop.eup %1767  ;;  %v611_v55 = vpop.f32.mrf.mxu2  ;;  %v854_v58 = vmul.f32 1.442695, %v821_v50  ;;  %v870_v63 = vmul.f32 1.442695, %v829_v51 }
  0xb9   : > { %v1770_v56 = vpop.eup %1769  ;;  %v2037_v57 = vadd.f32 1.0, %v1768_v54  ;;  %1771 = vpow2.f32 %v884_v52  ;;  %v769_v59 = vmul.f32 %v2018_v24, %v611_v55  ;;  %v631_v60 = vpop.f32.mrf.mxu3 }
  0xba   : > { %v574_v61 = vpop.f32.mrf.mxu0  ;;  %v2040_v62 = vadd.f32 1.0, %v1770_v56  ;;  %1773 = vpow2.f32 %v900_v53  ;;  %v594_v0 = vpop.f32.mrf.mxu1  ;;  %v777_v1 = vmul.f32 %v2018_v24, %v631_v60 }
  0xbb   : > { %1775 = vrcp.f32 %v2037_v57  ;;  %v754_v2 = vmul.f32 %v2018_v24, %v574_v61  ;;  %v805_v3 = vadd.f32 %v2023_v25, %v769_v59  ;;  %v762_v4 = vmul.f32 %v2018_v24, %v594_v0 }
  0xbc   : > { %1777 = vrcp.f32 %v2040_v62  ;;  %v957_v5 = vand.u32 2147483647, %v2037_v57  ;;  %v959_v6 = vand.u32 2147483648, %v2037_v57  ;;  %v1077_v8 = vand.u32 2147483647, %v2040_v62 }
  0xbd   : > { %1779 = vpow2.f32 %v854_v58  ;;  %v1079_v9 = vand.u32 2147483648, %v2040_v62  ;;  %v837_v10 = vsub.f32 0.0, %v805_v3  ;;  %v813_v13 = vadd.f32 %v2023_v25, %v777_v1 }
  0xbe   : > { %1781 = vpow2.f32 %v870_v63  ;;  %v2056_v14 = vadd.f32 %v2023_v25, %v754_v2  ;;  %vm953_vm0 = vweird.f32 %v2037_v57  ;;  %vm1073_vm1 = vweird.f32 %v2040_v62 }
  0xbf   : > { %v1772_v7 = vpop.eup %1771  ;;  %v2063_v17 = vadd.f32 %v2023_v25, %v762_v4  ;;  %vm2066_vm2 = vcmp.eq.f32.partialorder %v957_v5, 8.507059e+37  ;;  %v960_v21 = vor.u32 1.1754944e-38, %v959_v6  ;;  %vm2072_vm3 = vcmp.eq.f32.partialorder %v1077_v8, 8.507059e+37 }
  0xc0   : > { %v1774_v11 = vpop.eup %1773  ;;  %v2052_v12 = vadd.f32 1.0, %v1772_v7  ;;  %v1080_v27 = vor.u32 1.1754944e-38, %v1079_v9  ;;  %v886_v28 = vmul.f32 1.442695, %v837_v10  ;;  %v845_v31 = vsub.f32 0.0, %v813_v13 }
  0xc1   : > { %v1776_v15 = vpop.eup %1775  ;;  %v2060_v16 = vadd.f32 1.0, %v1774_v11  ;;  %v822_v32 = vsub.f32 0.0, %v2056_v14  ;;  %v830_v35 = vsub.f32 0.0, %v2063_v17  ;;  %v614_v17 = vpop.f32.mrf.mxu2 }
  0xc2   : > { %v1778_v18 = vpop.eup %1777  ;;  %v949_v19 = vmul.f32 %v1776_v15, %v2037_v57  ;;  %1783 = vrcp.f32 %v2052_v12  ;;  %vm954_vm4 = vweird.f32 %v1776_v15  ;;  %v1197_v34 = vand.u32 2147483647, %v2052_v12 }
  0xc3   : > { %v1780_v22 = vpop.eup %1779  ;;  %v1069_v23 = vmul.f32 %v1778_v18, %v2040_v62  ;;  %1785 = vrcp.f32 %v2060_v16  ;;  %v1199_v37 = vand.u32 2147483648, %v2052_v12  ;;  %vm1074_vm5 = vweird.f32 %v1778_v18  ;;  %vm955_vm7 = vmor %vm953_vm0, %vm954_vm4 }
  0xc4   : > { %v1782_v29 = vpop.eup %1781  ;;  %v950_v30 = vsub.f32 1.0, %v949_v19  ;;  %v2082_v38 = vadd.f32 1.0, %v1780_v22  ;;  %vm1193_vm6 = vweird.f32 %v2052_v12  ;;  %1787 = vpow2.f32 %v886_v28  ;;  %vm1075_vm9 = vmor %vm1073_vm1, %vm1074_vm5 }
  0xc5   : > { %v1070_v33 = vsub.f32 1.0, %v1069_v23  ;;  %v2084_v39 = vadd.f32 1.0, %v1782_v29  ;;  %v1317_v43 = vand.u32 2147483647, %v2060_v16  ;;  %v1319_v44 = vand.u32 2147483648, %v2060_v16 }
  0xc6   : > { %v951_v36 = vmul.f32 %v1776_v15, %v950_v30  ;;  %1789 = vrcp.f32 %v2082_v38  ;;  %vm1313_vm8 = vweird.f32 %v2060_v16  ;;  %v902_v47 = vmul.f32 1.442695, %v845_v31 }
  0xc7   : > { %v1071_v40 = vmul.f32 %v1778_v18, %v1070_v33  ;;  %vm2103_vm10 = vcmp.eq.f32.partialorder %v1197_v34, 8.507059e+37  ;;  %v1200_v51 = vor.u32 1.1754944e-38, %v1199_v37  ;;  %1791 = vrcp.f32 %v2084_v39  ;;  %v576_v34 = vpop.f32.mrf.mxu0 }
  0xc8   : > { %v1784_v41 = vpop.eup %1783  ;;  %v952_v42 = vadd.f32 %v1776_v15, %v951_v36  ;;  %vm2114_vm11 = vcmp.eq.f32.partialorder %v1317_v43, 8.507059e+37  ;;  %v1320_v58 = vor.u32 1.1754944e-38, %v1319_v44  ;;  %v972_v59 = vand.u32 2147483647, %v2082_v38 }
  0xc9   : > { %v1072_v45 = vadd.f32 %v1778_v18, %v1071_v40  ;;  %v1189_v46 = vmul.f32 %v1784_v41, %v2052_v12  ;;  %v1786_v48 = vpop.eup %1785  ;;  %vm1194_vm12 = vweird.f32 %v1784_v41  ;;  %1793 = vpow2.f32 %v902_v47 }
  0xca   : > { %v956_v49 = vsel %vm955_vm7, %v1776_v15, %v952_v42  ;;  %v1309_v55 = vmul.f32 %v1786_v48, %v2060_v16  ;;  %v1788_v60 = vpop.eup %1787  ;;  %vm1314_vm13 = vweird.f32 %v1786_v48  ;;  %vm968_vm14 = vweird.f32 %v2082_v38  ;;  %vm1195_vm15 = vmor %vm1193_vm6, %vm1194_vm12 }
  0xcb   : > { %v961_v52 = vsel %vm2066_vm2, %v960_v21, %v956_v49  ;;  %v1076_v53 = vsel %vm1075_vm9, %v1778_v18, %v1072_v45  ;;  %v1190_v54 = vsub.f32 1.0, %v1189_v46  ;;  %v974_v0 = vand.u32 2147483648, %v2082_v38  ;;  %vm1315_vm2 = vmor %vm1313_vm8, %vm1314_vm13  ;;  %v634_v18 = vpop.f32.mrf.mxu3 }
  0xcc   : > { %1428 = vst [vmem:[%s2093_s24] sm:$0xff] %v961_v52  ;;  %v1081_v56 = vsel %vm2072_vm3, %v1080_v27, %v1076_v53  ;;  %v1310_v62 = vsub.f32 1.0, %v1309_v55  ;;  %v1790_v63 = vpop.eup %1789  ;;  %v2122_v1 = vadd.f32 1.0, %v1788_v60  ;;  %v856_v5 = vmul.f32 1.442695, %v822_v32  ;;  %v596_v52 = vpop.f32.mrf.mxu1 }
  0xcd   : > { %1436 = vst [vmem:[%s2093_s24 + $0x40] sm:$0xff] %v1081_v56  ;;  %v1191_v61 = vmul.f32 %v1784_v41, %v1190_v54  ;;  %v964_v4 = vmul.f32 %v1790_v63, %v2082_v38  ;;  %v1792_v6 = vpop.eup %1791  ;;  %vm2127_vm0 = vcmp.eq.f32.partialorder %v972_v59, 8.507059e+37  ;;  %vm1088_vm1 = vweird.f32 %v2084_v39 }
  0xce   : > { %v1311_v3 = vmul.f32 %v1786_v48, %v1310_v62  ;;  %1795 = vrcp.f32 %v2122_v1  ;;  %v872_v8 = vmul.f32 1.442695, %v830_v35  ;;  %v1084_v13 = vmul.f32 %v1792_v6, %v2084_v39 }
  0xcf   : > { %v1192_v2 = vadd.f32 %v1784_v41, %v1191_v61  ;;  %v965_v11 = vsub.f32 1.0, %v964_v4  ;;  %vm969_vm3 = vweird.f32 %v1790_v63  ;;  %v1092_v12 = vand.u32 2147483647, %v2084_v39  ;;  %v1794_v19 = vpop.eup %1793 }
  0xd0   : > { %v1312_v10 = vadd.f32 %v1786_v48, %v1311_v3  ;;  %v1094_v15 = vand.u32 2147483648, %v2084_v39  ;;  %v1085_v22 = vsub.f32 1.0, %v1084_v13  ;;  %1797 = vpow2.f32 %v856_v5  ;;  %vm970_vm5 = vmor %vm968_vm14, %vm969_vm3 }
  0xd1   : > { %v1196_v9 = vsel %vm1195_vm15, %v1784_v41, %v1192_v2  ;;  %v966_v21 = vmul.f32 %v1790_v63, %v965_v11  ;;  %vm1089_vm4 = vweird.f32 %v1792_v6  ;;  %v2144_v16 = vadd.f32 1.0, %v1794_v19 }
  0xd2   : > { %v1201_v14 = vsel %vm2103_vm10, %v1200_v51, %v1196_v9  ;;  %v1316_v20 = vsel %vm1315_vm2, %v1786_v48, %v1312_v10  ;;  %1799 = vpow2.f32 %v872_v8  ;;  %v1086_v27 = vmul.f32 %v1792_v6, %v1085_v22  ;;  %vm1090_vm8 = vmor %vm1088_vm1, %vm1089_vm4 }
  0xd3   : > { %1444 = vst [vmem:[%s2093_s24 + $0x80] sm:$0xff] %v1201_v14  ;;  %v1321_v23 = vsel %vm2114_vm11, %v1320_v58, %v1316_v20  ;;  %v967_v26 = vadd.f32 %v1790_v63, %v966_v21  ;;  %v770_v28 = vmul.f32 %v2018_v24, %v614_v17  ;;  %v778_v29 = vmul.f32 %v2018_v24, %v634_v18  ;;  %v636_v10 = vpop.f32.mrf.mxu3 }
  0xd4   : > { %1452 = vst [vmem:[%s2093_s24 + $0xc0] sm:$0xff] %v1321_v23  ;;  %v1796_v30 = vpop.eup %1795  ;;  %v975_v31 = vor.u32 1.1754944e-38, %v974_v0  ;;  %vm2152_vm6 = vcmp.eq.f32.partialorder %v1092_v12, 8.507059e+37  ;;  %v1095_v33 = vor.u32 1.1754944e-38, %v1094_v15  ;;  %1801 = vrcp.f32 %v2144_v16 }
  0xd5   : > { %v971_v35 = vsel %vm970_vm5, %v1790_v63, %v967_v26  ;;  %v1087_v36 = vadd.f32 %v1792_v6, %v1086_v27  ;;  %v1204_v37 = vmul.f32 %v1796_v30, %v2122_v1  ;;  %vm1208_vm7 = vweird.f32 %v2122_v1  ;;  %v579_v27 = vpop.f32.mrf.mxu0 }
  0xd6   : > { %v976_v38 = vsel %vm2127_vm0, %v975_v31, %v971_v35  ;;  %v1212_v40 = vand.u32 2147483647, %v2122_v1  ;;  %v1214_v41 = vand.u32 2147483648, %v2122_v1  ;;  %v806_v42 = vadd.f32 %v2023_v25, %v770_v28  ;;  %v1798_v43 = vpop.eup %1797 }
  0xd7   : > { %1429 = vst [vmem:[%s2093_s24 + $0x8] sm:$0xff] %v976_v38  ;;  %v1091_v44 = vsel %vm1090_vm8, %v1792_v6, %v1087_v36  ;;  %v1205_v45 = vsub.f32 1.0, %v1204_v37  ;;  %v814_v46 = vadd.f32 %v2023_v25, %v778_v29  ;;  %v755_v47 = vmul.f32 %v2018_v24, %v576_v34  ;;  %v616_v6 = vpop.f32.mrf.mxu2 }
  0xd8   : > { %v1800_v48 = vpop.eup %1799  ;;  %v1096_v39 = vsel %vm2152_vm6, %v1095_v33, %v1091_v44  ;;  %v1332_v49 = vand.u32 2147483647, %v2144_v16  ;;  %v1334_v50 = vand.u32 2147483648, %v2144_v16  ;;  %v2174_v51 = vadd.f32 1.0, %v1798_v43 }
  0xd9   : > { %1437 = vst [vmem:[%s2093_s24 + $0x48] sm:$0xff] %v1096_v39  ;;  %v1206_v53 = vmul.f32 %v1796_v30, %v1205_v45  ;;  %vm1209_vm9 = vweird.f32 %v1796_v30  ;;  %v2177_v54 = vadd.f32 1.0, %v1800_v48  ;;  %v838_v55 = vsub.f32 0.0, %v806_v42 }
  0xda   : > { %v1802_v56 = vpop.eup %1801  ;;  %vm2179_vm10 = vcmp.eq.f32.partialorder %v1212_v40, 8.507059e+37  ;;  %1803 = vrcp.f32 %v2174_v51  ;;  %v846_v58 = vsub.f32 0.0, %v814_v46  ;;  %v791_v59 = vadd.f32 %v2023_v25, %v755_v47  ;;  %vm1210_vm11 = vmor %vm1208_vm7, %vm1209_vm9  ;;  %v599_v46 = vpop.f32.mrf.mxu1 }
  0xdb   : > { %v1207_v60 = vadd.f32 %v1796_v30, %v1206_v53  ;;  %v1324_v61 = vmul.f32 %v1802_v56, %v2144_v16  ;;  %1805 = vrcp.f32 %v2177_v54  ;;  %v763_v62 = vmul.f32 %v2018_v24, %v596_v52 }
  0xdc   : > { %v1215_v63 = vor.u32 1.1754944e-38, %v1214_v41  ;;  %vm1328_vm12 = vweird.f32 %v2144_v16  ;;  %vm2191_vm13 = vcmp.eq.f32.partialorder %v1332_v49, 8.507059e+37  ;;  %v1335_v2 = vor.u32 1.1754944e-38, %v1334_v50 }
  0xdd   : > { %v1211_v3 = vsel %vm1210_vm11, %v1796_v30, %v1207_v60  ;;  %v1325_v4 = vsub.f32 1.0, %v1324_v61  ;;  %vm983_vm14 = vweird.f32 %v2174_v51  ;;  %v888_v5 = vmul.f32 1.442695, %v838_v55 }
  0xde   : > { %v1216_v7 = vsel %vm2179_vm10, %v1215_v63, %v1211_v3  ;;  %v987_v1 = vand.u32 2147483647, %v2174_v51  ;;  %v904_v8 = vmul.f32 1.442695, %v846_v58  ;;  %v823_v9 = vsub.f32 0.0, %v791_v59 }
  0xdf   : > { %1445 = vst [vmem:[%s2093_s24 + $0x88] sm:$0xff] %v1216_v7  ;;  %v1326_v11 = vmul.f32 %v1802_v56, %v1325_v4  ;;  %vm1329_vm15 = vweird.f32 %v1802_v56  ;;  %1807 = vpow2.f32 %v888_v5  ;;  %v799_v13 = vadd.f32 %v2023_v25, %v763_v62 }
  0xe0   : > { %v1804_v14 = vpop.eup %1803  ;;  %v989_v12 = vand.u32 2147483648, %v2174_v51  ;;  %1809 = vpow2.f32 %v904_v8  ;;  %v858_v15 = vmul.f32 1.442695, %v823_v9  ;;  %v771_v17 = vmul.f32 %v2018_v24, %v616_v6  ;;  %vm1330_vm0 = vmor %vm1328_vm12, %vm1329_vm15 }
  0xe1   : > { %v1806_v18 = vpop.eup %1805  ;;  %v1327_v19 = vadd.f32 %v1802_v56, %v1326_v11  ;;  %v979_v20 = vmul.f32 %v1804_v14, %v2174_v51  ;;  %v831_v21 = vsub.f32 0.0, %v799_v13  ;;  %v779_v22 = vmul.f32 %v2018_v24, %v636_v10 }
  0xe2   : > { %v1099_v23 = vmul.f32 %v1806_v18, %v2177_v54  ;;  %vm1103_vm1 = vweird.f32 %v2177_v54  ;;  %1811 = vpow2.f32 %v858_v15  ;;  %v807_v26 = vadd.f32 %v2023_v25, %v771_v17 }
  0xe3   : > { %v1331_v28 = vsel %vm1330_vm0, %v1802_v56, %v1327_v19  ;;  %v980_v29 = vsub.f32 1.0, %v979_v20  ;;  %v1109_v30 = vand.u32 2147483648, %v2177_v54  ;;  %v874_v31 = vmul.f32 1.442695, %v831_v21 }
  0xe4   : > { %v1336_v32 = vsel %vm2191_vm13, %v1335_v2, %v1331_v28  ;;  %vm984_vm2 = vweird.f32 %v1804_v14  ;;  %v1100_v16 = vsub.f32 1.0, %v1099_v23  ;;  %v839_v33 = vsub.f32 0.0, %v807_v26  ;;  %v619_v26 = vpop.f32.mrf.mxu2 }
  0xe5   : > { %v1808_v34 = vpop.eup %1807  ;;  %1453 = vst [vmem:[%s2093_s24 + $0xc8] sm:$0xff] %v1336_v32  ;;  %v981_v35 = vmul.f32 %v1804_v14, %v980_v29  ;;  %1813 = vpow2.f32 %v874_v31  ;;  %v815_v36 = vadd.f32 %v2023_v25, %v779_v22  ;;  %v756_v37 = vmul.f32 %v2018_v24, %v579_v27  ;;  %vm985_vm5 = vmor %vm983_vm14, %vm984_vm2 }
  0xe6   : > { %v1810_v38 = vpop.eup %1809  ;;  %v1101_v40 = vmul.f32 %v1806_v18, %v1100_v16  ;;  %vm1104_vm3 = vweird.f32 %v1806_v18  ;;  %v1107_v41 = vand.u32 2147483647, %v2177_v54  ;;  %v2217_v42 = vadd.f32 1.0, %v1808_v34  ;;  %v639_v16 = vpop.f32.mrf.mxu3 }
  0xe7   : > { %v982_v43 = vadd.f32 %v1804_v14, %v981_v35  ;;  %vm988_vm4 = vcmp.eq.f32.partialorder %v987_v1, 8.507059e+37  ;;  %v990_v44 = vor.u32 1.1754944e-38, %v989_v12  ;;  %v2219_v45 = vadd.f32 1.0, %v1810_v38  ;;  %vm1105_vm6 = vmor %vm1103_vm1, %vm1104_vm3 }
  0xe8   : > { %v1812_v47 = vpop.eup %1811  ;;  %v1102_v48 = vadd.f32 %v1806_v18, %v1101_v40  ;;  %v1110_v39 = vor.u32 1.1754944e-38, %v1109_v30  ;;  %1815 = vrcp.f32 %v2217_v42  ;;  %v890_v49 = vmul.f32 1.442695, %v839_v33 }
  0xe9   : > { %v986_v50 = vsel %vm985_vm5, %v1804_v14, %v982_v43  ;;  %1817 = vrcp.f32 %v2219_v45  ;;  %v847_v52 = vsub.f32 0.0, %v815_v36  ;;  %v792_v53 = vadd.f32 %v2023_v25, %v756_v37 }
  0xea   : > { %v991_v55 = vsel %vm988_vm4, %v990_v44, %v986_v50  ;;  %v1106_v51 = vsel %vm1105_vm6, %v1806_v18, %v1102_v48  ;;  %vm1108_vm7 = vcmp.eq.f32.partialorder %v1107_v41, 8.507059e+37  ;;  %v764_v56 = vmul.f32 %v2018_v24, %v599_v46 }
  0xeb   : > { %v1814_v57 = vpop.eup %1813  ;;  %1430 = vst [vmem:[%s2093_s24 + $0x10] sm:$0xff] %v991_v55  ;;  %v1111_v58 = vsel %vm1108_vm7, %v1110_v39, %v1106_v51  ;;  %v1227_v59 = vand.u32 2147483647, %v2217_v42  ;;  %v1229_v60 = vand.u32 2147483648, %v2217_v42  ;;  %v2234_v61 = vadd.f32 1.0, %v1812_v47  ;;  %v581_v47 = vpop.f32.mrf.mxu0 }
  0xec   : > { %1438 = vst [vmem:[%s2093_s24 + $0x50] sm:$0xff] %v1111_v58  ;;  %v1347_v54 = vand.u32 2147483647, %v2219_v45  ;;  %v1349_v62 = vand.u32 2147483648, %v2219_v45  ;;  %v2239_v63 = vadd.f32 1.0, %v1814_v57  ;;  %1819 = vpow2.f32 %v890_v49 }
  0xed   : > { %1821 = vrcp.f32 %v2234_v61  ;;  %v906_v0 = vmul.f32 1.442695, %v847_v52  ;;  %v824_v2 = vsub.f32 0.0, %v792_v53  ;;  %vm1223_vm8 = vweird.f32 %v2217_v42 }
  0xee   : > { %v1816_v3 = vpop.eup %1815  ;;  %1823 = vrcp.f32 %v2239_v63  ;;  %v800_v4 = vadd.f32 %v2023_v25, %v764_v56  ;;  %vm2246_vm9 = vcmp.eq.f32.partialorder %v1227_v59, 8.507059e+37  ;;  %v1230_v1 = vor.u32 1.1754944e-38, %v1229_v60  ;;  %v641_v35 = vpop.f32.mrf.mxu3 }
  0xef   : > { %v1818_v5 = vpop.eup %1817  ;;  %v1219_v6 = vmul.f32 %v1816_v3, %v2217_v42  ;;  %vm1343_vm10 = vweird.f32 %v2219_v45  ;;  %vm2252_vm11 = vcmp.eq.f32.partialorder %v1347_v54, 8.507059e+37  ;;  %v1350_v10 = vor.u32 1.1754944e-38, %v1349_v62 }
  0xf0   : > { %v1339_v8 = vmul.f32 %v1818_v5, %v2219_v45  ;;  %v1002_v11 = vand.u32 2147483647, %v2234_v61  ;;  %v1004_v13 = vand.u32 2147483648, %v2234_v61  ;;  %v1122_v12 = vand.u32 2147483647, %v2239_v63 }
  0xf1   : > { %v1220_v14 = vsub.f32 1.0, %v1219_v6  ;;  %1825 = vpow2.f32 %v906_v0  ;;  %v860_v15 = vmul.f32 1.442695, %v824_v2  ;;  %vm1224_vm12 = vweird.f32 %v1816_v3 }
  0xf2   : > { %v1820_v17 = vpop.eup %1819  ;;  %v1340_v18 = vsub.f32 1.0, %v1339_v8  ;;  %vm998_vm13 = vweird.f32 %v2234_v61  ;;  %v1124_v19 = vand.u32 2147483648, %v2239_v63  ;;  %v832_v20 = vsub.f32 0.0, %v800_v4  ;;  %vm1225_vm2 = vmor %vm1223_vm8, %vm1224_vm12 }
  0xf3   : > { %v1822_v21 = vpop.eup %1821  ;;  %v1221_v22 = vmul.f32 %v1816_v3, %v1220_v14  ;;  %vm1344_vm14 = vweird.f32 %v1818_v5  ;;  %vm1118_vm15 = vweird.f32 %v2239_v63  ;;  %v2262_v23 = vadd.f32 1.0, %v1820_v17 }
  0xf4   : > { %1827 = vpow2.f32 %v860_v15  ;;  %v1824_v27 = vpop.eup %1823  ;;  %v1341_v28 = vmul.f32 %v1818_v5, %v1340_v18  ;;  %v994_v29 = vmul.f32 %v1822_v21, %v2234_v61  ;;  %vm2265_vm0 = vcmp.eq.f32.partialorder %v1002_v11, 8.507059e+37  ;;  %vm1345_vm3 = vmor %vm1343_vm10, %vm1344_vm14 }
  0xf5   : > { %v1005_v31 = vor.u32 1.1754944e-38, %v1004_v13  ;;  %v876_v32 = vmul.f32 1.442695, %v832_v20  ;;  %v1222_v33 = vadd.f32 %v1816_v3, %v1221_v22  ;;  %v1114_v34 = vmul.f32 %v1824_v27, %v2239_v63 }
  0xf6   : > { %vm2270_vm1 = vcmp.eq.f32.partialorder %v1122_v12, 8.507059e+37  ;;  %1829 = vrcp.f32 %v2262_v23  ;;  %v1342_v36 = vadd.f32 %v1818_v5, %v1341_v28  ;;  %v995_v37 = vsub.f32 1.0, %v994_v29 }
  0xf7   : > { %v1125_v38 = vor.u32 1.1754944e-38, %v1124_v19  ;;  %v772_v40 = vmul.f32 %v2018_v24, %v619_v26  ;;  %v1826_v41 = vpop.eup %1825  ;;  %v1226_v43 = vsel %vm1225_vm2, %v1816_v3, %v1222_v33  ;;  %v1115_v44 = vsub.f32 1.0, %v1114_v34 }
  0xf8   : > { %1831 = vpow2.f32 %v876_v32  ;;  %v780_v46 = vmul.f32 %v2018_v24, %v639_v16  ;;  %v1231_v42 = vsel %vm2246_vm9, %v1230_v1, %v1226_v43  ;;  %v1346_v48 = vsel %vm1345_vm3, %v1818_v5, %v1342_v36  ;;  %v584_v36 = vpop.f32.mrf.mxu0 }
  0xf9   : > { %v996_v39 = vmul.f32 %v1822_v21, %v995_v37  ;;  %vm999_vm4 = vweird.f32 %v1822_v21  ;;  %1446 = vst [vmem:[%s2093_s24 + $0x90] sm:$0xff] %v1231_v42  ;;  %v1351_v50 = vsel %vm2252_vm11, %v1350_v10, %v1346_v48  ;;  %v1116_v52 = vmul.f32 %v1824_v27, %v1115_v44  ;;  %v601_v10 = vpop.f32.mrf.mxu1 }
  0xfa   : > { %v1828_v49 = vpop.eup %1827  ;;  %vm1119_vm5 = vweird.f32 %v1824_v27  ;;  %v2288_v45 = vadd.f32 1.0, %v1826_v41  ;;  %1454 = vst [vmem:[%s2093_s24 + $0xd0] sm:$0xff] %v1351_v50  ;;  %v1242_v55 = vand.u32 2147483647, %v2262_v23  ;;  %v757_v56 = vmul.f32 %v2018_v24, %v581_v47  ;;  %vm1000_vm6 = vmor %vm998_vm13, %vm999_vm4 }
  0xfb   : > { %v997_v53 = vadd.f32 %v1822_v21, %v996_v39  ;;  %v2292_v51 = vadd.f32 1.0, %v1828_v49  ;;  %v1117_v58 = vadd.f32 %v1824_v27, %v1116_v52  ;;  %vm1238_vm7 = vweird.f32 %v2262_v23  ;;  %vm1120_vm8 = vmor %vm1118_vm15, %vm1119_vm5 }
  0xfc   : > { %v1830_v57 = vpop.eup %1829  ;;  %1833 = vrcp.f32 %v2288_v45  ;;  %v808_v59 = vadd.f32 %v2023_v25, %v772_v40  ;;  %v1244_v62 = vand.u32 2147483648, %v2262_v23  ;;  %v816_v61 = vadd.f32 %v2023_v25, %v780_v46 }
  0xfd   : > { %v1001_v60 = vsel %vm1000_vm6, %v1822_v21, %v997_v53  ;;  %v1234_v54 = vmul.f32 %v1830_v57, %v2262_v23  ;;  %v1121_v3 = vsel %vm1120_vm8, %v1824_v27, %v1117_v58  ;;  %v1364_v4 = vand.u32 2147483648, %v2288_v45 }
  0xfe   : > { %v1832_v0 = vpop.eup %1831  ;;  %v1006_v2 = vsel %vm2265_vm0, %v1005_v31, %v1001_v60  ;;  %1835 = vrcp.f32 %v2292_v51  ;;  %v1126_v63 = vsel %vm2270_vm1, %v1125_v38, %v1121_v3  ;;  %vm2312_vm9 = vcmp.eq.f32.partialorder %v1242_v55, 8.507059e+37  ;;  %v621_v31 = vpop.f32.mrf.mxu2 }
  0xff   : > { %1431 = vst [vmem:[%s2093_s24 + $0x18] sm:$0xff] %v1006_v2  ;;  %v1235_v5 = vsub.f32 1.0, %v1234_v54  ;;  %v1362_v7 = vand.u32 2147483647, %v2288_v45  ;;  %vm1239_vm10 = vweird.f32 %v1830_v57  ;;  %v1019_v1 = vand.u32 2147483648, %v2292_v51 }
 0x100   : > { %1439 = vst [vmem:[%s2093_s24 + $0x58] sm:$0xff] %v1126_v63  ;;  %v2319_v8 = vadd.f32 1.0, %v1832_v0  ;;  %v840_v9 = vsub.f32 0.0, %v808_v59  ;;  %v1017_v13 = vand.u32 2147483647, %v2292_v51  ;;  %v848_v14 = vsub.f32 0.0, %v816_v61  ;;  %vm1240_vm14 = vmor %vm1238_vm7, %vm1239_vm10 }
 0x101   : > { %v1236_v11 = vmul.f32 %v1830_v57, %v1235_v5  ;;  %v793_v12 = vadd.f32 %v2023_v25, %v757_v56  ;;  %v1245_v17 = vor.u32 1.1754944e-38, %v1244_v62  ;;  %vm1358_vm11 = vweird.f32 %v2288_v45 }
 0x102   : > { %v1834_v15 = vpop.eup %1833  ;;  %v1365_v18 = vor.u32 1.1754944e-38, %v1364_v4  ;;  %1837 = vrcp.f32 %v2319_v8  ;;  %vm2326_vm12 = vcmp.eq.f32.partialorder %v1362_v7, 8.507059e+37  ;;  %vm1013_vm13 = vweird.f32 %v2292_v51 }
 0x103   : > { %v1237_v19 = vadd.f32 %v1830_v57, %v1236_v11  ;;  %v1354_v20 = vmul.f32 %v1834_v15, %v2288_v45  ;;  %v765_v22 = vmul.f32 %v2018_v24, %v601_v10  ;;  %v1020_v27 = vor.u32 1.1754944e-38, %v1019_v1 }
 0x104   : > { %v1836_v26 = vpop.eup %1835  ;;  %v892_v28 = vmul.f32 1.442695, %v840_v9  ;;  %v908_v29 = vmul.f32 1.442695, %v848_v14  ;;  %v825_v30 = vsub.f32 0.0, %v793_v12  ;;  %vm2336_vm15 = vcmp.eq.f32.partialorder %v1017_v13, 8.507059e+37 }
 0x105   : > { %v1241_v32 = vsel %vm1240_vm14, %v1830_v57, %v1237_v19  ;;  %v1355_v16 = vsub.f32 1.0, %v1354_v20  ;;  %v1009_v33 = vmul.f32 %v1836_v26, %v2292_v51  ;;  %vm1133_vm0 = vweird.f32 %v2319_v8  ;;  %v604_v20 = vpop.f32.mrf.mxu1 }
 0x106   : > { %v1246_v23 = vsel %vm2312_vm9, %v1245_v17, %v1241_v32  ;;  %vm1359_vm1 = vweird.f32 %v1834_v15  ;;  %v1137_v37 = vand.u32 2147483647, %v2319_v8  ;;  %1839 = vpow2.f32 %v892_v28  ;;  %v624_v21 = vpop.f32.mrf.mxu2 }
 0x107   : > { %1447 = vst [vmem:[%s2093_s24 + $0x98] sm:$0xff] %v1246_v23  ;;  %v1356_v38 = vmul.f32 %v1834_v15, %v1355_v16  ;;  %v1010_v40 = vsub.f32 1.0, %v1009_v33  ;;  %1841 = vpow2.f32 %v908_v29  ;;  %v862_v41 = vmul.f32 1.442695, %v825_v30  ;;  %vm1360_vm3 = vmor %vm1358_vm11, %vm1359_vm1  ;;  %v644_v30 = vpop.f32.mrf.mxu3 }
 0x108   : > { %v1838_v43 = vpop.eup %1837  ;;  %v801_v44 = vadd.f32 %v2023_v25, %v765_v22  ;;  %v773_v46 = vmul.f32 %v2018_v24, %v621_v31  ;;  %v781_v47 = vmul.f32 %v2018_v24, %v641_v35  ;;  %v758_v42 = vmul.f32 %v2018_v24, %v584_v36  ;;  %v2402_v36 = vld [vmem:[%s2561_s2] ss:$0 sm:$0xff] }
 0x109   : > { %v1357_v48 = vadd.f32 %v1834_v15, %v1356_v38  ;;  %v1011_v39 = vmul.f32 %v1836_v26, %v1010_v40  ;;  %vm1014_vm2 = vweird.f32 %v1836_v26  ;;  %v1129_v49 = vmul.f32 %v1838_v43, %v2319_v8 }
 0x10a   : > { %v1139_v50 = vand.u32 2147483648, %v2319_v8  ;;  %1843 = vpow2.f32 %v862_v41  ;;  %v833_v52 = vsub.f32 0.0, %v801_v44  ;;  %v809_v53 = vadd.f32 %v2023_v25, %v773_v46  ;;  %vm1015_vm4 = vmor %vm1013_vm13, %vm1014_vm2 }
 0x10b   : > { %v1361_v55 = vsel %vm1360_vm3, %v1834_v15, %v1357_v48  ;;  %v1012_v56 = vadd.f32 %v1836_v26, %v1011_v39  ;;  %v1130_v57 = vsub.f32 1.0, %v1129_v49  ;;  %v817_v24 = vadd.f32 %v2023_v25, %v781_v47 }
 0x10c   : > { %v1840_v58 = vpop.eup %1839  ;;  %v1366_v59 = vsel %vm2326_vm12, %v1365_v18, %v1361_v55  ;;  %v878_v45 = vmul.f32 1.442695, %v833_v52  ;;  %v841_v60 = vsub.f32 0.0, %v809_v53  ;;  %v794_v54 = vadd.f32 %v2023_v25, %v758_v42  ;;  %v2423_v55 = vld [vmem:[%s2562_s3] ss:$0 sm:$0xff] }
 0x10d   : > { %v1842_v62 = vpop.eup %1841  ;;  %1455 = vst [vmem:[%s2093_s24 + $0xd8] sm:$0xff] %v1366_v59  ;;  %v1016_v61 = vsel %vm1015_vm4, %v1836_v26, %v1012_v56  ;;  %v1131_v0 = vmul.f32 %v1838_v43, %v1130_v57  ;;  %vm1134_vm5 = vweird.f32 %v1838_v43  ;;  %v2362_v2 = vadd.f32 1.0, %v1840_v58  ;;  %v606_v32 = vpop.f32.mrf.mxu1 }
 0x10e   : > { %v1021_v3 = vsel %vm2336_vm15, %v1020_v27, %v1016_v61  ;;  %v2366_v4 = vadd.f32 1.0, %v1842_v62  ;;  %1845 = vpow2.f32 %v878_v45  ;;  %v894_v63 = vmul.f32 1.442695, %v841_v60  ;;  %vm1135_vm6 = vmor %vm1133_vm0, %vm1134_vm5 }
 0x10f   : > { %1432 = vst [vmem:[%s2093_s24 + $0x20] sm:$0xff] %v1021_v3  ;;  %v1132_v51 = vadd.f32 %v1838_v43, %v1131_v0  ;;  %1847 = vrcp.f32 %v2362_v2  ;;  %v1140_v5 = vor.u32 1.1754944e-38, %v1139_v50  ;;  %v849_v6 = vsub.f32 0.0, %v817_v24  ;;  %v646_v47 = vpop.f32.mrf.mxu3 }
 0x110   : > { %v1844_v25 = vpop.eup %1843  ;;  %1849 = vrcp.f32 %v2366_v4  ;;  %v826_v7 = vsub.f32 0.0, %v794_v54  ;;  %vm1138_vm7 = vcmp.eq.f32.partialorder %v1137_v37, 8.507059e+37  ;;  %v1257_v11 = vand.u32 2147483647, %v2362_v2 }
 0x111   : > { %v1136_v1 = vsel %vm1135_vm6, %v1838_v43, %v1132_v51  ;;  %v2373_v9 = vadd.f32 1.0, %v1844_v25  ;;  %v1259_v13 = vand.u32 2147483648, %v2362_v2  ;;  %1851 = vpow2.f32 %v894_v63 }
 0x112   : > { %v1141_v10 = vsel %vm1138_vm7, %v1140_v5, %v1136_v1  ;;  %v1377_v14 = vand.u32 2147483647, %v2366_v4  ;;  %v1379_v8 = vand.u32 2147483648, %v2366_v4  ;;  %v910_v15 = vmul.f32 1.442695, %v849_v6 }
 0x113   : > { %1440 = vst [vmem:[%s2093_s24 + $0x60] sm:$0xff] %v1141_v10  ;;  %1853 = vrcp.f32 %v2373_v9  ;;  %v864_v17 = vmul.f32 1.442695, %v826_v7  ;;  %vm1253_vm8 = vweird.f32 %v2362_v2  ;;  %vm1373_vm9 = vweird.f32 %v2366_v4 }
 0x114   : > { %v1846_v12 = vpop.eup %1845  ;;  %vm2386_vm10 = vcmp.eq.f32.partialorder %v1257_v11, 8.507059e+37  ;;  %v1260_v28 = vor.u32 1.1754944e-38, %v1259_v13  ;;  %v1032_v29 = vand.u32 2147483647, %v2373_v9  ;;  %1855 = vpow2.f32 %v910_v15 }
 0x115   : > { %v1848_v18 = vpop.eup %1847  ;;  %v2383_v19 = vadd.f32 1.0, %v1846_v12  ;;  %vm2392_vm11 = vcmp.eq.f32.partialorder %v1377_v14, 8.507059e+37  ;;  %v1380_v16 = vor.u32 1.1754944e-38, %v1379_v8  ;;  %v1034_v33 = vand.u32 2147483648, %v2373_v9 }
 0x116   : > { %v1850_v22 = vpop.eup %1849  ;;  %v1249_v26 = vmul.f32 %v1848_v18, %v2362_v2  ;;  %vm1028_vm12 = vweird.f32 %v2373_v9  ;;  %v766_v23 = vmul.f32 %v2402_v36, %v604_v20  ;;  %v774_v37 = vmul.f32 %v2402_v36, %v624_v21 }
 0x117   : > { %v1369_v31 = vmul.f32 %v1850_v22, %v2366_v4  ;;  %1857 = vrcp.f32 %v2383_v19  ;;  %v1852_v34 = vpop.eup %1851  ;;  %vm1254_vm13 = vweird.f32 %v1848_v18  ;;  %v2409_v43 = vmul.f32 %v2402_v36, %v644_v30 }
 0x118   : > { %v1250_v35 = vsub.f32 1.0, %v1249_v26  ;;  %1859 = vpow2.f32 %v864_v17  ;;  %v2406_v41 = vadd.f32 1.0, %v1852_v34  ;;  %vm2412_vm14 = vcmp.eq.f32.partialorder %v1032_v29, 8.507059e+37  ;;  %vm1255_vm1 = vmor %vm1253_vm8, %vm1254_vm13 }
 0x119   : > { %v1854_v38 = vpop.eup %1853  ;;  %v1370_v40 = vsub.f32 1.0, %v1369_v31  ;;  %v1152_v42 = vand.u32 2147483647, %v2383_v19  ;;  %v1154_v48 = vand.u32 2147483648, %v2383_v19  ;;  %vm1374_vm15 = vweird.f32 %v1850_v22 }
 0x11a   : > { %v1251_v44 = vmul.f32 %v1848_v18, %v1250_v35  ;;  %v1024_v46 = vmul.f32 %v1854_v38, %v2373_v9  ;;  %v1035_v49 = vor.u32 1.1754944e-38, %v1034_v33  ;;  %1861 = vrcp.f32 %v2406_v41  ;;  %v1856_v50 = vpop.eup %1855  ;;  %vm1375_vm3 = vmor %vm1373_vm9, %vm1374_vm15  ;;  %v586_v9 = vpop.f32.mrf.mxu0 }
 0x11b   : > { %v1371_v39 = vmul.f32 %v1850_v22, %v1370_v40  ;;  %vm1148_vm0 = vweird.f32 %v2383_v19  ;;  %v802_v56 = vadd.f32 %v2423_v55, %v766_v23  ;;  %vm1029_vm2 = vweird.f32 %v1854_v38 }
 0x11c   : > { %v1252_v52 = vadd.f32 %v1848_v18, %v1251_v44  ;;  %v1025_v53 = vsub.f32 1.0, %v1024_v46  ;;  %v2429_v58 = vadd.f32 1.0, %v1856_v50  ;;  %v810_v59 = vadd.f32 %v2423_v55, %v774_v37  ;;  %vm1030_vm5 = vmor %vm1028_vm12, %vm1029_vm2 }
 0x11d   : > { %v1858_v57 = vpop.eup %1857  ;;  %v1372_v24 = vadd.f32 %v1850_v22, %v1371_v39  ;;  %vm2436_vm4 = vcmp.eq.f32.partialorder %v1152_v42, 8.507059e+37  ;;  %v1155_v0 = vor.u32 1.1754944e-38, %v1154_v48  ;;  %v1272_v63 = vand.u32 2147483647, %v2406_v41 }
 0x11e   : > { %v1860_v45 = vpop.eup %1859  ;;  %v1256_v60 = vsel %vm1255_vm1, %v1848_v18, %v1252_v52  ;;  %v1026_v54 = vmul.f32 %v1854_v38, %v1025_v53  ;;  %v1144_v62 = vmul.f32 %v1858_v57, %v2383_v19  ;;  %v1274_v51 = vand.u32 2147483648, %v2406_v41 }
 0x11f   : > { %v1261_v2 = vsel %vm2386_vm10, %v1260_v28, %v1256_v60  ;;  %v1376_v3 = vsel %vm1375_vm3, %v1850_v22, %v1372_v24  ;;  %1863 = vrcp.f32 %v2429_v58  ;;  %vm1268_vm6 = vweird.f32 %v2406_v41 }
 0x120   : > { %1448 = vst [vmem:[%s2093_s24 + $0xa0] sm:$0xff] %v1261_v2  ;;  %v1381_v4 = vsel %vm2392_vm11, %v1380_v16, %v1376_v3  ;;  %v1027_v25 = vadd.f32 %v1854_v38, %v1026_v54  ;;  %v1145_v5 = vsub.f32 1.0, %v1144_v62  ;;  %v1862_v6 = vpop.eup %1861  ;;  %v2453_v7 = vadd.f32 1.0, %v1860_v45  ;;  %v626_v16 = vpop.f32.mrf.mxu2 }
 0x121   : > { %1456 = vst [vmem:[%s2093_s24 + $0xe0] sm:$0xff] %v1381_v4  ;;  %v834_v1 = vsub.f32 0.0, %v802_v56  ;;  %v842_v10 = vsub.f32 0.0, %v810_v59  ;;  %vm1149_vm7 = vweird.f32 %v1858_v57  ;;  %v1264_v14 = vmul.f32 %v1862_v6, %v2406_v41 }
 0x122   : > { %v1031_v11 = vsel %vm1030_vm5, %v1854_v38, %v1027_v25  ;;  %v1146_v13 = vmul.f32 %v1858_v57, %v1145_v5  ;;  %v1392_v12 = vand.u32 2147483647, %v2429_v58  ;;  %v1394_v15 = vand.u32 2147483648, %v2429_v58  ;;  %vm1150_vm9 = vmor %vm1148_vm0, %vm1149_vm7 }
 0x123   : > { %v1036_v8 = vsel %vm2412_vm14, %v1035_v49, %v1031_v11  ;;  %1865 = vrcp.f32 %v2453_v7  ;;  %v1265_v18 = vsub.f32 1.0, %v1264_v14  ;;  %vm2462_vm8 = vcmp.eq.f32.partialorder %v1272_v63, 8.507059e+37 }
 0x124   : > { %1433 = vst [vmem:[%s2093_s24 + $0x28] sm:$0xff] %v1036_v8  ;;  %v1147_v17 = vadd.f32 %v1858_v57, %v1146_v13  ;;  %v1275_v21 = vor.u32 1.1754944e-38, %v1274_v51  ;;  %vm1388_vm10 = vweird.f32 %v2429_v58  ;;  %v880_v22 = vmul.f32 1.442695, %v834_v1 }
 0x125   : > { %v896_v26 = vmul.f32 1.442695, %v842_v10  ;;  %v818_v27 = vadd.f32 %v2423_v55, %v2409_v43  ;;  %v1864_v28 = vpop.eup %1863  ;;  %v1266_v30 = vmul.f32 %v1862_v6, %v1265_v18  ;;  %vm1269_vm11 = vweird.f32 %v1862_v6 }
 0x126   : > { %v1151_v29 = vsel %vm1150_vm9, %v1858_v57, %v1147_v17  ;;  %v759_v31 = vmul.f32 %v2402_v36, %v586_v9  ;;  %v1384_v33 = vmul.f32 %v1864_v28, %v2429_v58  ;;  %vm2475_vm12 = vcmp.eq.f32.partialorder %v1392_v12, 8.507059e+37  ;;  %vm1270_vm14 = vmor %vm1268_vm6, %vm1269_vm11 }
 0x127   : > { %v1156_v19 = vsel %vm2436_vm4, %v1155_v0, %v1151_v29  ;;  %v1395_v35 = vor.u32 1.1754944e-38, %v1394_v15  ;;  %vm1043_vm13 = vweird.f32 %v2453_v7  ;;  %v1267_v23 = vadd.f32 %v1862_v6, %v1266_v30 }
 0x128   : > { %1441 = vst [vmem:[%s2093_s24 + $0x68] sm:$0xff] %v1156_v19  ;;  %1867 = vpow2.f32 %v880_v22  ;;  %v850_v37 = vsub.f32 0.0, %v818_v27  ;;  %v795_v38 = vadd.f32 %v2423_v55, %v759_v31  ;;  %v1385_v43 = vsub.f32 1.0, %v1384_v33 }
 0x129   : > { %v1866_v40 = vpop.eup %1865  ;;  %1869 = vpow2.f32 %v896_v26  ;;  %v767_v44 = vmul.f32 %v2402_v36, %v606_v32  ;;  %v775_v46 = vmul.f32 %v2402_v36, %v626_v16  ;;  %v1271_v42 = vsel %vm1270_vm14, %v1862_v6, %v1267_v23 }
 0x12a   : > { %vm1389_vm15 = vweird.f32 %v1864_v28  ;;  %v1039_v48 = vmul.f32 %v1866_v40, %v2453_v7  ;;  %v912_v39 = vmul.f32 1.442695, %v850_v37  ;;  %v1276_v49 = vsel %vm2462_vm8, %v1275_v21, %v1271_v42 }
 0x12b   : > { %v1386_v50 = vmul.f32 %v1864_v28, %v1385_v43  ;;  %v827_v52 = vsub.f32 0.0, %v795_v38  ;;  %v803_v41 = vadd.f32 %v2423_v55, %v767_v44  ;;  %1449 = vst [vmem:[%s2093_s24 + $0xa8] sm:$0xff] %v1276_v49  ;;  %v811_v56 = vadd.f32 %v2423_v55, %v775_v46  ;;  %vm1390_vm0 = vmor %vm1388_vm10, %vm1389_vm15 }
 0x12c   : > { %v1040_v53 = vsub.f32 1.0, %v1039_v48  ;;  %1871 = vpow2.f32 %v912_v39  ;;  %v783_v57 = vmul.f32 %v2402_v36, %v646_v47  ;;  %v1049_v59 = vand.u32 2147483648, %v2453_v7 }
 0x12d   : > { %v1387_v24 = vadd.f32 %v1864_v28, %v1386_v50  ;;  %v866_v45 = vmul.f32 1.442695, %v827_v52  ;;  %v835_v60 = vsub.f32 0.0, %v803_v41  ;;  %vm1044_vm1 = vweird.f32 %v1866_v40 }
 0x12e   : > { %v1868_v54 = vpop.eup %1867  ;;  %v1041_v62 = vmul.f32 %v1866_v40, %v1040_v53  ;;  %v1047_v61 = vand.u32 2147483647, %v2453_v7  ;;  %v843_v0 = vsub.f32 0.0, %v811_v56  ;;  %v819_v36 = vadd.f32 %v2423_v55, %v783_v57  ;;  %vm1045_vm2 = vmor %vm1043_vm13, %vm1044_vm1 }
 0x12f   : > { %v1870_v2 = vpop.eup %1869  ;;  %v1391_v3 = vsel %vm1390_vm0, %v1864_v28, %v1387_v24  ;;  %v930_v63 = vadd.f32 1.0, %v1868_v54  ;;  %1873 = vpow2.f32 %v866_v45  ;;  %v882_v5 = vmul.f32 1.442695, %v835_v60 }
 0x130   : > { %v1396_v51 = vsel %vm2475_vm12, %v1395_v35, %v1391_v3  ;;  %v1042_v4 = vadd.f32 %v1866_v40, %v1041_v62  ;;  %v938_v25 = vadd.f32 1.0, %v1870_v2  ;;  %v1050_v58 = vor.u32 1.1754944e-38, %v1049_v59 }
 0x131   : > { %1457 = vst [vmem:[%s2093_s24 + $0xe8] sm:$0xff] %v1396_v51  ;;  %1875 = vrcp.f32 %v930_v63  ;;  %v898_v6 = vmul.f32 1.442695, %v843_v0  ;;  %vm1048_vm3 = vcmp.eq.f32.partialorder %v1047_v61, 8.507059e+37  ;;  %v851_v13 = vsub.f32 0.0, %v819_v36 }
 0x132   : > { %v1872_v1 = vpop.eup %1871  ;;  %v1046_v10 = vsel %vm1045_vm2, %v1866_v40, %v1042_v4  ;;  %1877 = vrcp.f32 %v938_v25  ;;  %v1167_v17 = vand.u32 2147483647, %v930_v63  ;;  %v1169_v22 = vand.u32 2147483648, %v930_v63 }
 0x133   : > { %v1051_v11 = vsel %vm1048_vm3, %v1050_v58, %v1046_v10  ;;  %v2506_v55 = vadd.f32 1.0, %v1872_v1  ;;  %1879 = vpow2.f32 %v882_v5  ;;  %v914_v12 = vmul.f32 1.442695, %v851_v13 }
 0x134   : > { %1434 = vst [vmem:[%s2093_s24 + $0x30] sm:$0xff] %v1051_v11  ;;  %1881 = vpow2.f32 %v898_v6  ;;  %v1287_v26 = vand.u32 2147483647, %v938_v25  ;;  %vm1163_vm4 = vweird.f32 %v930_v63  ;;  %v1289_v29 = vand.u32 2147483648, %v938_v25 }
 0x135   : > { %v1874_v14 = vpop.eup %1873  ;;  %1883 = vrcp.f32 %v2506_v55  ;;  %vm1283_vm6 = vweird.f32 %v938_v25  ;;  %vm1168_vm8 = vcmp.eq.f32.partialorder %v1167_v17, 8.507059e+37  ;;  %v1170_v35 = vor.u32 1.1754944e-38, %v1169_v22 }
 0x136   : > { %v2509_v7 = vadd.f32 1.0, %v1874_v14  ;;  %vm2518_vm9 = vcmp.eq.f32.partialorder %v1287_v26, 8.507059e+37  ;;  %v1290_v40 = vor.u32 1.1754944e-38, %v1289_v29  ;;  %v1407_v47 = vand.u32 2147483647, %v2506_v55 }
 0x137   : > { %v1876_v8 = vpop.eup %1875  ;;  %v1409_v42 = vand.u32 2147483648, %v2506_v55  ;;  %vm1403_vm13 = vweird.f32 %v2506_v55 }
 0x138   : > { %v1878_v15 = vpop.eup %1877  ;;  %v1159_v9 = vmul.f32 %v1876_v8, %v930_v63  ;;  %1885 = vrcp.f32 %v2509_v7  ;;  %vm1164_vm5 = vweird.f32 %v1876_v8  ;;  %v1062_v57 = vand.u32 2147483647, %v2509_v7 }
 0x139   : > { %v1279_v18 = vmul.f32 %v1878_v15, %v938_v25  ;;  %v1880_v20 = vpop.eup %1879  ;;  %1887 = vpow2.f32 %v914_v12  ;;  %vm1284_vm7 = vweird.f32 %v1878_v15  ;;  %vm1165_vm10 = vmor %vm1163_vm4, %vm1164_vm5  ;;  %v1064_v24 = vand.u32 2147483648, %v2509_v7 }
 0x13a   : > { %v1160_v21 = vsub.f32 1.0, %v1159_v9  ;;  %v1882_v27 = vpop.eup %1881  ;;  %v2512_v30 = vadd.f32 1.0, %v1880_v20  ;;  %vm1285_vm11 = vmor %vm1283_vm6, %vm1284_vm7  ;;  %v1410_v45 = vor.u32 1.1754944e-38, %v1409_v42  ;;  %vm1408_vm0 = vcmp.eq.f32.partialorder %v1407_v47, 8.507059e+37 }
 0x13b   : > { %v1280_v28 = vsub.f32 1.0, %v1279_v18  ;;  %v1884_v31 = vpop.eup %1883  ;;  %v2514_v16 = vadd.f32 1.0, %v1882_v27  ;;  %vm1058_vm1 = vweird.f32 %v2509_v7  ;;  %vm1063_vm3 = vcmp.eq.f32.partialorder %v1062_v57, 8.507059e+37 }
 0x13c   : > { %v1161_v32 = vmul.f32 %v1876_v8, %v1160_v21  ;;  %v1399_v33 = vmul.f32 %v1884_v31, %v2506_v55  ;;  %1889 = vrcp.f32 %v2512_v30  ;;  %vm1404_vm12 = vweird.f32 %v1884_v31 }
 0x13d   : > { %v1281_v19 = vmul.f32 %v1878_v15, %v1280_v28  ;;  %1891 = vrcp.f32 %v2514_v16  ;;  %vm1405_vm14 = vmor %vm1403_vm13, %vm1404_vm12  ;;  %v1065_v36 = vor.u32 1.1754944e-38, %v1064_v24  ;;  %v1182_v51 = vand.u32 2147483647, %v2512_v30 }
 0x13e   : > { %v1162_v34 = vadd.f32 %v1876_v8, %v1161_v32  ;;  %v1886_v37 = vpop.eup %1885  ;;  %v1400_v43 = vsub.f32 1.0, %v1399_v33  ;;  %v1184_v4 = vand.u32 2147483648, %v2512_v30  ;;  %vm1178_vm5 = vweird.f32 %v2512_v30 }
 0x13f   : > { %v1282_v38 = vadd.f32 %v1878_v15, %v1281_v19  ;;  %v1888_v44 = vpop.eup %1887  ;;  %v1054_v48 = vmul.f32 %v1886_v37, %v2509_v7  ;;  %vm1059_vm15 = vweird.f32 %v1886_v37  ;;  %v1304_v1 = vand.u32 2147483648, %v2514_v16 }
 0x140   : > { %v1166_v46 = vsel %vm1165_vm10, %v1876_v8, %v1162_v34  ;;  %v1401_v50 = vmul.f32 %v1884_v31, %v1400_v43  ;;  %v947_v59 = vadd.f32 1.0, %v1888_v44  ;;  %vm1060_vm2 = vmor %vm1058_vm1, %vm1059_vm15  ;;  %v1302_v55 = vand.u32 2147483647, %v2514_v16 }
 0x141   : > { %v1171_v39 = vsel %vm1168_vm8, %v1170_v35, %v1166_v46  ;;  %v1286_v49 = vsel %vm1285_vm11, %v1878_v15, %v1282_v38  ;;  %v1055_v41 = vsub.f32 1.0, %v1054_v48  ;;  %v1185_v14 = vor.u32 1.1754944e-38, %v1184_v4 }
 0x142   : > { %1442 = vst [vmem:[%s2093_s24 + $0x70] sm:$0xff] %v1171_v39  ;;  %v1291_v52 = vsel %vm2518_vm9, %v1290_v40, %v1286_v49  ;;  %v1890_v53 = vpop.eup %1889  ;;  %v1402_v56 = vadd.f32 %v1884_v31, %v1401_v50  ;;  %1893 = vrcp.f32 %v947_v59  ;;  %vm1298_vm8 = vweird.f32 %v2514_v16 }
 0x143   : > { %1450 = vst [vmem:[%s2093_s24 + $0xb0] sm:$0xff] %v1291_v52  ;;  %v1056_v60 = vmul.f32 %v1886_v37, %v1055_v41  ;;  %v1174_v54 = vmul.f32 %v1890_v53, %v2512_v30  ;;  %v1892_v62 = vpop.eup %1891  ;;  %vm1179_vm4 = vweird.f32 %v1890_v53  ;;  %vm1183_vm9 = vcmp.eq.f32.partialorder %v1182_v51, 8.507059e+37 }
 0x144   : > { %v1406_v61 = vsel %vm1405_vm14, %v1884_v31, %v1402_v56  ;;  %v1294_v63 = vmul.f32 %v1892_v62, %v2514_v16  ;;  %vm1299_vm6 = vweird.f32 %v1892_v62  ;;  %vm1180_vm7 = vmor %vm1178_vm5, %vm1179_vm4  ;;  %v1305_v9 = vor.u32 1.1754944e-38, %v1304_v1 }
 0x145   : > { %v1411_v0 = vsel %vm1408_vm0, %v1410_v45, %v1406_v61  ;;  %v1057_v2 = vadd.f32 %v1886_v37, %v1056_v60  ;;  %v1175_v3 = vsub.f32 1.0, %v1174_v54  ;;  %vm1300_vm10 = vmor %vm1298_vm8, %vm1299_vm6  ;;  %vm1303_vm11 = vcmp.eq.f32.partialorder %v1302_v55, 8.507059e+37 }
 0x146   : > { %1458 = vst [vmem:[%s2093_s24 + $0xf0] sm:$0xff] %v1411_v0  ;;  %v1295_v58 = vsub.f32 1.0, %v1294_v63  ;;  %v1424_v21 = vand.u32 2147483648, %v947_v59  ;;  %v1422_v26 = vand.u32 2147483647, %v947_v59  ;;  %vm1418_vm13 = vweird.f32 %v947_v59 }
 0x147   : > { %v1061_v25 = vsel %vm1060_vm2, %v1886_v37, %v1057_v2  ;;  %v1176_v5 = vmul.f32 %v1890_v53, %v1175_v3 }
 0x148   : > { %v1066_v6 = vsel %vm1063_vm3, %v1065_v36, %v1061_v25  ;;  %v1296_v11 = vmul.f32 %v1892_v62, %v1295_v58  ;;  %v1894_v13 = vpop.eup %1893  ;;  %v1425_v28 = vor.u32 1.1754944e-38, %v1424_v21  ;;  %vm1423_vm15 = vcmp.eq.f32.partialorder %v1422_v26, 8.507059e+37 }
 0x149   : > { %1435 = vst [vmem:[%s2093_s24 + $0x38] sm:$0xff] %v1066_v6  ;;  %v1177_v10 = vadd.f32 %v1890_v53, %v1176_v5  ;;  %v1414_v12 = vmul.f32 %v1894_v13, %v947_v59  ;;  %vm1419_vm12 = vweird.f32 %v1894_v13 }
 0x14a   : > { %v1297_v7 = vadd.f32 %v1892_v62, %v1296_v11  ;;  %vm1420_vm14 = vmor %vm1418_vm13, %vm1419_vm12 }
 0x14b   : > { %v1181_v8 = vsel %vm1180_vm7, %v1890_v53, %v1177_v10  ;;  %v1415_v18 = vsub.f32 1.0, %v1414_v12 }
 0x14c   : > { %v1186_v15 = vsel %vm1183_vm9, %v1185_v14, %v1181_v8  ;;  %v1301_v17 = vsel %vm1300_vm10, %v1892_v62, %v1297_v7 }
 0x14d   : > { %1443 = vst [vmem:[%s2093_s24 + $0x78] sm:$0xff] %v1186_v15  ;;  %v1306_v20 = vsel %vm1303_vm11, %v1305_v9, %v1301_v17  ;;  %v1416_v22 = vmul.f32 %v1894_v13, %v1415_v18 }
 0x14e   : > { %1451 = vst [vmem:[%s2093_s24 + $0xb8] sm:$0xff] %v1306_v20 }
 0x14f   : > { %v1417_v27 = vadd.f32 %v1894_v13, %v1416_v22 }
 0x151   : > { %v1421_v29 = vsel %vm1420_vm14, %v1894_v13, %v1417_v27 }
 0x152   : > { %v1426_v30 = vsel %vm1423_vm15, %v1425_v28, %v1421_v29 }
 0x153   : > { %1459 = vst [vmem:[%s2093_s24 + $0xf8] sm:$0xff] %v1426_v30 }
 0x154 PF: > { %s14_s17 = sadd.s32 1, %s1919_s17   ;;  %s2608_s15 = smov %s1915_s16 }
 0x155   : > { %p11_p5 = scmp.ge.s32.totalorder %s14_s17, 4   ;;  %s2609_s16 = smov %s2611_s18 }
 0x157   :  { %13 = sbr.rel (!%p11_p5) target bundleno = 2 (0x2), region = 83 }

</bundles_post_ra>
